<compile_context>
chip_gen: v6e
topology: v6e:2x2x1
jax: 0.10.0
libtpu: 0.0.40
codegen_flags: <defaults>
</compile_context>

<pallas_src>
import jax
import jax.numpy as jnp
from jax.experimental import pallas as pl
from jax.experimental.pallas import tpu as pltpu

EPS = 1e-5  # nn.BatchNorm2d default


# --------------------------------------------------------------------------
# Fused Pallas kernel
# --------------------------------------------------------------------------

def _make_upblock_kernel(npix):
    inv_n = 1.0 / float(npix)

    def kernel(x_ref, mup_ref, w1_ref, w2_ref, p_ref, mask_ref, bn_ref, o_ref):
        f32 = jnp.float32
        bf16 = jnp.bfloat16
        r2, F = o_ref.shape                 # (N*2H, 2W*C) lane-dense rows

        p_mat = p_ref[...]                  # (F, F) channel group-sum matrix (f32)
        bn = bn_ref[...]                    # (6, F) tiled gamma/beta rows
        m_prev = mask_ref[0]                # (r2, F): 0 where image row y == 0
        m_next = mask_ref[1]                # (r2, F): 0 where image row y == 2H-1
        sel0 = jax.lax.broadcasted_iota(jnp.int32, (8, F), 0) == 0

        def bn_relu(y, g_t, b_t):
            # One-pass batch stats; s and ss share ONE group-sum matmul:
            # row 0 of the LHS carries sum, row 1 carries sum-of-squares.
            s = jnp.sum(y, axis=0, keepdims=True)
            ss = jnp.sum(y * y, axis=0, keepdims=True)
            stats = jnp.where(sel0, jnp.broadcast_to(s, (8, F)),
                              jnp.broadcast_to(ss, (8, F)))
            gs = jnp.dot(stats, p_mat, preferred_element_type=f32)
            mean = gs[0:1] * inv_n
            var = jnp.maximum(gs[1:2] * inv_n - mean * mean, 0.0)
            scale = g_t * jax.lax.rsqrt(var + EPS)
            shift = b_t - mean * scale
            return jnp.maximum(y * scale + shift, 0.0)          # ReLU activation

        def conv3x3(y, wb_ref):
            # wb_ref: (3, F, F) bf16 banded matrices, one per kernel row kh;
            # the kw taps and the W 'SAME' zero-padding are folded into the
            # bands.  The +-1 image-row shift is a sublane roll (XLU) plus a
            # precomputed boundary mask (VPU) -- no O(R^2) shift matmuls.
            prev = pltpu.roll(y, 1, axis=0) * m_prev            # image row y-1
            nxt = pltpu.roll(y, r2 - 1, axis=0) * m_next        # image row y+1
            acc = jnp.dot(prev.astype(bf16), wb_ref[0], preferred_element_type=f32)
            acc = acc + jnp.dot(y.astype(bf16), wb_ref[1], preferred_element_type=f32)
            acc = acc + jnp.dot(nxt.astype(bf16), wb_ref[2], preferred_element_type=f32)
            return acc

        # ConvTranspose2d(k=2, s=2): block-diagonal input rows (bf16, K=128)
        # against the stacked (2*W*Cin, F) weight emit both output-row
        # parities directly in interleaved image-row order, at M = N*2H.
        y = jnp.dot(x_ref[...], mup_ref[...], preferred_element_type=f32)

        y = bn_relu(y, bn[0:1], bn[1:2])                        # activation(bnup(up))
        y = bn_relu(conv3x3(y, w1_ref), bn[2:3], bn[3:4])       # activation(bn(conv(.)))
        y = bn_relu(conv3x3(y, w2_ref), bn[4:5], bn[5:6])       # activation(bn2(conv2(.)))
        o_ref[...] = y

    return kernel


# --------------------------------------------------------------------------
# One-time parameter re-layout (outside the forward path)
# --------------------------------------------------------------------------

def prepare_params(params, n, h, w):
    f32 = jnp.float32
    bf16 = jnp.bfloat16
    wd = params['deconv_w'].astype(f32)            # (Cin, C, 2, 2) PyTorch layout
    cin, c = wd.shape[0], wd.shape[1]
    w2 = 2 * w
    h2 = 2 * h
    f = w2 * c
    r2 = n * h2

    # ConvTranspose2d(k=2, s=2) as ONE stacked matmul (even rows use the top
    # W*Cin weight rows, odd rows the bottom W*Cin rows):
    #   mup[kh*W*Cin + w*Cin + ci, (2w+kw)*C + co] = wd[ci, co, kh, kw]
    eye_w = jnp.eye(w, dtype=f32)
    mup = jnp.einsum('wv,iokl->kwivlo', eye_w, wd).reshape(2 * w * cin, f)

    # 3x3 'SAME' conv as three banded (F, F) matmuls (one per kernel row kh).
    shifts = jnp.stack([jnp.eye(w2, k=1 - kw, dtype=f32) for kw in range(3)])

    def banded(kc):                                # kc: (Cout, Cin, 3, 3)
        b = jnp.einsum('wsv,oihw->hsivo', shifts, kc.astype(f32))
        return b.reshape(3, f, f)

    # Channel group-sum matrix: P[u, v] = (u % C == v % C).  Built host-side
    # (hoisted out of the kernel); no power-of-two restriction on C.
    lane = jnp.arange(f)
    p_mat = (lane[:, None] % c == lane[None, :] % c).astype(f32)

    # Image-boundary masks for the +-1 image-row rolls (zero at y==0 / y==2H-1).
    yrow = jnp.arange(r2) % h2
    m_prev = jnp.broadcast_to((yrow != 0).astype(f32)[:, None], (r2, f))
    m_next = jnp.broadcast_to((yrow != h2 - 1).astype(f32)[:, None], (r2, f))

    # BN affine params tiled across the folded 2W*C lane axis.  The conv /
    # deconv biases are intentionally dropped: a per-channel constant added
    # before training-mode BatchNorm is exactly cancelled by the batch mean.
    def tile_c(vec):
        return jnp.tile(vec.astype(f32), w2)

    return {
        'mup': mup.astype(bf16),
        'w1b': banded(params['conv1_w']).astype(bf16),
        'w2b': banded(params['conv2_w']).astype(bf16),
        'p': p_mat,
        'masks': jnp.stack([m_prev, m_next]),
        'bn': jnp.stack([tile_c(params['bnup_g']), tile_c(params['bnup_b']),
                         tile_c(params['bn1_g']), tile_c(params['bn1_b']),
                         tile_c(params['bn2_g']), tile_c(params['bn2_b'])]),
    }


# --------------------------------------------------------------------------
# Wrapper: UpBlock.forward
# --------------------------------------------------------------------------

@jax.jit
def up_block_forward(x_nchw, prepared):
    n, cin, h, w = x_nchw.shape
    f = prepared['bn'].shape[1]                    # 2W * Cout
    c = f // (2 * w)
    h2 = 2 * h
    r2 = n * h2
    k = 2 * w * cin
    npix = n * h2 * (2 * w)

    # NCHW -> lane-dense block-diagonal folded rows (N*2H, 2*W*Cin), bf16.
    # Row 2r carries [x_row | 0], row 2r+1 carries [0 | x_row] so a single
    # matmul against the stacked deconv weight emits interleaved image rows.
    # TODO(synk): at scale, accept a folded/channels-last input and emit the
    # folded output directly so back-to-back UpBlocks skip these relayouts.
    xr = jnp.transpose(x_nchw, (0, 2, 3, 1)).astype(jnp.float32).reshape(n * h, w * cin)
    z = jnp.zeros_like(xr)
    x_blk = jnp.stack([jnp.concatenate([xr, z], axis=-1),
                       jnp.concatenate([z, xr], axis=-1)],
                      axis=1).reshape(r2, k).astype(jnp.bfloat16)

    macs = (r2 * k * f                             # deconv (block-diagonal)
            + 2 * 3 * r2 * f * f                   # 2 convs x 3 banded matmuls
            + 3 * 8 * f * f)                       # BN group-sum matmuls
    bytes_accessed = (x_blk.size * 2
                      + prepared['mup'].size * 2
                      + prepared['w1b'].size * 2 + prepared['w2b'].size * 2
                      + prepared['p'].size * 4 + prepared['masks'].size * 4
                      + prepared['bn'].size * 4 + r2 * f * 4)

    vmem = pl.BlockSpec(memory_space=pltpu.MemorySpace.VMEM)
    out = pl.pallas_call(
        _make_upblock_kernel(npix),
        out_shape=jax.ShapeDtypeStruct((r2, f), jnp.float32),
        in_specs=[vmem] * 7,
        out_specs=vmem,
        cost_estimate=pl.CostEstimate(flops=2 * macs, transcendentals=3 * f,
                                      bytes_accessed=bytes_accessed),
    )(x_blk, prepared['mup'], prepared['w1b'], prepared['w2b'],
      prepared['p'], prepared['masks'], prepared['bn'])

    # (N*2H, 2W*C) -> NCHW; the only remaining XLA relayout.
    y = out.reshape(n, h2, 2 * w, c)
    return jnp.transpose(y, (0, 3, 1, 2))


# --------------------------------------------------------------------------
# Pure-JAX f32 reference (includes the biases, which training-mode BN cancels)
# --------------------------------------------------------------------------

def up_block_reference(x_nchw, p):
    x = jnp.transpose(x_nchw, (0, 2, 3, 1)).astype(jnp.float32)
    N, H, W, Cin = x.shape
    Cout = p['deconv_w'].shape[1]
    t = jnp.einsum('nhwi,iokl->nhkwlo', x, p['deconv_w'])
    up = t.reshape(N, 2 * H, 2 * W, Cout) + p['deconv_b']

    def bn_relu(y, g, b):
        mean = y.mean(axis=(0, 1, 2), keepdims=True)
        var = ((y - mean) ** 2).mean(axis=(0, 1, 2), keepdims=True)
        return jnp.maximum((y - mean) * jax.lax.rsqrt(var + EPS) * g + b, 0.0)

    def conv(y, w, b):
        w_hwio = jnp.transpose(w, (2, 3, 1, 0))
        return jax.lax.conv_general_dilated(
            y, w_hwio, (1, 1), 'SAME',
            dimension_numbers=('NHWC', 'HWIO', 'NHWC')) + b

    out = bn_relu(up, p['bnup_g'], p['bnup_b'])
    out = bn_relu(conv(out, p['conv1_w'], p['conv1_b']), p['bn1_g'], p['bn1_b'])
    out = bn_relu(conv(out, p['conv2_w'], p['conv2_b']), p['bn2_g'], p['bn2_b'])
    return jnp.transpose(out, (0, 3, 1, 2))


# --------------------------------------------------------------------------

if __name__ == "__main__":
    key = jax.random.PRNGKey(0)
    N, Cin, H, W = 2, 4, 16, 16
    Cout = 8
    ks = jax.random.split(key, 13)
    params = {
        'deconv_w': 0.2 * jax.random.normal(ks[0], (Cin, Cout, 2, 2), jnp.float32),
        'deconv_b': 0.1 * jax.random.normal(ks[1], (Cout,), jnp.float32),
        'bnup_g': 1.0 + 0.1 * jax.random.normal(ks[2], (Cout,), jnp.float32),
        'bnup_b': 0.1 * jax.random.normal(ks[3], (Cout,), jnp.float32),
        'conv1_w': 0.1 * jax.random.normal(ks[4], (Cout, Cout, 3, 3), jnp.float32),
        'conv1_b': 0.1 * jax.random.normal(ks[5], (Cout,), jnp.float32),
        'bn1_g': 1.0 + 0.1 * jax.random.normal(ks[6], (Cout,), jnp.float32),
        'bn1_b': 0.1 * jax.random.normal(ks[7], (Cout,), jnp.float32),
        'conv2_w': 0.1 * jax.random.normal(ks[8], (Cout, Cout, 3, 3), jnp.float32),
        'conv2_b': 0.1 * jax.random.normal(ks[9], (Cout,), jnp.float32),
        'bn2_g': 1.0 + 0.1 * jax.random.normal(ks[10], (Cout,), jnp.float32),
        'bn2_b': 0.1 * jax.random.normal(ks[11], (Cout,), jnp.float32),
    }
    x = jax.random.normal(ks[12], (N, Cin, H, W), jnp.float32)

    prepared = prepare_params(params, N, H, W)     # one-time weight re-layout
    out = up_block_forward(x, prepared)
    jax.block_until_ready(out)

    assert out.shape == (N, Cout, 2 * H, 2 * W), out.shape
    ref = up_block_reference(x, params)
    err_max = float(jnp.max(jnp.abs(out - ref)))
    err_mean = float(jnp.mean(jnp.abs(out - ref)))
    # Tolerances sized for bf16 matmul inputs with f32 accumulation.
    if (not bool(jnp.all(jnp.isfinite(out)))) or err_max > 1e-1 or err_mean > 1e-2:
        raise SystemExit(f"mismatch vs reference: max={err_max} mean={err_mean}")
    print("KERNEL_OK")
</pallas_src>

<mosaic_0001>
module attributes {stable_mosaic.version = 11 : i64} {
  func.func @kernel(%arg0: memref<64x128xbf16, #tpu.memory_space<vmem>>, %arg1: memref<128x256xbf16, #tpu.memory_space<vmem>>, %arg2: memref<3x256x256xbf16, #tpu.memory_space<vmem>>, %arg3: memref<3x256x256xbf16, #tpu.memory_space<vmem>>, %arg4: memref<256x256xf32, #tpu.memory_space<vmem>>, %arg5: memref<2x64x256xf32, #tpu.memory_space<vmem>>, %arg6: memref<6x256xf32, #tpu.memory_space<vmem>>, %arg7: memref<64x256xf32, #tpu.memory_space<vmem>>) attributes {dimension_semantics = [], scalar_prefetch = 0 : i64, scratch_operands = 0 : i64, tpu.core_type = #tpu.core_type<tc>} {
    %c0 = arith.constant 0 : index
    %c0_0 = arith.constant 0 : index
    %0 = vector.load %arg4[%c0, %c0_0] : memref<256x256xf32, #tpu.memory_space<vmem>>, vector<256x256xf32>
    %c0_1 = arith.constant 0 : index
    %c0_2 = arith.constant 0 : index
    %1 = vector.load %arg6[%c0_1, %c0_2] : memref<6x256xf32, #tpu.memory_space<vmem>>, vector<6x256xf32>
    %c0_3 = arith.constant 0 : index
    %c0_4 = arith.constant 0 : index
    %c0_5 = arith.constant 0 : index
    %2 = vector.load %arg5[%c0_3, %c0_4, %c0_5] : memref<2x64x256xf32, #tpu.memory_space<vmem>>, vector<1x64x256xf32>
    %3 = vector.shape_cast %2 : vector<1x64x256xf32> to vector<64x256xf32>
    %c1 = arith.constant 1 : index
    %c0_6 = arith.constant 0 : index
    %c0_7 = arith.constant 0 : index
    %4 = vector.load %arg5[%c1, %c0_6, %c0_7] : memref<2x64x256xf32, #tpu.memory_space<vmem>>, vector<1x64x256xf32>
    %5 = vector.shape_cast %4 : vector<1x64x256xf32> to vector<64x256xf32>
    %6 = tpu.iota {dimensions = array<i32: 0>} : vector<8x256xi32>
    %c0_i32 = arith.constant 0 : i32
    %7 = vector.broadcast %c0_i32 : i32 to vector<8x256xi32>
    %8 = arith.cmpi eq, %6, %7 : vector<8x256xi32>
    %c0_8 = arith.constant 0 : index
    %c0_9 = arith.constant 0 : index
    %9 = vector.load %arg0[%c0_8, %c0_9] : memref<64x128xbf16, #tpu.memory_space<vmem>>, vector<64x128xbf16>
    %c0_10 = arith.constant 0 : index
    %c0_11 = arith.constant 0 : index
    %10 = vector.load %arg1[%c0_10, %c0_11] : memref<128x256xbf16, #tpu.memory_space<vmem>>, vector<128x256xbf16>
    %cst = arith.constant dense<0.000000e+00> : vector<64x256xf32>
    %11 = tpu.matmul %9, %10, %cst {dimension_numbers = #tpu.dot_dimension_numbers<[1], [0], [0], [1], [0, 0, 1, 1], [], []>} : vector<64x128xbf16>, vector<128x256xbf16>, vector<64x256xf32> -> vector<64x256xf32>
    %12 = vector.extract_strided_slice %1 {offsets = [0, 0], sizes = [1, 256], strides = [1, 1]} : vector<6x256xf32> to vector<1x256xf32>
    %13 = vector.extract_strided_slice %1 {offsets = [1, 0], sizes = [1, 256], strides = [1, 1]} : vector<6x256xf32> to vector<1x256xf32>
    %cst_12 = arith.constant dense<0.000000e+00> : vector<256xf32>
    %14 = vector.multi_reduction <add>, %11, %cst_12 [0] : vector<64x256xf32> to vector<256xf32>
    %15 = vector.shape_cast %14 : vector<256xf32> to vector<1x256xf32>
    %16 = arith.mulf %11, %11 : vector<64x256xf32>
    %cst_13 = arith.constant dense<0.000000e+00> : vector<256xf32>
    %17 = vector.multi_reduction <add>, %16, %cst_13 [0] : vector<64x256xf32> to vector<256xf32>
    %18 = vector.shape_cast %17 : vector<256xf32> to vector<1x256xf32>
    %19 = vector.shape_cast %15 : vector<1x256xf32> to vector<1x256xf32>
    %20 = vector.broadcast %19 : vector<1x256xf32> to vector<8x256xf32>
    %21 = vector.shape_cast %18 : vector<1x256xf32> to vector<1x256xf32>
    %22 = vector.broadcast %21 : vector<1x256xf32> to vector<8x256xf32>
    %23 = arith.select %8, %20, %22 : vector<8x256xi1>, vector<8x256xf32>
    %cst_14 = arith.constant dense<0.000000e+00> : vector<8x256xf32>
    %24 = tpu.matmul %23, %0, %cst_14 {dimension_numbers = #tpu.dot_dimension_numbers<[1], [0], [0], [1], [0, 0, 1, 1], [], []>} : vector<8x256xf32>, vector<256x256xf32>, vector<8x256xf32> -> vector<8x256xf32>
    %25 = vector.extract_strided_slice %24 {offsets = [0, 0], sizes = [1, 256], strides = [1, 1]} : vector<8x256xf32> to vector<1x256xf32>
    %cst_15 = arith.constant 4.8828125E-4 : f32
    %26 = vector.broadcast %cst_15 : f32 to vector<1x256xf32>
    %27 = arith.mulf %25, %26 : vector<1x256xf32>
    %28 = vector.extract_strided_slice %24 {offsets = [1, 0], sizes = [1, 256], strides = [1, 1]} : vector<8x256xf32> to vector<1x256xf32>
    %cst_16 = arith.constant 4.8828125E-4 : f32
    %29 = vector.broadcast %cst_16 : f32 to vector<1x256xf32>
    %30 = arith.mulf %28, %29 : vector<1x256xf32>
    %31 = arith.mulf %27, %27 : vector<1x256xf32>
    %32 = arith.subf %30, %31 : vector<1x256xf32>
    %cst_17 = arith.constant 0.000000e+00 : f32
    %33 = vector.broadcast %cst_17 : f32 to vector<1x256xf32>
    %34 = arith.maximumf %32, %33 : vector<1x256xf32>
    %cst_18 = arith.constant 9.99999974E-6 : f32
    %35 = vector.broadcast %cst_18 : f32 to vector<1x256xf32>
    %36 = arith.addf %34, %35 : vector<1x256xf32>
    %37 = math.rsqrt %36 : vector<1x256xf32>
    %38 = arith.mulf %12, %37 : vector<1x256xf32>
    %39 = arith.mulf %27, %38 : vector<1x256xf32>
    %40 = arith.subf %13, %39 : vector<1x256xf32>
    %41 = vector.broadcast %38 : vector<1x256xf32> to vector<64x256xf32>
    %42 = arith.mulf %11, %41 : vector<64x256xf32>
    %43 = vector.broadcast %40 : vector<1x256xf32> to vector<64x256xf32>
    %44 = arith.addf %42, %43 : vector<64x256xf32>
    %cst_19 = arith.constant 0.000000e+00 : f32
    %45 = vector.broadcast %cst_19 : f32 to vector<64x256xf32>
    %46 = arith.maximumf %44, %45 : vector<64x256xf32>
    %c1_i32 = arith.constant 1 : i32
    %47 = tpu.dynamic_rotate %46 by %c1_i32 dim 0 : vector<64x256xf32>, i32 -> vector<64x256xf32>
    %48 = arith.mulf %47, %3 : vector<64x256xf32>
    %c63_i32 = arith.constant 63 : i32
    %49 = tpu.dynamic_rotate %46 by %c63_i32 dim 0 : vector<64x256xf32>, i32 -> vector<64x256xf32>
    %50 = arith.mulf %49, %5 : vector<64x256xf32>
    %51 = arith.truncf %48 : vector<64x256xf32> to vector<64x256xbf16>
    %c0_20 = arith.constant 0 : index
    %c0_21 = arith.constant 0 : index
    %c0_22 = arith.constant 0 : index
    %52 = vector.load %arg2[%c0_20, %c0_21, %c0_22] : memref<3x256x256xbf16, #tpu.memory_space<vmem>>, vector<1x256x256xbf16>
    %53 = vector.shape_cast %52 : vector<1x256x256xbf16> to vector<256x256xbf16>
    %cst_23 = arith.constant dense<0.000000e+00> : vector<64x256xf32>
    %54 = tpu.matmul %51, %53, %cst_23 {dimension_numbers = #tpu.dot_dimension_numbers<[1], [0], [0], [1], [0, 0, 1, 1], [], []>} : vector<64x256xbf16>, vector<256x256xbf16>, vector<64x256xf32> -> vector<64x256xf32>
    %55 = arith.truncf %46 : vector<64x256xf32> to vector<64x256xbf16>
    %c1_24 = arith.constant 1 : index
    %c0_25 = arith.constant 0 : index
    %c0_26 = arith.constant 0 : index
    %56 = vector.load %arg2[%c1_24, %c0_25, %c0_26] : memref<3x256x256xbf16, #tpu.memory_space<vmem>>, vector<1x256x256xbf16>
    %57 = vector.shape_cast %56 : vector<1x256x256xbf16> to vector<256x256xbf16>
    %cst_27 = arith.constant dense<0.000000e+00> : vector<64x256xf32>
    %58 = tpu.matmul %55, %57, %cst_27 {dimension_numbers = #tpu.dot_dimension_numbers<[1], [0], [0], [1], [0, 0, 1, 1], [], []>} : vector<64x256xbf16>, vector<256x256xbf16>, vector<64x256xf32> -> vector<64x256xf32>
    %59 = arith.addf %54, %58 : vector<64x256xf32>
    %60 = arith.truncf %50 : vector<64x256xf32> to vector<64x256xbf16>
    %c2 = arith.constant 2 : index
    %c0_28 = arith.constant 0 : index
    %c0_29 = arith.constant 0 : index
    %61 = vector.load %arg2[%c2, %c0_28, %c0_29] : memref<3x256x256xbf16, #tpu.memory_space<vmem>>, vector<1x256x256xbf16>
    %62 = vector.shape_cast %61 : vector<1x256x256xbf16> to vector<256x256xbf16>
    %cst_30 = arith.constant dense<0.000000e+00> : vector<64x256xf32>
    %63 = tpu.matmul %60, %62, %cst_30 {dimension_numbers = #tpu.dot_dimension_numbers<[1], [0], [0], [1], [0, 0, 1, 1], [], []>} : vector<64x256xbf16>, vector<256x256xbf16>, vector<64x256xf32> -> vector<64x256xf32>
    %64 = arith.addf %59, %63 : vector<64x256xf32>
    %65 = vector.extract_strided_slice %1 {offsets = [2, 0], sizes = [1, 256], strides = [1, 1]} : vector<6x256xf32> to vector<1x256xf32>
    %66 = vector.extract_strided_slice %1 {offsets = [3, 0], sizes = [1, 256], strides = [1, 1]} : vector<6x256xf32> to vector<1x256xf32>
    %cst_31 = arith.constant dense<0.000000e+00> : vector<256xf32>
    %67 = vector.multi_reduction <add>, %64, %cst_31 [0] : vector<64x256xf32> to vector<256xf32>
    %68 = vector.shape_cast %67 : vector<256xf32> to vector<1x256xf32>
    %69 = arith.mulf %64, %64 : vector<64x256xf32>
    %cst_32 = arith.constant dense<0.000000e+00> : vector<256xf32>
    %70 = vector.multi_reduction <add>, %69, %cst_32 [0] : vector<64x256xf32> to vector<256xf32>
    %71 = vector.shape_cast %70 : vector<256xf32> to vector<1x256xf32>
    %72 = vector.shape_cast %68 : vector<1x256xf32> to vector<1x256xf32>
    %73 = vector.broadcast %72 : vector<1x256xf32> to vector<8x256xf32>
    %74 = vector.shape_cast %71 : vector<1x256xf32> to vector<1x256xf32>
    %75 = vector.broadcast %74 : vector<1x256xf32> to vector<8x256xf32>
    %76 = arith.select %8, %73, %75 : vector<8x256xi1>, vector<8x256xf32>
    %cst_33 = arith.constant dense<0.000000e+00> : vector<8x256xf32>
    %77 = tpu.matmul %76, %0, %cst_33 {dimension_numbers = #tpu.dot_dimension_numbers<[1], [0], [0], [1], [0, 0, 1, 1], [], []>} : vector<8x256xf32>, vector<256x256xf32>, vector<8x256xf32> -> vector<8x256xf32>
    %78 = vector.extract_strided_slice %77 {offsets = [0, 0], sizes = [1, 256], strides = [1, 1]} : vector<8x256xf32> to vector<1x256xf32>
    %cst_34 = arith.constant 4.8828125E-4 : f32
    %79 = vector.broadcast %cst_34 : f32 to vector<1x256xf32>
    %80 = arith.mulf %78, %79 : vector<1x256xf32>
    %81 = vector.extract_strided_slice %77 {offsets = [1, 0], sizes = [1, 256], strides = [1, 1]} : vector<8x256xf32> to vector<1x256xf32>
    %cst_35 = arith.constant 4.8828125E-4 : f32
    %82 = vector.broadcast %cst_35 : f32 to vector<1x256xf32>
    %83 = arith.mulf %81, %82 : vector<1x256xf32>
    %84 = arith.mulf %80, %80 : vector<1x256xf32>
    %85 = arith.subf %83, %84 : vector<1x256xf32>
    %cst_36 = arith.constant 0.000000e+00 : f32
    %86 = vector.broadcast %cst_36 : f32 to vector<1x256xf32>
    %87 = arith.maximumf %85, %86 : vector<1x256xf32>
    %cst_37 = arith.constant 9.99999974E-6 : f32
    %88 = vector.broadcast %cst_37 : f32 to vector<1x256xf32>
    %89 = arith.addf %87, %88 : vector<1x256xf32>
    %90 = math.rsqrt %89 : vector<1x256xf32>
    %91 = arith.mulf %65, %90 : vector<1x256xf32>
    %92 = arith.mulf %80, %91 : vector<1x256xf32>
    %93 = arith.subf %66, %92 : vector<1x256xf32>
    %94 = vector.broadcast %91 : vector<1x256xf32> to vector<64x256xf32>
    %95 = arith.mulf %64, %94 : vector<64x256xf32>
    %96 = vector.broadcast %93 : vector<1x256xf32> to vector<64x256xf32>
    %97 = arith.addf %95, %96 : vector<64x256xf32>
    %cst_38 = arith.constant 0.000000e+00 : f32
    %98 = vector.broadcast %cst_38 : f32 to vector<64x256xf32>
    %99 = arith.maximumf %97, %98 : vector<64x256xf32>
    %c1_i32_39 = arith.constant 1 : i32
    %100 = tpu.dynamic_rotate %99 by %c1_i32_39 dim 0 : vector<64x256xf32>, i32 -> vector<64x256xf32>
    %101 = arith.mulf %100, %3 : vector<64x256xf32>
    %c63_i32_40 = arith.constant 63 : i32
    %102 = tpu.dynamic_rotate %99 by %c63_i32_40 dim 0 : vector<64x256xf32>, i32 -> vector<64x256xf32>
    %103 = arith.mulf %102, %5 : vector<64x256xf32>
    %104 = arith.truncf %101 : vector<64x256xf32> to vector<64x256xbf16>
    %c0_41 = arith.constant 0 : index
    %c0_42 = arith.constant 0 : index
    %c0_43 = arith.constant 0 : index
    %105 = vector.load %arg3[%c0_41, %c0_42, %c0_43] : memref<3x256x256xbf16, #tpu.memory_space<vmem>>, vector<1x256x256xbf16>
    %106 = vector.shape_cast %105 : vector<1x256x256xbf16> to vector<256x256xbf16>
    %cst_44 = arith.constant dense<0.000000e+00> : vector<64x256xf32>
    %107 = tpu.matmul %104, %106, %cst_44 {dimension_numbers = #tpu.dot_dimension_numbers<[1], [0], [0], [1], [0, 0, 1, 1], [], []>} : vector<64x256xbf16>, vector<256x256xbf16>, vector<64x256xf32> -> vector<64x256xf32>
    %108 = arith.truncf %99 : vector<64x256xf32> to vector<64x256xbf16>
    %c1_45 = arith.constant 1 : index
    %c0_46 = arith.constant 0 : index
    %c0_47 = arith.constant 0 : index
    %109 = vector.load %arg3[%c1_45, %c0_46, %c0_47] : memref<3x256x256xbf16, #tpu.memory_space<vmem>>, vector<1x256x256xbf16>
    %110 = vector.shape_cast %109 : vector<1x256x256xbf16> to vector<256x256xbf16>
    %cst_48 = arith.constant dense<0.000000e+00> : vector<64x256xf32>
    %111 = tpu.matmul %108, %110, %cst_48 {dimension_numbers = #tpu.dot_dimension_numbers<[1], [0], [0], [1], [0, 0, 1, 1], [], []>} : vector<64x256xbf16>, vector<256x256xbf16>, vector<64x256xf32> -> vector<64x256xf32>
    %112 = arith.addf %107, %111 : vector<64x256xf32>
    %113 = arith.truncf %103 : vector<64x256xf32> to vector<64x256xbf16>
    %c2_49 = arith.constant 2 : index
    %c0_50 = arith.constant 0 : index
    %c0_51 = arith.constant 0 : index
    %114 = vector.load %arg3[%c2_49, %c0_50, %c0_51] : memref<3x256x256xbf16, #tpu.memory_space<vmem>>, vector<1x256x256xbf16>
    %115 = vector.shape_cast %114 : vector<1x256x256xbf16> to vector<256x256xbf16>
    %cst_52 = arith.constant dense<0.000000e+00> : vector<64x256xf32>
    %116 = tpu.matmul %113, %115, %cst_52 {dimension_numbers = #tpu.dot_dimension_numbers<[1], [0], [0], [1], [0, 0, 1, 1], [], []>} : vector<64x256xbf16>, vector<256x256xbf16>, vector<64x256xf32> -> vector<64x256xf32>
    %117 = arith.addf %112, %116 : vector<64x256xf32>
    %118 = vector.extract_strided_slice %1 {offsets = [4, 0], sizes = [1, 256], strides = [1, 1]} : vector<6x256xf32> to vector<1x256xf32>
    %119 = vector.extract_strided_slice %1 {offsets = [5, 0], sizes = [1, 256], strides = [1, 1]} : vector<6x256xf32> to vector<1x256xf32>
    %cst_53 = arith.constant dense<0.000000e+00> : vector<256xf32>
    %120 = vector.multi_reduction <add>, %117, %cst_53 [0] : vector<64x256xf32> to vector<256xf32>
    %121 = vector.shape_cast %120 : vector<256xf32> to vector<1x256xf32>
    %122 = arith.mulf %117, %117 : vector<64x256xf32>
    %cst_54 = arith.constant dense<0.000000e+00> : vector<256xf32>
    %123 = vector.multi_reduction <add>, %122, %cst_54 [0] : vector<64x256xf32> to vector<256xf32>
    %124 = vector.shape_cast %123 : vector<256xf32> to vector<1x256xf32>
    %125 = vector.shape_cast %121 : vector<1x256xf32> to vector<1x256xf32>
    %126 = vector.broadcast %125 : vector<1x256xf32> to vector<8x256xf32>
    %127 = vector.shape_cast %124 : vector<1x256xf32> to vector<1x256xf32>
    %128 = vector.broadcast %127 : vector<1x256xf32> to vector<8x256xf32>
    %129 = arith.select %8, %126, %128 : vector<8x256xi1>, vector<8x256xf32>
    %cst_55 = arith.constant dense<0.000000e+00> : vector<8x256xf32>
    %130 = tpu.matmul %129, %0, %cst_55 {dimension_numbers = #tpu.dot_dimension_numbers<[1], [0], [0], [1], [0, 0, 1, 1], [], []>} : vector<8x256xf32>, vector<256x256xf32>, vector<8x256xf32> -> vector<8x256xf32>
    %131 = vector.extract_strided_slice %130 {offsets = [0, 0], sizes = [1, 256], strides = [1, 1]} : vector<8x256xf32> to vector<1x256xf32>
    %cst_56 = arith.constant 4.8828125E-4 : f32
    %132 = vector.broadcast %cst_56 : f32 to vector<1x256xf32>
    %133 = arith.mulf %131, %132 : vector<1x256xf32>
    %134 = vector.extract_strided_slice %130 {offsets = [1, 0], sizes = [1, 256], strides = [1, 1]} : vector<8x256xf32> to vector<1x256xf32>
    %cst_57 = arith.constant 4.8828125E-4 : f32
    %135 = vector.broadcast %cst_57 : f32 to vector<1x256xf32>
    %136 = arith.mulf %134, %135 : vector<1x256xf32>
    %137 = arith.mulf %133, %133 : vector<1x256xf32>
    %138 = arith.subf %136, %137 : vector<1x256xf32>
    %cst_58 = arith.constant 0.000000e+00 : f32
    %139 = vector.broadcast %cst_58 : f32 to vector<1x256xf32>
    %140 = arith.maximumf %138, %139 : vector<1x256xf32>
    %cst_59 = arith.constant 9.99999974E-6 : f32
    %141 = vector.broadcast %cst_59 : f32 to vector<1x256xf32>
    %142 = arith.addf %140, %141 : vector<1x256xf32>
    %143 = math.rsqrt %142 : vector<1x256xf32>
    %144 = arith.mulf %118, %143 : vector<1x256xf32>
    %145 = arith.mulf %133, %144 : vector<1x256xf32>
    %146 = arith.subf %119, %145 : vector<1x256xf32>
    %147 = vector.broadcast %144 : vector<1x256xf32> to vector<64x256xf32>
    %148 = arith.mulf %117, %147 : vector<64x256xf32>
    %149 = vector.broadcast %146 : vector<1x256xf32> to vector<64x256xf32>
    %150 = arith.addf %148, %149 : vector<64x256xf32>
    %cst_60 = arith.constant 0.000000e+00 : f32
    %151 = vector.broadcast %cst_60 : f32 to vector<64x256xf32>
    %152 = arith.maximumf %150, %151 : vector<64x256xf32>
    %c0_61 = arith.constant 0 : index
    %c0_62 = arith.constant 0 : index
    %153 = vector.load %arg7[%c0_61, %c0_62] : memref<64x256xf32, #tpu.memory_space<vmem>>, vector<64x256xf32>
    tpu.vector_store %arg7[%c0_61, %c0_62], %152 {strides = array<i32>} : memref<64x256xf32, #tpu.memory_space<vmem>>, vector<64x256xf32>,
    return
  }
}

</mosaic_0001>

<bundles_post_ra>
// kernel: up_block_forward.1
= control target key start
LH: loop header
LB: loop body
LE: loop exit
PB: predicated region body
PF: predicated region fallthrough
CT: control target
= control target key end

     0   :  { %12 = vsyncpa [#allocation3], 0  ;;  %s5096_s0 = inlined_call_operand.vmem [shape: bf16[64,128], index: 0, kind: input, shape index: {}]   ;;  %s5097_s1 = inlined_call_operand.vmem [shape: bf16[128,256], index: 1, kind: input, shape index: {}]   ;;  %s5098_s2 = inlined_call_operand.vmem [shape: bf16[3,256,256], index: 2, kind: input, shape index: {}]   ;;  %s5099_s3 = inlined_call_operand.hbm [shape: bf16[3,256,256], index: 3, kind: input, shape index: {}]   ;;  %s5100_s4 = inlined_call_operand.hbm [shape: f32[256,256], index: 4, kind: input, shape index: {}]   ;;  %s5101_s5 = inlined_call_operand.hbm [shape: f32[2,64,256], index: 5, kind: input, shape index: {}]   ;;  %s5102_s6 = inlined_call_operand.vmem [shape: f32[6,256], index: 6, kind: input, shape index: {}]   ;;  %s5103_s7 = inlined_call_operand.vmem [shape: f32[64,256], index: 7, kind: output, shape index: {}]  }
   0x1   :  { %13 = vsyncpa [#allocation5], 0  ;;  %s3836_s24 = smov [#allocation4]  }
   0x2   :  { %s37_s25 = sshll.u32 %s3836_s24, 4  ;;  %s38_s25 = int_to_ptr.vmem [resolvable:$true] %s37_s25 }
   0x3   :  { %s3780_s26 = scalar_lea.vmem %s38_s25, 8192  ;;  %p3785_p1 = scmp.lt.s32.totalorder %s38_s25, %s38_s25 }
   0x4   :  { %p3781_p0 = scmp.ne.s32.totalorder %s38_s25, %s3780_s26  ;;  %p3786_p2 = scmp.lt.s32.totalorder %s3780_s26, %s3780_s26 }
   0x6   :  { %p3787_p3 = por %p3786_p2, %p3785_p1 }
   0x8   :  { %p3788_p4 = pnand %p3787_p3, %p3781_p0 }
   0xa   :  { %3791 = shalt.err (!%p3788_p4)
}
   0xb   :  { %s3837_s27 = smov 256   ;;  %s3838_s28 = smov 16  }
   0xc   :  { %43 = dma.hbm_to_vmem [thread:$0]  %s5100_s4, 8192, %s38_s25, [#allocation5], %s3837_s27, %s3837_s27, %s3838_s28  }
   0xd   :  { %s3839_s8 = smov [#allocation2]  }
   0xe   :  { %s25_s9 = sshll.u32 %s3839_s8, 4  ;;  %s26_s9 = int_to_ptr.vmem [resolvable:$true] %s25_s9 }
   0xf   :  { %s3800_s10 = scalar_lea.vmem %s26_s9, 12288  ;;  %p3805_p6 = scmp.lt.s32.totalorder %s26_s9, %s26_s9 }
  0x10   :  { %p3801_p5 = scmp.ne.s32.totalorder %s26_s9, %s3800_s10  ;;  %p3806_p7 = scmp.lt.s32.totalorder %s3800_s10, %s3800_s10 }
  0x12   :  { %p3807_p8 = por %p3806_p7, %p3805_p6 }
  0x14   :  { %p3808_p9 = pnand %p3807_p8, %p3801_p5 }
  0x16   :  { %3811 = shalt.err (!%p3808_p9)
}
  0x17   :  { %s3840_s11 = smov 128   ;;  %s3841_s12 = smov 8  }
  0x18   :  { %31 = dma.hbm_to_vmem [thread:$0]  %s5099_s3, 12288, %s26_s9, [#allocation3], %s3840_s11, %s3840_s11, %s3841_s12  }
  0x19   :  { %s3842_s15 = smov [#allocation6]  }
  0x1a   :  { %s49_s16 = sshll.u32 %s3842_s15, 4  ;;  %s50_s16 = int_to_ptr.vmem [resolvable:$true] %s49_s16 }
  0x1b   :  { %s3820_s4 = scalar_lea.vmem %s50_s16, 4096  ;;  %p3825_p11 = scmp.lt.s32.totalorder %s50_s16, %s50_s16 }
  0x1c   :  { %p3821_p10 = scmp.ne.s32.totalorder %s50_s16, %s3820_s4  ;;  %p3826_p12 = scmp.lt.s32.totalorder %s3820_s4, %s3820_s4 }
  0x1e   :  { %p3827_p13 = por %p3826_p12, %p3825_p11 }
  0x20   :  { %p3828_p0 = pnand %p3827_p13, %p3821_p10 }
  0x22   :  { %3831 = shalt.err (!%p3828_p0)
}
  0x23   :  { %55 = dma.hbm_to_vmem [thread:$0]  %s5101_s5, 4096, %s50_s16, [#allocation5], %s3837_s27, %s3837_s27, %s3838_s28  }
  0x24   :  { %3832 = dma.done.wait [#allocation3], 12288  }
  0x25   :  { %3833 = vsyncadd [#allocation3], 4294955008 }
  0x26   :  { %3834 = dma.done.wait [#allocation5], 12288  }
  0x27   :  { %3835 = vsyncadd [#allocation5], 4294955008  ;;  %v3843_v0 = vmov 0   ;;  %v3280_v1 = vld [vmem:[%s5097_s1 + $0x74] ss:$8 sps:$4 sm:$0xff]   ;;  %v97_v13 = vld [vmem:[#allocation4 + $0xe8] sm:$0xff] }
  0x28   :  { %330 = vmatprep.mubr.bf16.mxu0 %v3843_v0  ;;  %v3282_v2 = vld [vmem:[%s5097_s1 + $0x70] ss:$8 sps:$4 sm:$0xff]   ;;  %298 = vmatprep.subr.bf16.mxu0 %v3280_v1  ;;  %v3283_v3 = vld [vmem:[%s5097_s1 + $0x64] ss:$8 sps:$4 sm:$0xff]   ;;  %v3285_v4 = vld [vmem:[%s5097_s1 + $0x60] ss:$8 sps:$4 sm:$0xff]  }
  0x29   :  { %299 = vmatpush1.bf16.msra.mxu0 %v3282_v2  ;;  %v3286_v5 = vld [vmem:[%s5097_s1 + $0x54] ss:$8 sps:$4 sm:$0xff]   ;;  %v3288_v6 = vld [vmem:[%s5097_s1 + $0x50] ss:$8 sps:$4 sm:$0xff]   ;;  %v3289_v7 = vld [vmem:[%s5097_s1 + $0x44] ss:$8 sps:$4 sm:$0xff]  }
  0x2a   :  { %300 = vmatprep.subr.bf16.mxu0 %v3283_v3  ;;  %v3291_v8 = vld [vmem:[%s5097_s1 + $0x40] ss:$8 sps:$4 sm:$0xff]   ;;  %v3292_v9 = vld [vmem:[%s5097_s1 + $0x34] ss:$8 sps:$4 sm:$0xff]   ;;  %v3294_v10 = vld [vmem:[%s5097_s1 + $0x30] ss:$8 sps:$4 sm:$0xff]  }
  0x2b   :  { %v99_v11 = vld [vmem:[#allocation4 + $0xf8] sm:$0xff]  ;;  %v98_v12 = vld [vmem:[#allocation4 + $0xf0] sm:$0xff]  ;;  %v96_v14 = vld [vmem:[#allocation4 + $0xe0] sm:$0xff] }
  0x2c   :  { %441 = vmatprep.subr.mxu1 %v99_v11  ;;  %v3295_v15 = vld [vmem:[%s5097_s1 + $0x24] ss:$8 sps:$4 sm:$0xff]   ;;  %v95_v16 = vld [vmem:[#allocation4 + $0xd8] sm:$0xff]  ;;  %v3297_v17 = vld [vmem:[%s5097_s1 + $0x20] ss:$8 sps:$4 sm:$0xff]  }
  0x2d   :  { %301 = vmatpush1.bf16.msra.mxu0 %v3285_v4  ;;  %442 = vmatpush1.msra.mxu1 %v98_v12  ;;  %v94_v18 = vld [vmem:[#allocation4 + $0xd0] sm:$0xff]  ;;  %v93_v20 = vld [vmem:[#allocation4 + $0xc8] sm:$0xff]  ;;  %v92_v21 = vld [vmem:[#allocation4 + $0xc0] sm:$0xff] }
  0x2e   :  { %302 = vmatprep.subr.bf16.mxu0 %v3286_v5  ;;  %443 = vmatprep.subr.mxu1 %v97_v13  ;;  %v3298_v19 = vld [vmem:[%s5097_s1 + $0x14] ss:$8 sps:$4 sm:$0xff]   ;;  %v89_v24 = vld [vmem:[#allocation4 + $0xa8] sm:$0xff]  ;;  %v3300_v25 = vld [vmem:[%s5097_s1 + $0x10] ss:$8 sps:$4 sm:$0xff]  }
  0x2f   :  { %444 = vmatpush1.msra.mxu1 %v96_v14  ;;  %v91_v22 = vld [vmem:[#allocation4 + $0xb8] sm:$0xff]  ;;  %v90_v23 = vld [vmem:[#allocation4 + $0xb0] sm:$0xff]  ;;  %v88_v26 = vld [vmem:[#allocation4 + $0xa0] sm:$0xff] }
  0x30   :  { %445 = vmatprep.subr.mxu1 %v95_v16  ;;  %v3301_v27 = vld [vmem:[%s5097_s1 + $0x4] ss:$8 sps:$4 sm:$0xff]   ;;  %v87_v28 = vld [vmem:[#allocation4 + $0x98] sm:$0xff]  ;;  %v86_v29 = vld [vmem:[#allocation4 + $0x90] sm:$0xff] }
  0x31   :  { %303 = vmatpush1.bf16.msra.mxu0 %v3288_v6  ;;  %446 = vmatpush1.msra.mxu1 %v94_v18  ;;  %v85_v30 = vld [vmem:[#allocation4 + $0x88] sm:$0xff]  ;;  %v3304_v32 = vld [vmem:[%s5096_s0] sm:$0xff]   ;;  %v3306_v34 = vld [vmem:[%s5096_s0 + $0x10] sm:$0xff]  }
  0x32   :  { %304 = vmatprep.subr.bf16.mxu0 %v3289_v7  ;;  %447 = vmatprep.subr.mxu1 %v93_v20  ;;  %v3303_v31 = vld [vmem:[%s5097_s1] ss:$8 sps:$4 sm:$0xff]   ;;  %v3307_v35 = vld [vmem:[%s5096_s0 + $0x18] sm:$0xff]   ;;  %v82_v38 = vld [vmem:[#allocation4 + $0x70] sm:$0xff] }
  0x33   :  { %448 = vmatpush1.msra.mxu1 %v92_v21  ;;  %v3305_v33 = vld [vmem:[%s5096_s0 + $0x8] sm:$0xff]   ;;  %v84_v36 = vld [vmem:[#allocation4 + $0x80] sm:$0xff]  ;;  %v83_v37 = vld [vmem:[#allocation4 + $0x78] sm:$0xff] }
  0x34   :  { %449 = vmatprep.subr.mxu1 %v91_v22  ;;  %v81_v39 = vld [vmem:[#allocation4 + $0x68] sm:$0xff]  ;;  %v80_v40 = vld [vmem:[#allocation4 + $0x60] sm:$0xff]  ;;  %v79_v41 = vld [vmem:[#allocation4 + $0x58] sm:$0xff] }
  0x35   :  { %305 = vmatpush1.bf16.msra.mxu0 %v3291_v8  ;;  %450 = vmatpush1.msra.mxu1 %v90_v23  ;;  %v78_v42 = vld [vmem:[#allocation4 + $0x50] sm:$0xff]  ;;  %v77_v43 = vld [vmem:[#allocation4 + $0x48] sm:$0xff]  ;;  %v76_v44 = vld [vmem:[#allocation4 + $0x40] sm:$0xff] }
  0x36   :  { %306 = vmatprep.subr.bf16.mxu0 %v3292_v9  ;;  %451 = vmatprep.subr.mxu1 %v89_v24  ;;  %v75_v45 = vld [vmem:[#allocation4 + $0x38] sm:$0xff]  ;;  %v74_v46 = vld [vmem:[#allocation4 + $0x30] sm:$0xff]  ;;  %v73_v47 = vld [vmem:[#allocation4 + $0x28] sm:$0xff] }
  0x37   :  { %452 = vmatpush1.msra.mxu1 %v88_v26  ;;  %v72_v48 = vld [vmem:[#allocation4 + $0x20] sm:$0xff]  ;;  %v71_v49 = vld [vmem:[#allocation4 + $0x18] sm:$0xff]  ;;  %v70_v50 = vld [vmem:[#allocation4 + $0x10] sm:$0xff] }
  0x38   :  { %453 = vmatprep.subr.mxu1 %v87_v28  ;;  %v69_v51 = vld [vmem:[#allocation4 + $0x8] sm:$0xff]  ;;  %v68_v52 = vld [vmem:[#allocation4] sm:$0xff]  ;;  %v131_v53 = vld [vmem:[#allocation4 + $0x1f8] sm:$0xff] }
  0x39   :  { %307 = vmatpush1.bf16.msra.mxu0 %v3294_v10  ;;  %454 = vmatpush1.msra.mxu1 %v86_v29  ;;  %v130_v54 = vld [vmem:[#allocation4 + $0x1f0] sm:$0xff]  ;;  %v129_v55 = vld [vmem:[#allocation4 + $0x1e8] sm:$0xff]  ;;  %v128_v56 = vld [vmem:[#allocation4 + $0x1e0] sm:$0xff] }
  0x3a   :  { %308 = vmatprep.subr.bf16.mxu0 %v3295_v15  ;;  %455 = vmatprep.subr.mxu1 %v85_v30  ;;  %v127_v57 = vld [vmem:[#allocation4 + $0x1d8] sm:$0xff]  ;;  %v126_v58 = vld [vmem:[#allocation4 + $0x1d0] sm:$0xff]  ;;  %v125_v59 = vld [vmem:[#allocation4 + $0x1c8] sm:$0xff] }
  0x3b   :  { %456 = vmatpush1.msra.mxu1 %v84_v36  ;;  %v124_v60 = vld [vmem:[#allocation4 + $0x1c0] sm:$0xff]  ;;  %v123_v61 = vld [vmem:[#allocation4 + $0x1b8] sm:$0xff]  ;;  %v122_v62 = vld [vmem:[#allocation4 + $0x1b0] sm:$0xff] }
  0x3c   :  { %457 = vmatprep.subr.mxu1 %v83_v37  ;;  %v121_v63 = vld [vmem:[#allocation4 + $0x1a8] sm:$0xff]  ;;  %v119_v1 = vld [vmem:[#allocation4 + $0x198] sm:$0xff]  ;;  %v118_v2 = vld [vmem:[#allocation4 + $0x190] sm:$0xff] }
  0x3d   :  { %309 = vmatpush1.bf16.msra.mxu0 %v3297_v17  ;;  %458 = vmatpush1.msra.mxu1 %v82_v38  ;;  %v117_v3 = vld [vmem:[#allocation4 + $0x188] sm:$0xff]  ;;  %v116_v4 = vld [vmem:[#allocation4 + $0x180] sm:$0xff]  ;;  %v115_v5 = vld [vmem:[#allocation4 + $0x178] sm:$0xff] }
  0x3e   :  { %310 = vmatprep.subr.bf16.mxu0 %v3298_v19  ;;  %459 = vmatprep.subr.mxu1 %v81_v39  ;;  %v114_v6 = vld [vmem:[#allocation4 + $0x170] sm:$0xff]  ;;  %v113_v7 = vld [vmem:[#allocation4 + $0x168] sm:$0xff]  ;;  %v112_v8 = vld [vmem:[#allocation4 + $0x160] sm:$0xff] }
  0x3f   :  { %460 = vmatpush1.msra.mxu1 %v80_v40  ;;  %v111_v9 = vld [vmem:[#allocation4 + $0x158] sm:$0xff]  ;;  %v110_v10 = vld [vmem:[#allocation4 + $0x150] sm:$0xff]  ;;  %v109_v11 = vld [vmem:[#allocation4 + $0x148] sm:$0xff] }
  0x40   :  { %461 = vmatprep.subr.mxu1 %v79_v41  ;;  %v108_v12 = vld [vmem:[#allocation4 + $0x140] sm:$0xff]  ;;  %v107_v13 = vld [vmem:[#allocation4 + $0x138] sm:$0xff]  ;;  %v106_v14 = vld [vmem:[#allocation4 + $0x130] sm:$0xff] }
  0x41   :  { %311 = vmatpush1.bf16.msra.mxu0 %v3300_v25  ;;  %462 = vmatpush1.msra.mxu1 %v78_v42  ;;  %v105_v15 = vld [vmem:[#allocation4 + $0x128] sm:$0xff]  ;;  %v104_v16 = vld [vmem:[#allocation4 + $0x120] sm:$0xff]  ;;  %v103_v17 = vld [vmem:[#allocation4 + $0x118] sm:$0xff] }
  0x42   :  { %312 = vmatprep.subr.bf16.mxu0 %v3301_v27  ;;  %463 = vmatprep.subr.mxu1 %v77_v43  ;;  %v102_v18 = vld [vmem:[#allocation4 + $0x110] sm:$0xff]  ;;  %v101_v19 = vld [vmem:[#allocation4 + $0x108] sm:$0xff]  ;;  %v100_v20 = vld [vmem:[#allocation4 + $0x100] sm:$0xff] }
  0x43   :  { %464 = vmatpush1.msra.mxu1 %v76_v44  ;;  %v3308_v21 = vld [vmem:[%s5098_s2 + $0x170] ss:$8 sps:$4 sm:$0xff]   ;;  %v3310_v22 = vld [vmem:[%s5098_s2 + $0x174] ss:$8 sps:$4 sm:$0xff]   ;;  %v3313_v23 = vld [vmem:[%s5098_s2 + $0x164] ss:$8 sps:$4 sm:$0xff]  }
  0x44   :  { %465 = vmatprep.subr.mxu1 %v75_v45  ;;  %v3316_v24 = vld [vmem:[%s5098_s2 + $0x74] ss:$8 sps:$4 sm:$0xff]   ;;  %v3311_v25 = vld [vmem:[%s5098_s2 + $0x160] ss:$8 sps:$4 sm:$0xff]   ;;  %v3317_v27 = vld [vmem:[%s5098_s2 + $0x150] ss:$8 sps:$4 sm:$0xff]  }
  0x45   :  { %313 = vmatpush1.bf16.msra.mxu0 %v3303_v31  ;;  %466 = vmatpush1.msra.mxu1 %v74_v46  ;;  %v3319_v26 = vld [vmem:[%s5098_s2 + $0x154] ss:$8 sps:$4 sm:$0xff]   ;;  %v3325_v28 = vld [vmem:[%s5098_s2 + $0x144] ss:$8 sps:$4 sm:$0xff]   ;;  %v3323_v29 = vld [vmem:[%s5098_s2 + $0x140] ss:$8 sps:$4 sm:$0xff]  }
  0x46   :  { %467 = vmatprep.subr.mxu1 %v73_v47  ;;  %951 = vmatprep.subr.bf16.mxu0 %v3310_v22  ;;  %v3331_v30 = vld [vmem:[%s5098_s2 + $0x134] ss:$8 sps:$4 sm:$0xff]   ;;  %v3329_v31 = vld [vmem:[%s5098_s2 + $0x130] ss:$8 sps:$4 sm:$0xff]  }
  0x47   :  { %468 = vmatpush1.msra.mxu1 %v72_v48 }
  0x48   :  { %331 = vmatmul.mubr.bf16.vlgmr.msra.gmra.mxu0 %v3304_v32  ;;  %469 = vmatprep.subr.mxu1 %v71_v49 }
  0x49   :  { %340 = vmatprep.mubr.bf16.mxu0 %v3843_v0  ;;  %470 = vmatpush1.msra.mxu1 %v70_v50 }
  0x4a   :  { %471 = vmatprep.subr.mxu1 %v69_v51  ;;  %952 = vmatpush1.bf16.msra.mxu0 %v3308_v21 }
  0x4b   :  { %472 = vmatpush1.msra.mxu1 %v68_v52  ;;  %953 = vmatprep.subr.bf16.mxu0 %v3313_v23 }
  0x4c   :  { %473 = vmatprep.subr.mxu1 %v131_v53 }
  0x4d   :  { %474 = vmatpush2.msra.mxu1 %v130_v54 }
  0x4e   :  { %475 = vmatprep.subr.mxu1 %v129_v55  ;;  %954 = vmatpush1.bf16.msra.mxu0 %v3311_v25 }
  0x4f   :  { %476 = vmatpush2.msra.mxu1 %v128_v56  ;;  %955 = vmatprep.subr.bf16.mxu0 %v3319_v26 }
  0x50   :  { %341 = vmatmul.mubr.bf16.gmra.mxu0 %v3305_v33  ;;  %477 = vmatprep.subr.mxu1 %v127_v57 }
  0x51   :  { %350 = vmatprep.mubr.bf16.mxu0 %v3843_v0  ;;  %478 = vmatpush2.msra.mxu1 %v126_v58 }
  0x52   :  { %479 = vmatprep.subr.mxu1 %v125_v59  ;;  %956 = vmatpush1.bf16.msra.mxu0 %v3317_v27 }
  0x53   :  { %480 = vmatpush2.msra.mxu1 %v124_v60  ;;  %957 = vmatprep.subr.bf16.mxu0 %v3325_v28 }
  0x54   :  { %481 = vmatprep.subr.mxu1 %v123_v61 }
  0x55   :  { %482 = vmatpush2.msra.mxu1 %v122_v62 }
  0x56   :  { %483 = vmatprep.subr.mxu1 %v121_v63  ;;  %958 = vmatpush1.bf16.msra.mxu0 %v3323_v29 }
  0x57   :  { %959 = vmatprep.subr.bf16.mxu0 %v3331_v30 }
  0x58   :  { %351 = vmatmul.mubr.bf16.gmra.mxu0 %v3306_v34 }
  0x59   :  { %360 = vmatprep.mubr.bf16.mxu0 %v3843_v0  ;;  %v120_v0 = vld [vmem:[#allocation4 + $0x1a0] sm:$0xff] }
  0x5a   :  { %484 = vmatpush2.msra.mxu1 %v120_v0  ;;  %960 = vmatpush1.bf16.msra.mxu0 %v3329_v31 }
  0x5b   :  { %485 = vmatprep.subr.mxu1 %v119_v1 }
  0x5c   :  { %486 = vmatpush2.msra.mxu1 %v118_v2 }
  0x5d   :  { %487 = vmatprep.subr.mxu1 %v117_v3 }
  0x5e   :  { %488 = vmatpush2.msra.mxu1 %v116_v4 }
  0x5f   :  { %489 = vmatprep.subr.mxu1 %v115_v5 }
  0x60   :  { %361 = vmatmul.mubr.bf16.gmra.mxu0 %v3307_v35  ;;  %490 = vmatpush2.msra.mxu1 %v114_v6 }
  0x61   :  { %491 = vmatprep.subr.mxu1 %v113_v7 }
  0x62   :  { %492 = vmatpush2.msra.mxu1 %v112_v8 }
  0x63   :  { %493 = vmatprep.subr.mxu1 %v111_v9 }
  0x64   :  { %494 = vmatpush2.msra.mxu1 %v110_v10 }
  0x65   :  { %495 = vmatprep.subr.mxu1 %v109_v11 }
  0x66   :  { %496 = vmatpush2.msra.mxu1 %v108_v12 }
  0x67   :  { %497 = vmatprep.subr.mxu1 %v107_v13 }
  0x68   :  { %498 = vmatpush2.msra.mxu1 %v106_v14 }
  0x69   :  { %499 = vmatprep.subr.mxu1 %v105_v15 }
  0x6a   :  { %500 = vmatpush2.msra.mxu1 %v104_v16 }
  0x6b   :  { %501 = vmatprep.subr.mxu1 %v103_v17 }
  0x6c   :  { %502 = vmatpush2.msra.mxu1 %v102_v18 }
  0x6d   :  { %503 = vmatprep.subr.mxu1 %v101_v19 }
  0x6e   :  { %504 = vmatpush2.msra.mxu1 %v100_v20 }
  0x6f   :  { %1184 = vmatprep.subr.bf16.mxu1 %v3316_v24 }
 0x108   :  { %v3990_v32 = vpop.f32.mrf.mxu0 }
 0x109   :  { %v397_v43 = vmul.f32 %v3990_v32, %v3990_v32 }
 0x10a   :  { %v3992_v33 = vpop.f32.mrf.mxu0 }
 0x10b   :  { %v398_v46 = vmul.f32 %v3992_v33, %v3992_v33 }
 0x10c   :  { %v3994_v34 = vpop.f32.mrf.mxu0 }
 0x10d   :  { %v399_v40 = vmul.f32 %v3994_v34, %v3994_v34  ;;  %v371_v44 = vadd.f32 %v3994_v34, %v3990_v32 }
 0x10e   :  { %v3996_v35 = vpop.f32.mrf.mxu0 }
 0x10f   :  { %v400_v41 = vmul.f32 %v3996_v35, %v3996_v35  ;;  %v413_v49 = vadd.f32 %v399_v40, %v397_v43  ;;  %v384_v50 = vadd.f32 %v3996_v35, %v3992_v33 }
 0x110   :  { %v3998_v36 = vpop.f32.mrf.mxu0 }
 0x111   :  { %v401_v45 = vmul.f32 %v3998_v36, %v3998_v36  ;;  %v372_v51 = vadd.f32 %v371_v44, %v3998_v36  ;;  %v426_v53 = vadd.f32 %v400_v41, %v398_v46 }
 0x112   :  { %v4000_v37 = vpop.f32.mrf.mxu0 }
 0x113   :  { %v402_v47 = vmul.f32 %v4000_v37, %v4000_v37  ;;  %v414_v56 = vadd.f32 %v413_v49, %v401_v45  ;;  %v385_v57 = vadd.f32 %v384_v50, %v4000_v37  ;;  %v167_v49 = vlaneseq }
 0x114   :  { %v4002_v38 = vpop.f32.mrf.mxu0 }
 0x115   :  { %v403_v52 = vmul.f32 %v4002_v38, %v4002_v38  ;;  %v373_v58 = vadd.f32 %v372_v51, %v4002_v38  ;;  %v427_v60 = vadd.f32 %v426_v53, %v402_v47 }
 0x116   :  { %v4004_v39 = vpop.f32.mrf.mxu0 }
 0x117   :  { %v404_v54 = vmul.f32 %v4004_v39, %v4004_v39  ;;  %v415_v63 = vadd.f32 %v414_v56, %v403_v52  ;;  %v386_v0 = vadd.f32 %v385_v57, %v4004_v39 }
 0x118   :  { %v4010_v42 = vpop.f32.mrf.mxu0 }
 0x119   :  { %v405_v59 = vmul.f32 %v4010_v42, %v4010_v42  ;;  %v374_v1 = vadd.f32 %v373_v58, %v4010_v42  ;;  %v428_v3 = vadd.f32 %v427_v60, %v404_v54  ;;  %v4070_v54 = vshrl.u32 %v167_v49, 7  ;;  %v3373_v49 = vld [vmem:[%s5098_s2 + $0x1c4] ss:$8 sps:$4 sm:$0xff]  }
 0x11a   :  { %v4022_v48 = vpop.f32.mrf.mxu0 }
 0x11b   :  { %v406_v61 = vmul.f32 %v4022_v48, %v4022_v48  ;;  %v416_v6 = vadd.f32 %v415_v63, %v405_v59  ;;  %v387_v7 = vadd.f32 %v386_v0, %v4022_v48  ;;  %vm169_vm0 = vcmp.eq.s32.totalorder %v4070_v54, 0 }
 0x11c   :  { %v4031_v55 = vpop.f32.mrf.mxu0  ;;  %vm628_vm1 = vcmp.lt.s32.totalorder %v4070_v54, 1  ;;  %vm677_vm2 = vcmp.lt.s32.totalorder %v4070_v54, 7 }
 0x11d   :  { %v407_v2 = vmul.f32 %v4031_v55, %v4031_v55  ;;  %v375_v8 = vadd.f32 %v374_v1, %v4031_v55  ;;  %v429_v10 = vadd.f32 %v428_v3, %v406_v61 }
 0x11e   :  { %v4039_v62 = vpop.f32.mrf.mxu0 }
 0x11f   :  { %v408_v4 = vmul.f32 %v4039_v62, %v4039_v62  ;;  %v417_v12 = vadd.f32 %v416_v6, %v407_v2  ;;  %v388_v13 = vadd.f32 %v387_v7, %v4039_v62  ;;  %v3314_v2 = vld [vmem:[%s5098_s2 + $0x70] ss:$8 sps:$4 sm:$0xff]   ;;  %v3320_v7 = vld [vmem:[%s5098_s2 + $0x60] ss:$8 sps:$4 sm:$0xff]  }
 0x120   :  { %v4047_v5 = vpop.f32.mrf.mxu0 }
 0x121   :  { %v409_v9 = vmul.f32 %v4047_v5, %v4047_v5  ;;  %v376_v14 = vadd.f32 %v375_v8, %v4047_v5  ;;  %v430_v16 = vadd.f32 %v429_v10, %v408_v4  ;;  %v3322_v4 = vld [vmem:[%s5098_s2 + $0x64] ss:$8 sps:$4 sm:$0xff]   ;;  %v3328_v8 = vld [vmem:[%s5098_s2 + $0x54] ss:$8 sps:$4 sm:$0xff]  }
 0x122   :  { %v4053_v11 = vpop.f32.mrf.mxu0  ;;  %v3334_v10 = vld [vmem:[%s5098_s2 + $0x44] ss:$8 sps:$4 sm:$0xff]  }
 0x123   :  { %v410_v15 = vmul.f32 %v4053_v11, %v4053_v11  ;;  %v418_v18 = vadd.f32 %v417_v12, %v409_v9  ;;  %v389_v19 = vadd.f32 %v388_v13, %v4053_v11  ;;  %v3326_v9 = vld [vmem:[%s5098_s2 + $0x50] ss:$8 sps:$4 sm:$0xff]   ;;  %v3332_v12 = vld [vmem:[%s5098_s2 + $0x40] ss:$8 sps:$4 sm:$0xff]   ;;  %v3337_v13 = vld [vmem:[%s5098_s2 + $0x124] ss:$8 sps:$4 sm:$0xff]  }
 0x124   :  { %v4059_v17 = vpop.f32.mrf.mxu0  ;;  %961 = vmatprep.subr.bf16.mxu0 %v3337_v13  ;;  %v3608_v13 = vld [vmem:[#allocation4 + $0xf8] sm:$0xff] }
 0x125   :  { %v377_v20 = vadd.f32 %v376_v14, %v4059_v17  ;;  %v411_v21 = vmul.f32 %v4059_v17, %v4059_v17  ;;  %v431_v22 = vadd.f32 %v430_v16, %v410_v15  ;;  %v3335_v14 = vld [vmem:[%s5098_s2 + $0x120] ss:$8 sps:$4 sm:$0xff]   ;;  %v3340_v15 = vld [vmem:[%s5098_s2 + $0x34] ss:$8 sps:$4 sm:$0xff]   ;;  %v3338_v16 = vld [vmem:[%s5098_s2 + $0x30] ss:$8 sps:$4 sm:$0xff]  }
 0x126   :  { %v4065_v23 = vpop.f32.mrf.mxu0  ;;  %962 = vmatpush1.bf16.msra.mxu0 %v3335_v14 }
 0x127   :  { %v378_v24 = vrot.slane %v377_v20, 4  ;;  %v419_v25 = vadd.f32 %v418_v18, %v411_v21  ;;  %v390_v26 = vadd.f32 %v389_v19, %v4065_v23  ;;  %v412_v27 = vmul.f32 %v4065_v23, %v4065_v23  ;;  %v3343_v18 = vld [vmem:[%s5098_s2 + $0x114] ss:$8 sps:$4 sm:$0xff]   ;;  %v3341_v19 = vld [vmem:[%s5098_s2 + $0x110] ss:$8 sps:$4 sm:$0xff]  }
 0x128   :  { %963 = vmatprep.subr.bf16.mxu0 %v3343_v18  ;;  %v3344_v21 = vld [vmem:[%s5098_s2 + $0x20] ss:$8 sps:$4 sm:$0xff]  }
 0x129   :  { %v379_v28 = vadd.f32 %v378_v24, %v377_v20  ;;  %v420_v29 = vrot.slane %v419_v25, 4  ;;  %v391_v30 = vrot.slane %v390_v26, 4  ;;  %v432_v31 = vadd.f32 %v431_v22, %v412_v27  ;;  %v3346_v20 = vld [vmem:[%s5098_s2 + $0x24] ss:$8 sps:$4 sm:$0xff]   ;;  %v3347_v24 = vld [vmem:[%s5098_s2 + $0x100] ss:$8 sps:$4 sm:$0xff]  }
 0x12a   :  { %964 = vmatpush1.bf16.msra.mxu0 %v3341_v19  ;;  %v3349_v22 = vld [vmem:[%s5098_s2 + $0x104] ss:$8 sps:$4 sm:$0xff]   ;;  %v3355_v27 = vld [vmem:[%s5098_s2 + $0x1f4] ss:$8 sps:$4 sm:$0xff]  }
 0x12b   :  { %v380_v40 = vrot.slane %v379_v28, 2  ;;  %v421_v41 = vadd.f32 %v420_v29, %v419_v25  ;;  %v392_v43 = vadd.f32 %v391_v30, %v390_v26  ;;  %v433_v44 = vrot.slane %v432_v31, 4  ;;  %965 = vmatprep.subr.bf16.mxu0 %v3349_v22  ;;  %v3352_v25 = vld [vmem:[%s5098_s2 + $0x14] ss:$8 sps:$4 sm:$0xff]   ;;  %v3350_v26 = vld [vmem:[%s5098_s2 + $0x10] ss:$8 sps:$4 sm:$0xff]  }
 0x12c   :  { %v3358_v29 = vld [vmem:[%s5098_s2 + $0x4] ss:$8 sps:$4 sm:$0xff]   ;;  %v3356_v30 = vld [vmem:[%s5098_s2] ss:$8 sps:$4 sm:$0xff]  }
 0x12d   :  { %v422_v45 = vrot.slane %v421_v41, 2  ;;  %v393_v46 = vrot.slane %v392_v43, 2  ;;  %v434_v47 = vadd.f32 %v433_v44, %v432_v31  ;;  %v381_v50 = vadd.f32 %v380_v40, %v379_v28  ;;  %v3353_v28 = vld [vmem:[%s5098_s2 + $0x1f0] ss:$8 sps:$4 sm:$0xff]   ;;  %v3361_v31 = vld [vmem:[%s5098_s2 + $0x1e4] ss:$8 sps:$4 sm:$0xff]  }
 0x12e   :  { %966 = vmatpush1.bf16.msra.mxu0 %v3347_v24  ;;  %v3359_v40 = vld [vmem:[%s5098_s2 + $0x1e0] ss:$8 sps:$4 sm:$0xff]   ;;  %v3367_v44 = vld [vmem:[%s5098_s2 + $0x1d4] ss:$8 sps:$4 sm:$0xff]  }
 0x12f   :  { %v394_v51 = vadd.f32 %v393_v46, %v392_v43  ;;  %v435_v52 = vrot.slane %v434_v47, 2  ;;  %v423_v53 = vadd.f32 %v422_v45, %v421_v41  ;;  %v382_v59 = vrot.slane %v381_v50, 1  ;;  %967 = vmatprep.subr.bf16.mxu0 %v3355_v27  ;;  %v3364_v41 = vld [vmem:[%s5098_s2 + $0xf4] ss:$8 sps:$4 sm:$0xff]   ;;  %v3362_v43 = vld [vmem:[%s5098_s2 + $0xf0] ss:$8 sps:$4 sm:$0xff]  }
 0x130   :  { %v3365_v45 = vld [vmem:[%s5098_s2 + $0x1d0] ss:$8 sps:$4 sm:$0xff]   ;;  %v3370_v46 = vld [vmem:[%s5098_s2 + $0xe4] ss:$8 sps:$4 sm:$0xff]  }
 0x131   :  { %v395_v56 = vrot.slane %v394_v51, 1  ;;  %v436_v57 = vadd.f32 %v435_v52, %v434_v47  ;;  %v424_v58 = vrot.slane %v423_v53, 1  ;;  %v383_v1 = vadd.f32 %v382_v59, %v381_v50  ;;  %v3368_v47 = vld [vmem:[%s5098_s2 + $0xe0] ss:$8 sps:$4 sm:$0xff]   ;;  %v3374_v52 = vld [vmem:[%s5098_s2 + $0xd0] ss:$8 sps:$4 sm:$0xff]  }
 0x132   :  { %968 = vmatpush2.bf16.msra.mxu0 %v3353_v28  ;;  %v3371_v50 = vld [vmem:[%s5098_s2 + $0x1c0] ss:$8 sps:$4 sm:$0xff]   ;;  %v3385_v59 = vld [vmem:[%s5098_s2 + $0x1a4] ss:$8 sps:$4 sm:$0xff]  }
 0x133   :  { %v437_v60 = vrot.slane %v436_v57, 1  ;;  %v425_v61 = vadd.f32 %v424_v58, %v423_v53  ;;  %v396_v63 = vadd.f32 %v395_v56, %v394_v51  ;;  %969 = vmatprep.subr.bf16.mxu0 %v3361_v31  ;;  %v3376_v51 = vld [vmem:[%s5098_s2 + $0xd4] ss:$8 sps:$4 sm:$0xff]   ;;  %v3377_v56 = vld [vmem:[%s5098_s2 + $0x1b0] ss:$8 sps:$4 sm:$0xff]  }
 0x134   :  { %v3379_v53 = vld [vmem:[%s5098_s2 + $0x1b4] ss:$8 sps:$4 sm:$0xff]   ;;  %v3380_v58 = vld [vmem:[%s5098_s2 + $0xc0] ss:$8 sps:$4 sm:$0xff]  }
 0x135   :  { %v438_v0 = vadd.f32 %v437_v60, %v436_v57  ;;  %v439_v6 = vsel %vm169_vm0, %v383_v1, %v425_v61  ;;  %v3382_v57 = vld [vmem:[%s5098_s2 + $0xc4] ss:$8 sps:$4 sm:$0xff]   ;;  %v3383_v60 = vld [vmem:[%s5098_s2 + $0x1a0] ss:$8 sps:$4 sm:$0xff]   ;;  %v3388_v61 = vld [vmem:[%s5098_s2 + $0xb4] ss:$8 sps:$4 sm:$0xff]  }
 0x136   :  { %970 = vmatpush2.bf16.msra.mxu0 %v3359_v40  ;;  %v3389_v1 = vld [vmem:[%s5098_s2 + $0x190] ss:$8 sps:$4 sm:$0xff]   ;;  %v132_v31 = vld [vmem:[%s5102_s6] sm:$0x3f] }
 0x137   :  { %v440_v3 = vsel %vm169_vm0, %v396_v63, %v438_v0  ;;  %971 = vmatprep.subr.bf16.mxu0 %v3367_v44  ;;  %v3386_v63 = vld [vmem:[%s5098_s2 + $0xb0] ss:$8 sps:$4 sm:$0xff]   ;;  %v3391_v0 = vld [vmem:[%s5098_s2 + $0x194] ss:$8 sps:$4 sm:$0xff]   ;;  %v133_v44 = vld [vmem:[%s5102_s6 + $0x8] sm:$0x3f] }
 0x138   :  { %505 = vmatprep.mubr.f32.mxu1 %v440_v3  ;;  %v3394_v3 = vld [vmem:[%s5098_s2 + $0xa4] ss:$8 sps:$4 sm:$0xff]  }
 0x139   :  { %506 = vmatmul.mubr.f32.vlgmr.msra.gmra.mxu1 %v439_v6  ;;  %v3397_v6 = vld [vmem:[%s5098_s2 + $0x184] ss:$8 sps:$4 sm:$0xff]  }
 0x13a   :  { %1185 = vmatpush1.bf16.msra.mxu1 %v3314_v2  ;;  %972 = vmatpush2.bf16.msra.mxu0 %v3365_v45  ;;  %v3392_v2 = vld [vmem:[%s5098_s2 + $0xa0] ss:$8 sps:$4 sm:$0xff]  }
 0x13b   :  { %1186 = vmatprep.subr.bf16.mxu1 %v3322_v4  ;;  %973 = vmatprep.subr.bf16.mxu0 %v3373_v49  ;;  %v3395_v4 = vld [vmem:[%s5098_s2 + $0x180] ss:$8 sps:$4 sm:$0xff]  }
 0x13e   :  { %1187 = vmatpush1.bf16.msra.mxu1 %v3320_v7  ;;  %974 = vmatpush2.bf16.msra.mxu0 %v3371_v50  ;;  %v3400_v7 = vld [vmem:[%s5098_s2 + $0x94] ss:$8 sps:$4 sm:$0xff]  }
 0x13f   :  { %1188 = vmatprep.subr.bf16.mxu1 %v3328_v8  ;;  %975 = vmatprep.subr.bf16.mxu0 %v3379_v53  ;;  %v3398_v8 = vld [vmem:[%s5098_s2 + $0x90] ss:$8 sps:$4 sm:$0xff]  }
 0x142   :  { %1189 = vmatpush1.bf16.msra.mxu1 %v3326_v9  ;;  %976 = vmatpush2.bf16.msra.mxu0 %v3377_v56  ;;  %v3403_v9 = vld [vmem:[%s5098_s2 + $0x274] ss:$8 sps:$4 sm:$0xff]  }
 0x143   :  { %1190 = vmatprep.subr.bf16.mxu1 %v3334_v10  ;;  %977 = vmatprep.subr.bf16.mxu0 %v3385_v59  ;;  %v3406_v10 = vld [vmem:[%s5098_s2 + $0x84] ss:$8 sps:$4 sm:$0xff]  }
 0x146   :  { %1191 = vmatpush1.bf16.msra.mxu1 %v3332_v12  ;;  %978 = vmatpush2.bf16.msra.mxu0 %v3383_v60  ;;  %v3404_v12 = vld [vmem:[%s5098_s2 + $0x80] ss:$8 sps:$4 sm:$0xff]  }
 0x147   :  { %1192 = vmatprep.subr.bf16.mxu1 %v3340_v15  ;;  %979 = vmatprep.subr.bf16.mxu0 %v3391_v0 }
 0x14a   :  { %1193 = vmatpush1.bf16.msra.mxu1 %v3338_v16  ;;  %980 = vmatpush2.bf16.msra.mxu0 %v3389_v1 }
 0x14b   :  { %1194 = vmatprep.subr.bf16.mxu1 %v3346_v20  ;;  %981 = vmatprep.subr.bf16.mxu0 %v3397_v6 }
 0x14e   :  { %1195 = vmatpush1.bf16.msra.mxu1 %v3344_v21  ;;  %982 = vmatpush2.bf16.msra.mxu0 %v3395_v4 }
 0x14f   :  { %1196 = vmatprep.subr.bf16.mxu1 %v3352_v25  ;;  %1458 = vmatprep.subr.bf16.mxu0 %v3403_v9 }
 0x152   :  { %1197 = vmatpush1.bf16.msra.mxu1 %v3350_v26 }
 0x153   :  { %1198 = vmatprep.subr.bf16.mxu1 %v3358_v29 }
 0x156   :  { %1199 = vmatpush1.bf16.msra.mxu1 %v3356_v30 }
 0x157   :  { %1200 = vmatprep.subr.bf16.mxu1 %v3364_v41  ;;  %v550_v41 = vsub.s32 0, %v4070_v54 }
 0x15a   :  { %1201 = vmatpush2.bf16.msra.mxu1 %v3362_v43 }
 0x15b   :  { %1202 = vmatprep.subr.bf16.mxu1 %v3370_v46 }
 0x15e   :  { %1203 = vmatpush2.bf16.msra.mxu1 %v3368_v47 }
 0x15f   :  { %1204 = vmatprep.subr.bf16.mxu1 %v3376_v51 }
 0x162   :  { %1205 = vmatpush2.bf16.msra.mxu1 %v3374_v52  ;;  %v574_v52 = vsub.s32 1, %v4070_v54 }
 0x163   :  { %1206 = vmatprep.subr.bf16.mxu1 %v3382_v57 }
 0x166   :  { %1207 = vmatpush2.bf16.msra.mxu1 %v3380_v58 }
 0x167   :  { %1208 = vmatprep.subr.bf16.mxu1 %v3388_v61 }
 0x16a   :  { %1209 = vmatpush2.bf16.msra.mxu1 %v3386_v63 }
 0x16b   :  { %1210 = vmatprep.subr.bf16.mxu1 %v3394_v3 }
 0x16e   :  { %1211 = vmatpush2.bf16.msra.mxu1 %v3392_v2 }
 0x16f   :  { %1212 = vmatprep.subr.bf16.mxu1 %v3400_v7 }
 0x172   :  { %1213 = vmatpush2.bf16.msra.mxu1 %v3398_v8 }
 0x173   :  { %1214 = vmatprep.subr.bf16.mxu1 %v3406_v10 }
 0x176   :  { %1215 = vmatpush2.bf16.msra.mxu1 %v3404_v12 }
 0x177   :  { %1617 = vmatprep.subr.mxu1 %v3608_v13 }
 0x1f9   :  { %v507_v14 = vpop.f32.mrf.mxu1 }
 0x1fa   :  { %v512_v15 = vmul.f32 0.00048828125, %v507_v14 }
 0x1fb   :  { %v509_v16 = vpop.f32.mrf.mxu1 }
 0x1fc   :  { %v514_v18 = vmul.f32 %v512_v15, %v512_v15  ;;  %v513_v19 = vmul.f32 0.00048828125, %v509_v16 }
 0x1fe   :  { %v518_v20 = vrot.slane %v514_v18, 7  ;;  %v515_v21 = vmul.f32 %v513_v19, %v513_v19 }
 0x200   :  { %v522_v22 = vsub.f32 %v512_v15, %v518_v20  ;;  %v519_v24 = vrot.slane %v515_v21, 7 }
 0x202   :  { %v524_v25 = vmax.f32 %v522_v22, 0.0  ;;  %v523_v26 = vsub.f32 %v513_v19, %v519_v24 }
 0x204   :  { %v526_v27 = vadd.f32 1e-05, %v524_v25  ;;  %v525_v28 = vmax.f32 %v523_v26, 0.0  ;;  %v136_v26 = vld [vmem:[#allocation6 + $0x10] sm:$0xff] }
 0x206   :  { %3596 = vrsqrt.f32 %v526_v27  ;;  %v527_v29 = vadd.f32 1e-05, %v525_v28 }
 0x208   :  { %3598 = vrsqrt.f32 %v527_v29  ;;  %v137_v29 = vld [vmem:[#allocation6 + $0x18] sm:$0xff] }
 0x213   :  { %v3597_v30 = vpop.eup %3596 }
 0x214   :  { %v532_v40 = vrot.slane %v3597_v30, 1 }
 0x215   :  { %v3599_v43 = vpop.eup %3598 }
 0x216   :  { %v536_v45 = vmul.f32 %v532_v40, %v132_v31  ;;  %v533_v46 = vrot.slane %v3599_v43, 1  ;;  %v134_v40 = vld [vmem:[#allocation6] sm:$0xff] }
 0x218   :  { %v538_v47 = vmul.f32 %v536_v45, %v512_v15  ;;  %v4246_v49 = vrot.slane %v536_v45, %v550_v41  ;;  %v537_v50 = vmul.f32 %v533_v46, %v133_v44  ;;  %v135_v45 = vld [vmem:[#allocation6 + $0x8] sm:$0xff] }
 0x21a   :  { %v542_v51 = vrot.slane %v538_v47, 7  ;;  %v539_v53 = vmul.f32 %v537_v50, %v513_v19  ;;  %v4249_v56 = vrot.slane %v537_v50, %v550_v41  ;;  %v556_v57 = vmul.f32 %v4246_v49, %v3990_v32  ;;  %v3401_v19 = vld [vmem:[%s5098_s2 + $0x270] ss:$8 sps:$4 sm:$0xff]   ;;  %v139_v50 = vld [vmem:[#allocation6 + $0x28] sm:$0xff] }
 0x21b   :  { %v558_v58 = vmul.f32 %v4246_v49, %v3994_v34  ;;  %v570_v61 = vmul.f32 %v4246_v49, %v4059_v17  ;;  %v560_v63 = vmul.f32 %v4246_v49, %v3998_v36  ;;  %v562_v34 = vmul.f32 %v4246_v49, %v4002_v38 }
 0x21c   :  { %v546_v59 = vsub.f32 %v132_v31, %v542_v51  ;;  %v543_v60 = vrot.slane %v539_v53, 7  ;;  %v557_v0 = vmul.f32 %v4249_v56, %v3992_v33  ;;  %v559_v1 = vmul.f32 %v4249_v56, %v3996_v35 }
 0x21d   :  { %v561_v32 = vmul.f32 %v4249_v56, %v4000_v37  ;;  %v563_v17 = vmul.f32 %v4249_v56, %v4004_v39  ;;  %v571_v36 = vmul.f32 %v4249_v56, %v4065_v23  ;;  %v4276_v33 = vmul.f32 %v4249_v56, %v4022_v48 }
 0x21e   :  { %v4268_v2 = vrot.slane %v546_v59, %v574_v52  ;;  %v547_v3 = vsub.f32 %v133_v44, %v543_v60  ;;  %v4280_v35 = vmul.f32 %v4249_v56, %v4039_v62  ;;  %v564_v37 = vmul.f32 %v4246_v49, %v4010_v42  ;;  %v3409_v44 = vld [vmem:[%s5098_s2 + $0x264] ss:$8 sps:$4 sm:$0xff]  }
 0x21f   :  { %v566_v38 = vmul.f32 %v4246_v49, %v4031_v55 }
 0x220   :  { %v4286_v4 = vrot.slane %v547_v3, %v574_v52  ;;  %v580_v39 = vadd.f32 %v4268_v2, %v556_v57  ;;  %v582_v23 = vadd.f32 %v4268_v2, %v558_v58  ;;  %v594_v6 = vadd.f32 %v4268_v2, %v570_v61  ;;  %v141_v58 = vld [vmem:[#allocation6 + $0x38] sm:$0xff] }
 0x221   :  { %v584_v48 = vadd.f32 %v4268_v2, %v560_v63  ;;  %v586_v7 = vadd.f32 %v4268_v2, %v562_v34  ;;  %v4294_v62 = vadd.f32 %v4268_v2, %v564_v37  ;;  %v4297_v42 = vadd.f32 %v4268_v2, %v566_v38  ;;  %v3412_v37 = vld [vmem:[%s5098_s2 + $0x254] ss:$8 sps:$4 sm:$0xff]  }
 0x222   :  { %v581_v55 = vadd.f32 %v4286_v4, %v557_v0  ;;  %v583_v8 = vadd.f32 %v4286_v4, %v559_v1  ;;  %v4301_v9 = vmax.f32 %v580_v39, 0.0  ;;  %v4303_v10 = vmax.f32 %v582_v23, 0.0  ;;  %v3407_v1 = vld [vmem:[%s5098_s2 + $0x260] ss:$8 sps:$4 sm:$0xff]  }
 0x223   :  { %v585_v12 = vadd.f32 %v4286_v4, %v561_v32  ;;  %v587_v13 = vadd.f32 %v4286_v4, %v563_v17  ;;  %v595_v14 = vadd.f32 %v4286_v4, %v571_v36  ;;  %v4308_v15 = vmax.f32 %v594_v6, 0.0 }
 0x224   :  { %v4310_v16 = vmax.f32 %v581_v55, 0.0  ;;  %v4312_v18 = vmax.f32 %v583_v8, 0.0  ;;  %v750_v20 = vpack.c.bf16 %v4303_v10, %v4301_v9  ;;  %v612_v21 = vrot.slane %v4301_v9, 7 }
 0x225   :  { %v4320_v22 = vmax.f32 %v585_v12, 0.0  ;;  %v4322_v24 = vmax.f32 %v587_v13, 0.0  ;;  %v4324_v25 = vmax.f32 %v595_v14, 0.0  ;;  %v614_v27 = vrot.slane %v4303_v10, 7  ;;  %v3410_v13 = vld [vmem:[%s5098_s2 + $0x250] ss:$8 sps:$4 sm:$0xff]  }
 0x226   :  { %v751_v28 = vpack.c.bf16 %v4312_v18, %v4310_v16  ;;  %v613_v30 = vrot.slane %v4310_v16, 7  ;;  %v615_v31 = vrot.slane %v4312_v18, 7  ;;  %v626_v41 = vrot.slane %v4308_v15, 7 }
 0x227   :  { %v753_v43 = vpack.c.bf16 %v4322_v24, %v4320_v22  ;;  %v627_v46 = vrot.slane %v4324_v25, 7  ;;  %v641_v47 = vsel %vm628_vm1, %v612_v21, %v614_v27  ;;  %v617_v51 = vrot.slane %v4320_v22, 7 }
 0x228   :  { %983 = vmatprep.mubr.bf16.mxu0 %v751_v28  ;;  %v642_v52 = vsel %vm628_vm1, %v613_v30, %v615_v31  ;;  %v643_v53 = vsel %vm628_vm1, %v626_v41, %v612_v21  ;;  %v647_v57 = vmul.f32 %v641_v47, %v136_v26  ;;  %v619_v59 = vrot.slane %v4322_v24, 7  ;;  %v3415_v26 = vld [vmem:[%s5098_s2 + $0x244] ss:$8 sps:$4 sm:$0xff]  }
 0x229   :  { %984 = vmatmul.mubr.bf16.vlgmr.msra.gmra.mxu0 %v750_v20  ;;  %v644_v60 = vsel %vm628_vm1, %v627_v46, %v613_v30  ;;  %v648_v61 = vmul.f32 %v642_v52, %v137_v29  ;;  %v645_v63 = vmul.f32 %v643_v53, %v134_v40  ;;  %v640_v0 = vsel %vm628_vm1, %v615_v31, %v617_v51  ;;  %v143_v29 = vld [vmem:[#allocation6 + $0x48] sm:$0xff]  ;;  %v145_v30 = vld [vmem:[#allocation6 + $0x58] sm:$0xff] }
 0x22a   :  { %1459 = vmatpush1.bf16.msra.mxu0 %v3401_v19  ;;  %993 = vmatprep.mubr.bf16.mxu0 %v753_v43  ;;  %v646_v32 = vmul.f32 %v644_v60, %v135_v45  ;;  %v638_v34 = vsel %vm628_vm1, %v617_v51, %v619_v59  ;;  %v650_v3 = vmul.f32 %v640_v0, %v139_v50  ;;  %v4359_v17 = vmax.f32 %v584_v48, 0.0  ;;  %v140_v19 = vld [vmem:[#allocation6 + $0x30] sm:$0xff]  ;;  %v3413_v51 = vld [vmem:[%s5098_s2 + $0x240] ss:$8 sps:$4 sm:$0xff]  }
 0x22b   :  { %1460 = vmatprep.subr.bf16.mxu0 %v3409_v44  ;;  %v652_v36 = vmul.f32 %v638_v34, %v141_v58  ;;  %v4364_v38 = vmax.f32 %v586_v7, 0.0  ;;  %v589_v39 = vadd.f32 %v4286_v4, %v4276_v33  ;;  %v591_v6 = vadd.f32 %v4286_v4, %v4280_v35  ;;  %v138_v35 = vld [vmem:[#allocation6 + $0x20] sm:$0xff]  ;;  %v3609_v43 = vld [vmem:[#allocation4 + $0xf0] sm:$0xff]  ;;  %v3612_v34 = vld [vmem:[#allocation4 + $0xd8] sm:$0xff] }
 0x22c   :  { %v711_v23 = vpack.c.bf16 %v648_v61, %v646_v32  ;;  %v616_v55 = vrot.slane %v4359_v17, 7  ;;  %v569_v48 = vmul.f32 %v4249_v56, %v4053_v11  ;;  %v710_v8 = vpack.c.bf16 %v647_v57, %v645_v63  ;;  %v3418_v58 = vld [vmem:[%s5098_s2 + $0x234] ss:$8 sps:$4 sm:$0xff]   ;;  %v3611_v61 = vld [vmem:[#allocation4 + $0xe0] sm:$0xff] }
 0x22d   :  { %v713_v12 = vpack.c.bf16 %v652_v36, %v650_v3  ;;  %v4376_v7 = vmax.f32 %v589_v39, 0.0  ;;  %v618_v14 = vrot.slane %v4364_v38, 7  ;;  %v4379_v33 = vmax.f32 %v591_v6, 0.0  ;;  %v3416_v36 = vld [vmem:[%s5098_s2 + $0x230] ss:$8 sps:$4 sm:$0xff]  }
 0x22e   :  { %1216 = vmatprep.mubr.bf16.mxu1 %v711_v23  ;;  %1461 = vmatpush1.bf16.msra.mxu0 %v3407_v1  ;;  %v639_v20 = vsel %vm628_vm1, %v614_v27, %v616_v55  ;;  %v4384_v11 = vmax.f32 %v4294_v62, 0.0  ;;  %v4387_v56 = vmax.f32 %v4297_v42, 0.0  ;;  %v752_v21 = vpack.c.bf16 %v4364_v38, %v4359_v17  ;;  %v144_v39 = vld [vmem:[#allocation6 + $0x50] sm:$0xff] }
 0x22f   :  { %1217 = vmatmul.mubr.bf16.vlgmr.msra.gmra.mxu1 %v710_v8  ;;  %1462 = vmatprep.subr.bf16.mxu0 %v3412_v37  ;;  %v637_v28 = vsel %vm628_vm1, %v616_v55, %v618_v14  ;;  %v621_v27 = vrot.slane %v4376_v7, 7  ;;  %v593_v62 = vadd.f32 %v4286_v4, %v569_v48  ;;  %v755_v42 = vpack.c.bf16 %v4379_v33, %v4376_v7  ;;  %v3610_v4 = vld [vmem:[#allocation4 + $0xe8] sm:$0xff]  ;;  %v142_v37 = vld [vmem:[#allocation6 + $0x40] sm:$0xff]  ;;  %v3613_v6 = vld [vmem:[#allocation4 + $0xd0] sm:$0xff] }
 0x230   :  { %1226 = vmatprep.mubr.bf16.mxu1 %v713_v12  ;;  %v623_v31 = vrot.slane %v4379_v33, 7  ;;  %v568_v40 = vmul.f32 %v4246_v49, %v4047_v5  ;;  %1618 = vmatpush1.msra.mxu1 %v3609_v43  ;;  %v649_v44 = vmul.f32 %v639_v20, %v138_v35  ;;  %v651_v45 = vmul.f32 %v637_v28, %v140_v19  ;;  %v3421_v48 = vld [vmem:[%s5098_s2 + $0x224] ss:$8 sps:$4 sm:$0xff]   ;;  %v149_v12 = vld [vmem:[#allocation6 + $0x78] sm:$0xff] }
 0x231   :  { %994 = vmatmul.mubr.bf16.gmra.mxu0 %v752_v21  ;;  %v636_v47 = vsel %vm628_vm1, %v619_v59, %v621_v27  ;;  %v4405_v50 = vmax.f32 %v593_v62, 0.0  ;;  %1619 = vmatprep.subr.mxu1 %v3610_v4  ;;  %v620_v52 = vrot.slane %v4384_v11, 7  ;;  %v622_v53 = vrot.slane %v4387_v56, 7  ;;  %v147_v8 = vld [vmem:[#allocation6 + $0x68] sm:$0xff]  ;;  %v154_v28 = vld [vmem:[#allocation6 + $0x98] sm:$0xff] }
 0x232   :  { %1463 = vmatpush1.bf16.msra.mxu0 %v3410_v13  ;;  %1003 = vmatprep.mubr.bf16.mxu0 %v755_v42  ;;  %v634_v5 = vsel %vm628_vm1, %v621_v27, %v623_v31  ;;  %v654_v49 = vmul.f32 %v636_v47, %v143_v29  ;;  %v592_v60 = vadd.f32 %v4268_v2, %v568_v40  ;;  %v662_v0 = vrot.slane %v4310_v16, 1  ;;  %v3614_v19 = vld [vmem:[#allocation4 + $0xc8] sm:$0xff]  ;;  %v3616_v47 = vld [vmem:[#allocation4 + $0xb8] sm:$0xff] }
 0x233   :  { %1464 = vmatprep.subr.bf16.mxu0 %v3415_v26  ;;  %v656_v57 = vmul.f32 %v634_v5, %v145_v30  ;;  %v625_v59 = vrot.slane %v4405_v50, 7  ;;  %1620 = vmatpush1.msra.mxu1 %v3611_v61  ;;  %v712_v63 = vpack.c.bf16 %v651_v45, %v649_v44  ;;  %v664_v1 = vrot.slane %v4312_v18, 1  ;;  %v152_v26 = vld [vmem:[#allocation6 + $0x88] sm:$0xff]  ;;  %v3615_v44 = vld [vmem:[#allocation4 + $0xc0] sm:$0xff]  ;;  %v3668_v16 = vld [vmem:[#allocation4 + $0x118] sm:$0xff] }
 0x234   :  { %v666_v32 = vrot.slane %v4320_v22, 1  ;;  %1621 = vmatprep.subr.mxu1 %v3612_v34  ;;  %v633_v2 = vsel %vm628_vm1, %v620_v52, %v622_v53  ;;  %v635_v18 = vsel %vm628_vm1, %v618_v14, %v620_v52  ;;  %v4431_v23 = vmax.f32 %v592_v60, 0.0  ;;  %v3419_v27 = vld [vmem:[%s5098_s2 + $0x220] ss:$8 sps:$4 sm:$0xff]   ;;  %v3427_v60 = vld [vmem:[%s5098_s2 + $0x204] ss:$8 sps:$4 sm:$0xff]  }
 0x235   :  { %v715_v3 = vpack.c.bf16 %v656_v57, %v654_v49  ;;  %1622 = vmatpush1.msra.mxu1 %v3613_v6  ;;  %v754_v55 = vpack.c.bf16 %v4387_v56, %v4384_v11  ;;  %v630_v13 = vsel %vm628_vm1, %v625_v59, %v627_v46  ;;  %v632_v14 = vsel %vm628_vm1, %v623_v31, %v625_v59  ;;  %v3424_v31 = vld [vmem:[%s5098_s2 + $0x214] ss:$8 sps:$4 sm:$0xff]   ;;  %v146_v5 = vld [vmem:[#allocation6 + $0x60] sm:$0xff]  ;;  %v3622_v6 = vld [vmem:[#allocation4 + $0x88] sm:$0xff] }
 0x236   :  { %1465 = vmatpush1.bf16.msra.mxu0 %v3413_v51  ;;  %v757_v35 = vpack.c.bf16 %v4324_v25, %v4405_v50  ;;  %1623 = vmatprep.subr.mxu1 %v3614_v19  ;;  %v653_v20 = vmul.f32 %v635_v18, %v142_v37  ;;  %v655_v21 = vmul.f32 %v633_v2, %v144_v39  ;;  %v624_v30 = vrot.slane %v4431_v23, 7  ;;  %v3422_v51 = vld [vmem:[%s5098_s2 + $0x210] ss:$8 sps:$4 sm:$0xff]   ;;  %v3430_v34 = vld [vmem:[%s5098_s2 + $0x2f4] ss:$8 sps:$4 sm:$0xff]  }
 0x237   :  { %1227 = vmatmul.mubr.bf16.gmra.mxu1 %v712_v63  ;;  %1466 = vmatprep.subr.bf16.mxu0 %v3418_v58  ;;  %v689_v46 = vsel %vm677_vm2, %v664_v1, %v666_v32  ;;  %v691_v29 = vsel %vm677_vm2, %v662_v0, %v664_v1  ;;  %v658_v62 = vmul.f32 %v632_v14, %v147_v8  ;;  %v148_v49 = vld [vmem:[#allocation6 + $0x70] sm:$0xff]  ;;  %v3618_v63 = vld [vmem:[#allocation4 + $0xa8] sm:$0xff]  ;;  %v3620_v37 = vld [vmem:[#allocation4 + $0x98] sm:$0xff]  ;;  %v667_v22 = vrot.slane %v4364_v38, 1 }
 0x238   :  { %1236 = vmatprep.mubr.bf16.mxu1 %v715_v3  ;;  %v660_v42 = vmul.f32 %v630_v13, %v149_v12  ;;  %v695_v40 = vmul.f32 %v691_v29, %v152_v26  ;;  %v697_v43 = vmul.f32 %v689_v46, %v154_v28  ;;  %1624 = vmatpush1.msra.mxu1 %v3615_v44  ;;  %v3617_v58 = vld [vmem:[#allocation4 + $0xb0] sm:$0xff]  ;;  %v3619_v3 = vld [vmem:[#allocation4 + $0xa0] sm:$0xff]  ;;  %v3624_v8 = vld [vmem:[#allocation4 + $0x78] sm:$0xff] }
 0x239   :  { %1004 = vmatmul.mubr.bf16.gmra.mxu0 %v754_v55  ;;  %v714_v45 = vpack.c.bf16 %v655_v21, %v653_v20  ;;  %1625 = vmatprep.subr.mxu1 %v3616_v47  ;;  %v629_v52 = vsel %vm628_vm1, %v624_v30, %v626_v41  ;;  %v631_v57 = vsel %vm628_vm1, %v622_v53, %v624_v30  ;;  %v3425_v53 = vld [vmem:[%s5098_s2 + $0x200] ss:$8 sps:$4 sm:$0xff]   ;;  %v3428_v39 = vld [vmem:[%s5098_s2 + $0x2f0] ss:$8 sps:$4 sm:$0xff]   ;;  %v3433_v18 = vld [vmem:[%s5098_s2 + $0x2e4] ss:$8 sps:$4 sm:$0xff]  }
 0x23a   :  { %1467 = vmatpush1.bf16.msra.mxu0 %v3416_v36  ;;  %1013 = vmatprep.mubr.bf16.mxu0 %v757_v35  ;;  %v717_v4 = vpack.c.bf16 %v660_v42, %v658_v62  ;;  %v756_v59 = vpack.c.bf16 %v4308_v15, %v4431_v23  ;;  %v1258_v61 = vpack.c.bf16 %v697_v43, %v695_v40  ;;  %v3621_v2 = vld [vmem:[#allocation4 + $0x90] sm:$0xff]  ;;  %v3623_v55 = vld [vmem:[#allocation4 + $0x80] sm:$0xff]  ;;  %v3626_v14 = vld [vmem:[#allocation4 + $0x68] sm:$0xff] }
 0x23b   :  { %1468 = vmatprep.subr.bf16.mxu0 %v3421_v48  ;;  %1626 = vmatpush1.msra.mxu1 %v3617_v58  ;;  %v657_v41 = vmul.f32 %v631_v57, %v146_v5  ;;  %v659_v1 = vmul.f32 %v629_v52, %v148_v49  ;;  %v3431_v48 = vld [vmem:[%s5098_s2 + $0x2e0] ss:$8 sps:$4 sm:$0xff]   ;;  %v3436_v12 = vld [vmem:[%s5098_s2 + $0x2d4] ss:$8 sps:$4 sm:$0xff]   ;;  %v3434_v19 = vld [vmem:[%s5098_s2 + $0x2d0] ss:$8 sps:$4 sm:$0xff]  }
 0x23c   :  { %1627 = vmatprep.subr.mxu1 %v3618_v63  ;;  %v3625_v13 = vld [vmem:[#allocation4 + $0x70] sm:$0xff]  ;;  %v3627_v35 = vld [vmem:[#allocation4 + $0x60] sm:$0xff]  ;;  %v3628_v20 = vld [vmem:[#allocation4 + $0x58] sm:$0xff]  ;;  %v665_v57 = vrot.slane %v4359_v17, 1  ;;  %v661_v58 = vrot.slane %v4301_v9, 1  ;;  %v670_v63 = vrot.slane %v4376_v7, 1 }
 0x23d   :  { %1628 = vmatpush1.msra.mxu1 %v3619_v3  ;;  %v716_v36 = vpack.c.bf16 %v659_v1, %v657_v41  ;;  %v3439_v21 = vld [vmem:[%s5098_s2 + $0x2c4] ss:$8 sps:$4 sm:$0xff]   ;;  %v3629_v26 = vld [vmem:[#allocation4 + $0x50] sm:$0xff]  ;;  %v3437_v29 = vld [vmem:[%s5098_s2 + $0x2c0] ss:$8 sps:$4 sm:$0xff]  }
 0x23e   :  { %1469 = vmatpush1.bf16.msra.mxu0 %v3419_v27  ;;  %1629 = vmatprep.subr.mxu1 %v3620_v37  ;;  %v3630_v28 = vld [vmem:[#allocation4 + $0x48] sm:$0xff]  ;;  %v3631_v46 = vld [vmem:[#allocation4 + $0x40] sm:$0xff]  ;;  %v3632_v27 = vld [vmem:[#allocation4 + $0x38] sm:$0xff] }
 0x23f   :  { %1237 = vmatmul.mubr.bf16.gmra.mxu1 %v714_v45  ;;  %1470 = vmatprep.subr.bf16.mxu0 %v3424_v31  ;;  %v3442_v62 = vld [vmem:[%s5098_s2 + $0x2b4] ss:$8 sps:$4 sm:$0xff]   ;;  %v3634_v30 = vld [vmem:[#allocation4 + $0x28] sm:$0xff]  ;;  %v3635_v31 = vld [vmem:[#allocation4 + $0x20] sm:$0xff] }
 0x240   :  { %1246 = vmatprep.mubr.bf16.mxu1 %v717_v4  ;;  %1630 = vmatpush1.msra.mxu1 %v3621_v2  ;;  %v3633_v42 = vld [vmem:[#allocation4 + $0x30] sm:$0xff]  ;;  %v3636_v43 = vld [vmem:[#allocation4 + $0x18] sm:$0xff]  ;;  %v3445_v44 = vld [vmem:[%s5098_s2 + $0x2a4] ss:$8 sps:$4 sm:$0xff]  }
 0x241   :  { %1014 = vmatmul.mubr.bf16.gmra.mxu0 %v756_v59  ;;  %1631 = vmatprep.subr.mxu1 %v3622_v6  ;;  %v3440_v40 = vld [vmem:[%s5098_s2 + $0x2b0] ss:$8 sps:$4 sm:$0xff]   ;;  %v3638_v47 = vld [vmem:[#allocation4 + $0x8] sm:$0xff]  ;;  %v3639_v4 = vld [vmem:[#allocation4] sm:$0xff]  ;;  %v663_v59 = vrot.slane %v4303_v10, 1 }
 0x242   :  { %1471 = vmatpush1.bf16.msra.mxu0 %v3422_v51  ;;  %1490 = vmatprep.mubr.bf16.mxu0 %v1258_v61  ;;  %v3637_v45 = vld [vmem:[#allocation4 + $0x10] sm:$0xff]  ;;  %v3443_v51 = vld [vmem:[%s5098_s2 + $0x2a0] ss:$8 sps:$4 sm:$0xff]   ;;  %v3640_v5 = vld [vmem:[#allocation4 + $0x1f8] sm:$0xff]  ;;  %v668_v61 = vrot.slane %v4322_v24, 1 }
 0x243   :  { %1472 = vmatprep.subr.bf16.mxu0 %v3427_v60  ;;  %1632 = vmatpush1.msra.mxu1 %v3623_v55  ;;  %v3448_v49 = vld [vmem:[%s5098_s2 + $0x294] ss:$8 sps:$4 sm:$0xff]   ;;  %v3642_v60 = vld [vmem:[#allocation4 + $0x1e8] sm:$0xff]  ;;  %v3643_v41 = vld [vmem:[#allocation4 + $0x1e0] sm:$0xff]  ;;  %v688_v7 = vsel %vm677_vm2, %v663_v59, %v665_v57  ;;  %v690_v3 = vsel %vm677_vm2, %v661_v58, %v663_v59  ;;  %v676_v59 = vrot.slane %v4324_v25, 1 }
 0x244   :  { %1633 = vmatprep.subr.mxu1 %v3624_v8  ;;  %v3641_v52 = vld [vmem:[#allocation4 + $0x1f0] sm:$0xff]  ;;  %v3451_v10 = vld [vmem:[%s5098_s2 + $0x284] ss:$8 sps:$4 sm:$0xff]   ;;  %v685_v2 = vsel %vm677_vm2, %v668_v61, %v670_v63  ;;  %v3449_v55 = vld [vmem:[%s5098_s2 + $0x280] ss:$8 sps:$4 sm:$0xff]  }
 0x245   :  { %1634 = vmatpush1.msra.mxu1 %v3625_v13  ;;  %v3446_v1 = vld [vmem:[%s5098_s2 + $0x290] ss:$8 sps:$4 sm:$0xff]   ;;  %v156_v37 = vld [vmem:[#allocation6 + $0xa8] sm:$0xff]  ;;  %v3647_v6 = vld [vmem:[#allocation4 + $0x1c0] sm:$0xff] }
 0x246   :  { %1473 = vmatpush1.bf16.msra.mxu0 %v3425_v53  ;;  %1635 = vmatprep.subr.mxu1 %v3626_v14  ;;  %v3644_v53 = vld [vmem:[#allocation4 + $0x1d8] sm:$0xff]  ;;  %v3645_v17 = vld [vmem:[#allocation4 + $0x1d0] sm:$0xff]  ;;  %v164_v25 = vld [vmem:[#allocation6 + $0xe8] sm:$0xff] }
 0x247   :  { %1247 = vmatmul.mubr.bf16.gmra.mxu1 %v716_v36  ;;  %1474 = vmatprep.subr.bf16.mxu0 %v3430_v34  ;;  %v151_v34 = vld [vmem:[#allocation6 + $0x80] sm:$0xff]  ;;  %v153_v24 = vld [vmem:[#allocation6 + $0x90] sm:$0xff]  ;;  %v3646_v36 = vld [vmem:[#allocation4 + $0x1c8] sm:$0xff] }
 0x248   :  { %1636 = vmatpush1.msra.mxu1 %v3627_v35  ;;  %v694_v8 = vmul.f32 %v690_v3, %v151_v34  ;;  %v3649_v13 = vld [vmem:[#allocation4 + $0x1b0] sm:$0xff]  ;;  %v166_v34 = vld [vmem:[#allocation6 + $0xf8] sm:$0xff]  ;;  %v3663_v3 = vld [vmem:[#allocation4 + $0x140] sm:$0xff] }
 0x249   :  { %1637 = vmatprep.subr.mxu1 %v3628_v20  ;;  %v672_v20 = vrot.slane %v4379_v33, 1  ;;  %v3654_v33 = vld [vmem:[#allocation4 + $0x188] sm:$0xff] }
 0x24a   :  { %1475 = vmatpush2.bf16.msra.mxu0 %v3428_v39  ;;  %1638 = vmatpush1.msra.mxu1 %v3629_v26  ;;  %v158_v39 = vld [vmem:[#allocation6 + $0xb8] sm:$0xff]  ;;  %v3651_v26 = vld [vmem:[#allocation4 + $0x1a0] sm:$0xff] }
 0x24b   :  { %1476 = vmatprep.subr.bf16.mxu0 %v3433_v18  ;;  %1639 = vmatprep.subr.mxu1 %v3630_v28  ;;  %v687_v18 = vsel %vm677_vm2, %v666_v32, %v668_v61  ;;  %v701_v35 = vmul.f32 %v685_v2, %v158_v39  ;;  %v669_v32 = vrot.slane %v4384_v11, 1  ;;  %v3652_v28 = vld [vmem:[#allocation4 + $0x198] sm:$0xff]  ;;  %v686_v11 = vsel %vm677_vm2, %v665_v57, %v667_v22  ;;  %v3658_v57 = vld [vmem:[#allocation4 + $0x168] sm:$0xff]  ;;  %v3665_v2 = vld [vmem:[#allocation4 + $0x130] sm:$0xff] }
 0x24c   :  { %1640 = vmatpush1.msra.mxu1 %v3631_v46  ;;  %v699_v14 = vmul.f32 %v687_v18, %v156_v37  ;;  %v3660_v61 = vld [vmem:[#allocation4 + $0x158] sm:$0xff]  ;;  %v3455_v9 = vld [vmem:[#allocation2 + $0x160] ss:$8 sps:$4 sm:$0xff]  }
 0x24d   :  { %1641 = vmatprep.subr.mxu1 %v3632_v27  ;;  %v684_v38 = vsel %vm677_vm2, %v667_v22, %v669_v32 }
 0x24e   :  { %1477 = vmatpush2.bf16.msra.mxu0 %v3431_v48  ;;  %1642 = vmatpush1.msra.mxu1 %v3633_v42  ;;  %v3648_v48 = vld [vmem:[#allocation4 + $0x1b8] sm:$0xff]  ;;  %v1260_v27 = vpack.c.bf16 %v701_v35, %v699_v14  ;;  %v157_v42 = vld [vmem:[#allocation6 + $0xb0] sm:$0xff]  ;;  %v163_v14 = vld [vmem:[#allocation6 + $0xe0] sm:$0xff] }
 0x24f   :  { %1478 = vmatprep.subr.bf16.mxu0 %v3436_v12  ;;  %1643 = vmatprep.subr.mxu1 %v3634_v30  ;;  %v696_v12 = vmul.f32 %v688_v7, %v153_v24  ;;  %v162_v30 = vld [vmem:[#allocation6 + $0xd8] sm:$0xff]  ;;  %v693_v7 = vsel %vm677_vm2, %v676_v59, %v662_v0  ;;  %v165_v35 = vld [vmem:[#allocation6 + $0xf0] sm:$0xff] }
 0x250   :  { %1644 = vmatpush1.msra.mxu1 %v3635_v31 }
 0x251   :  { %1645 = vmatprep.subr.mxu1 %v3636_v43  ;;  %v1257_v46 = vpack.c.bf16 %v696_v12, %v694_v8  ;;  %v3655_v43 = vld [vmem:[#allocation4 + $0x180] sm:$0xff]  ;;  %v3669_v12 = vld [vmem:[#allocation4 + $0x110] sm:$0xff] }
 0x252   :  { %1479 = vmatpush2.bf16.msra.mxu0 %v3434_v19  ;;  %1646 = vmatpush1.msra.mxu1 %v3637_v45  ;;  %v3650_v19 = vld [vmem:[#allocation4 + $0x1a8] sm:$0xff]  ;;  %v3667_v8 = vld [vmem:[#allocation4 + $0x120] sm:$0xff] }
 0x253   :  { %1480 = vmatprep.subr.bf16.mxu0 %v3439_v21  ;;  %1647 = vmatprep.subr.mxu1 %v3638_v47  ;;  %v674_v21 = vrot.slane %v4405_v50, 1  ;;  %v160_v50 = vld [vmem:[#allocation6 + $0xc8] sm:$0xff]  ;;  %v700_v47 = vmul.f32 %v684_v38, %v157_v42 }
 0x254   :  { %1648 = vmatpush1.msra.mxu1 %v3639_v4  ;;  %v3657_v4 = vld [vmem:[#allocation4 + $0x170] sm:$0xff]  ;;  %v3469_v42 = vld [vmem:[#allocation2 + $0x144] ss:$8 sps:$4 sm:$0xff]   ;;  %v3467_v38 = vld [vmem:[#allocation2 + $0x140] ss:$8 sps:$4 sm:$0xff]  }
 0x255   :  { %1649 = vmatprep.subr.mxu1 %v3640_v5  ;;  %v681_v31 = vsel %vm677_vm2, %v672_v20, %v674_v21  ;;  %v679_v24 = vsel %vm677_vm2, %v674_v21, %v676_v59 }
 0x256   :  { %1481 = vmatpush2.bf16.msra.mxu0 %v3437_v29  ;;  %1650 = vmatpush2.msra.mxu1 %v3641_v52  ;;  %v3653_v29 = vld [vmem:[#allocation4 + $0x190] sm:$0xff]  ;;  %v705_v5 = vmul.f32 %v681_v31, %v162_v30  ;;  %v673_v52 = vrot.slane %v4431_v23, 1  ;;  %v3662_v23 = vld [vmem:[#allocation4 + $0x148] sm:$0xff]  ;;  %v707_v18 = vmul.f32 %v679_v24, %v164_v25 }
 0x257   :  { %1482 = vmatprep.subr.bf16.mxu0 %v3442_v62  ;;  %1651 = vmatprep.subr.mxu1 %v3642_v60  ;;  %v155_v62 = vld [vmem:[#allocation6 + $0xa0] sm:$0xff] }
 0x258   :  { %1652 = vmatpush2.msra.mxu1 %v3643_v41  ;;  %v698_v45 = vmul.f32 %v686_v11, %v155_v62  ;;  %v3659_v60 = vld [vmem:[#allocation4 + $0x160] sm:$0xff]  ;;  %v3661_v41 = vld [vmem:[#allocation4 + $0x150] sm:$0xff] }
 0x259   :  { %1653 = vmatprep.subr.mxu1 %v3644_v53  ;;  %v159_v53 = vld [vmem:[#allocation6 + $0xc0] sm:$0xff]  ;;  %v3461_v62 = vld [vmem:[#allocation2 + $0x150] ss:$8 sps:$4 sm:$0xff]  }
 0x25a   :  { %1483 = vmatpush2.bf16.msra.mxu0 %v3440_v40  ;;  %1654 = vmatpush2.msra.mxu1 %v3645_v17  ;;  %v683_v40 = vsel %vm677_vm2, %v670_v63, %v672_v20  ;;  %v1259_v63 = vpack.c.bf16 %v700_v47, %v698_v45 }
 0x25b   :  { %1484 = vmatprep.subr.bf16.mxu0 %v3445_v44  ;;  %1655 = vmatprep.subr.mxu1 %v3646_v36  ;;  %v3656_v44 = vld [vmem:[#allocation4 + $0x178] sm:$0xff] }
 0x25c   :  { %1656 = vmatpush2.msra.mxu1 %v3647_v6  ;;  %v3664_v36 = vld [vmem:[#allocation4 + $0x138] sm:$0xff]  ;;  %v709_v6 = vmul.f32 %v693_v7, %v166_v34 }
 0x25d   :  { %1657 = vmatprep.subr.mxu1 %v3648_v48  ;;  %v3666_v48 = vld [vmem:[#allocation4 + $0x128] sm:$0xff] }
 0x25e   :  { %1485 = vmatpush2.bf16.msra.mxu0 %v3443_v51  ;;  %1658 = vmatpush2.msra.mxu1 %v3649_v13  ;;  %v703_v51 = vmul.f32 %v683_v40, %v160_v50  ;;  %v1264_v13 = vpack.c.bf16 %v709_v6, %v707_v18 }
 0x25f   :  { %1486 = vmatprep.subr.bf16.mxu0 %v3448_v49  ;;  %1659 = vmatprep.subr.mxu1 %v3650_v19  ;;  %v671_v49 = vrot.slane %v4387_v56, 1  ;;  %v3671_v19 = vld [vmem:[#allocation4 + $0x100] sm:$0xff] }
 0x260   :  { %1660 = vmatpush2.msra.mxu1 %v3651_v26 }
 0x261   :  { %1661 = vmatprep.subr.mxu1 %v3652_v28  ;;  %v680_v17 = vsel %vm677_vm2, %v671_v49, %v673_v52  ;;  %v682_v56 = vsel %vm677_vm2, %v669_v32, %v671_v49  ;;  %v3670_v32 = vld [vmem:[#allocation4 + $0x108] sm:$0xff]  ;;  %v3452_v28 = vld [vmem:[#allocation2 + $0x170] ss:$8 sps:$4 sm:$0xff]  }
 0x262   :  { %1487 = vmatpush2.bf16.msra.mxu0 %v3446_v1  ;;  %1662 = vmatpush2.msra.mxu1 %v3653_v29  ;;  %v1262_v1 = vpack.c.bf16 %v705_v5, %v703_v51  ;;  %v702_v37 = vmul.f32 %v682_v56, %v159_v53  ;;  %v3457_v29 = vld [vmem:[#allocation2 + $0x164] ss:$8 sps:$4 sm:$0xff]  }
 0x263   :  { %1488 = vmatprep.subr.bf16.mxu0 %v3451_v10  ;;  %1663 = vmatprep.subr.mxu1 %v3654_v33  ;;  %v161_v10 = vld [vmem:[#allocation6 + $0xd0] sm:$0xff] }
 0x264   :  { %1664 = vmatpush2.msra.mxu1 %v3655_v43  ;;  %v704_v39 = vmul.f32 %v680_v17, %v161_v10 }
 0x265   :  { %1665 = vmatprep.subr.mxu1 %v3656_v44 }
 0x266   :  { %1489 = vmatpush2.bf16.msra.mxu0 %v3449_v55  ;;  %1666 = vmatpush2.msra.mxu1 %v3657_v4  ;;  %v675_v55 = vrot.slane %v4308_v15, 1  ;;  %v1261_v0 = vpack.c.bf16 %v704_v39, %v702_v37 }
 0x267   :  { %1667 = vmatprep.subr.mxu1 %v3658_v57 }
 0x268   :  { %1668 = vmatpush2.msra.mxu1 %v3659_v60  ;;  %v678_v22 = vsel %vm677_vm2, %v673_v52, %v675_v55  ;;  %v692_v15 = vsel %vm677_vm2, %v675_v55, %v661_v58  ;;  %v3463_v58 = vld [vmem:[#allocation2 + $0x154] ss:$8 sps:$4 sm:$0xff]  }
 0x269   :  { %1491 = vmatmul.mubr.bf16.vlgmr.msra.gmra.mxu0 %v1257_v46  ;;  %1669 = vmatprep.subr.mxu1 %v3660_v61  ;;  %v706_v20 = vmul.f32 %v678_v22, %v163_v14  ;;  %v708_v21 = vmul.f32 %v692_v15, %v165_v35  ;;  %v3454_v46 = vld [vmem:[#allocation2 + $0x174] ss:$8 sps:$4 sm:$0xff]  }
 0x26a   :  { %1500 = vmatprep.mubr.bf16.mxu0 %v1260_v27  ;;  %1670 = vmatpush2.msra.mxu1 %v3661_v41  ;;  %v3460_v27 = vld [vmem:[#allocation2 + $0x74] ss:$8 sps:$4 sm:$0xff]  }
 0x26b   :  { %1671 = vmatprep.subr.mxu1 %v3662_v23  ;;  %v1263_v26 = vpack.c.bf16 %v708_v21, %v706_v20  ;;  %2131 = vmatprep.subr.bf16.mxu0 %v3454_v46 }
 0x26c   :  { %1672 = vmatpush2.msra.mxu1 %v3663_v3  ;;  %2132 = vmatpush1.bf16.msra.mxu0 %v3452_v28 }
 0x26d   :  { %1673 = vmatprep.subr.mxu1 %v3664_v36  ;;  %2133 = vmatprep.subr.bf16.mxu0 %v3457_v29 }
 0x26e   :  { %1674 = vmatpush2.msra.mxu1 %v3665_v2 }
 0x26f   :  { %1675 = vmatprep.subr.mxu1 %v3666_v48 }
 0x270   :  { %1676 = vmatpush2.msra.mxu1 %v3667_v8  ;;  %2134 = vmatpush1.bf16.msra.mxu0 %v3455_v9 }
 0x271   :  { %1501 = vmatmul.mubr.bf16.gmra.mxu0 %v1259_v63  ;;  %1677 = vmatprep.subr.mxu1 %v3668_v16 }
 0x272   :  { %1510 = vmatprep.mubr.bf16.mxu0 %v1262_v1  ;;  %1678 = vmatpush2.msra.mxu1 %v3669_v12 }
 0x273   :  { %1679 = vmatprep.subr.mxu1 %v3670_v32  ;;  %2135 = vmatprep.subr.bf16.mxu0 %v3463_v58 }
 0x274   :  { %1680 = vmatpush2.msra.mxu1 %v3671_v19  ;;  %2136 = vmatpush1.bf16.msra.mxu0 %v3461_v62 }
 0x275   :  { %2364 = vmatprep.subr.bf16.mxu1 %v3460_v27  ;;  %2137 = vmatprep.subr.bf16.mxu0 %v3469_v42 }
 0x278   :  { %2138 = vmatpush1.bf16.msra.mxu0 %v3467_v38 }
 0x279   :  { %1511 = vmatmul.mubr.bf16.gmra.mxu0 %v1261_v0 }
 0x27a   :  { %1520 = vmatprep.mubr.bf16.mxu0 %v1264_v13 }
 0x281   :  { %1521 = vmatmul.mubr.bf16.gmra.mxu0 %v1263_v26 }
 0x2e9   :  { %v985_v11 = vpop.f32.mrf.mxu0 }
 0x2eb   :  { %v987_v33 = vpop.f32.mrf.mxu0 }
 0x2ed   :  { %v989_v50 = vpop.f32.mrf.mxu0 }
 0x2ef   :  { %v991_v30 = vpop.f32.mrf.mxu0  ;;  %v1218_v44 = vpop.f32.mrf.mxu1 }
 0x2f0   :  { %v1219_v2 = vadd.f32 %v1218_v44, %v985_v11 }
 0x2f1   :  { %v995_v31 = vpop.f32.mrf.mxu0  ;;  %v1220_v47 = vpop.f32.mrf.mxu1 }
 0x2f2   :  { %v1221_v8 = vadd.f32 %v1220_v47, %v987_v33 }
 0x2f3   :  { %v997_v40 = vpop.f32.mrf.mxu0  ;;  %v1222_v51 = vpop.f32.mrf.mxu1 }
 0x2f4   :  { %v1223_v37 = vadd.f32 %v1222_v51, %v989_v50 }
 0x2f5   :  { %v999_v43 = vpop.f32.mrf.mxu0  ;;  %v1224_v49 = vpop.f32.mrf.mxu1 }
 0x2f6   :  { %v1225_v18 = vadd.f32 %v1224_v49, %v991_v30 }
 0x2f7   :  { %v1001_v45 = vpop.f32.mrf.mxu0  ;;  %v1228_v57 = vpop.f32.mrf.mxu1 }
 0x2f8   :  { %v1229_v6 = vadd.f32 %v1228_v57, %v995_v31 }
 0x2f9   :  { %v1005_v4 = vpop.f32.mrf.mxu0  ;;  %v1230_v60 = vpop.f32.mrf.mxu1 }
 0x2fa   :  { %v1231_v12 = vadd.f32 %v1230_v60, %v997_v40 }
 0x2fb   :  { %v1007_v5 = vpop.f32.mrf.mxu0  ;;  %v1232_v63 = vpop.f32.mrf.mxu1 }
 0x2fc   :  { %v1233_v13 = vadd.f32 %v1232_v63, %v999_v43 }
 0x2fd   :  { %v1009_v52 = vpop.f32.mrf.mxu0  ;;  %v1234_v1 = vpop.f32.mrf.mxu1 }
 0x2fe   :  { %v1235_v15 = vadd.f32 %v1234_v1, %v1001_v45 }
 0x2ff   :  { %v1011_v59 = vpop.f32.mrf.mxu0  ;;  %v1238_v10 = vpop.f32.mrf.mxu1 }
 0x300   :  { %v1239_v19 = vadd.f32 %v1238_v10, %v1005_v4 }
 0x301   :  { %v4578_v61 = vpop.f32.mrf.mxu0  ;;  %v1240_v23 = vpop.f32.mrf.mxu1 }
 0x302   :  { %v1241_v46 = vadd.f32 %v1240_v23, %v1007_v5 }
 0x303   :  { %v4580_v41 = vpop.f32.mrf.mxu0  ;;  %v1242_v24 = vpop.f32.mrf.mxu1 }
 0x304   :  { %v1243_v11 = vadd.f32 %v1242_v24, %v1009_v52 }
 0x305   :  { %v4582_v53 = vpop.f32.mrf.mxu0  ;;  %v1244_v36 = vpop.f32.mrf.mxu1 }
 0x306   :  { %v1245_v45 = vadd.f32 %v1244_v36, %v1011_v59 }
 0x307   :  { %v4584_v17 = vpop.f32.mrf.mxu0  ;;  %v1248_v16 = vpop.f32.mrf.mxu1 }
 0x308   :  { %v1249_v1 = vadd.f32 %v1248_v16, %v4578_v61 }
 0x309   :  { %v1250_v29 = vpop.f32.mrf.mxu1 }
 0x30b   :  { %v1252_v47 = vpop.f32.mrf.mxu1 }
 0x30d   :  { %v1254_v36 = vpop.f32.mrf.mxu1 }
 0x329   :  { %v1492_v56 = vpop.f32.mrf.mxu0 }
 0x32a   :  { %v4588_v0 = vadd.f32 %v1492_v56, %v1219_v2  ;;  %v1253_v2 = vadd.f32 %v1252_v47, %v4582_v53 }
 0x32b   :  { %v1494_v25 = vpop.f32.mrf.mxu0 }
 0x32c   :  { %v4594_v32 = vadd.f32 %v1494_v25, %v1221_v8  ;;  %v1573_v27 = vmul.f32 %v4588_v0, %v4588_v0 }
 0x32d   :  { %v1496_v34 = vpop.f32.mrf.mxu0 }
 0x32e   :  { %v4586_v55 = vadd.f32 %v1496_v34, %v1223_v37  ;;  %v1574_v33 = vmul.f32 %v4594_v32, %v4594_v32 }
 0x32f   :  { %v1498_v7 = vpop.f32.mrf.mxu0 }
 0x330   :  { %v4590_v14 = vadd.f32 %v1498_v7, %v1225_v18  ;;  %v1575_v20 = vmul.f32 %v4586_v55, %v4586_v55  ;;  %v1547_v50 = vadd.f32 %v4586_v55, %v4588_v0 }
 0x331   :  { %v1502_v3 = vpop.f32.mrf.mxu0 }
 0x332   :  { %v4592_v35 = vadd.f32 %v1502_v3, %v1229_v6  ;;  %v1576_v9 = vmul.f32 %v4590_v14, %v4590_v14  ;;  %v1589_v30 = vadd.f32 %v1575_v20, %v1573_v27  ;;  %v1560_v4 = vadd.f32 %v4590_v14, %v4594_v32 }
 0x333   :  { %v1504_v39 = vpop.f32.mrf.mxu0  ;;  %v1251_v3 = vadd.f32 %v1250_v29, %v4580_v41 }
 0x334   :  { %v4598_v21 = vadd.f32 %v1504_v39, %v1231_v12  ;;  %v1577_v58 = vmul.f32 %v4592_v35, %v4592_v35  ;;  %v1548_v51 = vadd.f32 %v1547_v50, %v4592_v35  ;;  %v1602_v49 = vadd.f32 %v1576_v9, %v1574_v33 }
 0x335   :  { %v1506_v48 = vpop.f32.mrf.mxu0 }
 0x336   :  { %v4600_v26 = vadd.f32 %v1506_v48, %v1233_v13  ;;  %v1578_v31 = vmul.f32 %v4598_v21, %v4598_v21  ;;  %v1590_v52 = vadd.f32 %v1589_v30, %v1577_v58  ;;  %v1561_v59 = vadd.f32 %v1560_v4, %v4598_v21 }
 0x337   :  { %v1508_v22 = vpop.f32.mrf.mxu0 }
 0x338   :  { %v4608_v62 = vadd.f32 %v1508_v22, %v1235_v15  ;;  %v1579_v40 = vmul.f32 %v4600_v26, %v4600_v26  ;;  %v1549_v10 = vadd.f32 %v1548_v51, %v4600_v26  ;;  %v1603_v23 = vadd.f32 %v1602_v49, %v1578_v31 }
 0x339   :  { %v1512_v28 = vpop.f32.mrf.mxu0  ;;  %v1255_v22 = vadd.f32 %v1254_v36, %v4584_v17 }
 0x33a   :  { %v4610_v42 = vadd.f32 %v1512_v28, %v1239_v19  ;;  %v1580_v57 = vmul.f32 %v4608_v62, %v4608_v62  ;;  %v1591_v25 = vadd.f32 %v1590_v52, %v1579_v40  ;;  %v1562_v61 = vadd.f32 %v1561_v59, %v4608_v62 }
 0x33b   :  { %v1514_v38 = vpop.f32.mrf.mxu0 }
 0x33c   :  { %v4620_v43 = vadd.f32 %v1514_v38, %v1241_v46  ;;  %v1581_v60 = vmul.f32 %v4610_v42, %v4610_v42  ;;  %v1550_v37 = vadd.f32 %v1549_v10, %v4610_v42  ;;  %v1604_v18 = vadd.f32 %v1603_v23, %v1580_v57 }
 0x33d   :  { %v1516_v44 = vpop.f32.mrf.mxu0 }
 0x33e   :  { %v4625_v5 = vadd.f32 %v1516_v44, %v1243_v11  ;;  %v1582_v34 = vmul.f32 %v4620_v43, %v4620_v43  ;;  %v1592_v6 = vadd.f32 %v1591_v25, %v1581_v60  ;;  %v1563_v16 = vadd.f32 %v1562_v61, %v4620_v43 }
 0x33f   :  { %v1518_v63 = vpop.f32.mrf.mxu0 }
 0x340   :  { %v4634_v56 = vadd.f32 %v1518_v63, %v1245_v45  ;;  %v1583_v24 = vmul.f32 %v4625_v5, %v4625_v5  ;;  %v1551_v12 = vadd.f32 %v1550_v37, %v4625_v5  ;;  %v1605_v15 = vadd.f32 %v1604_v18, %v1582_v34 }
 0x341   :  { %v1522_v7 = vpop.f32.mrf.mxu0 }
 0x342   :  { %v4643_v39 = vadd.f32 %v1522_v7, %v1249_v1  ;;  %v1584_v48 = vmul.f32 %v4634_v56, %v4634_v56  ;;  %v1593_v19 = vadd.f32 %v1592_v6, %v1583_v24  ;;  %v1564_v20 = vadd.f32 %v1563_v16, %v4634_v56  ;;  %v3466_v16 = vld [vmem:[#allocation2 + $0x64] ss:$8 sps:$4 sm:$0xff]  }
 0x343   :  { %v1524_v8 = vpop.f32.mrf.mxu0 }
 0x344   :  { %v1585_v41 = vmul.f32 %v4643_v39, %v4643_v39  ;;  %v4652_v13 = vadd.f32 %v1524_v8, %v1251_v3  ;;  %v1552_v28 = vadd.f32 %v1551_v12, %v4643_v39  ;;  %v1606_v27 = vadd.f32 %v1605_v15, %v1584_v48  ;;  %v3458_v48 = vld [vmem:[#allocation2 + $0x70] ss:$8 sps:$4 sm:$0xff]  }
 0x345   :  { %v1526_v53 = vpop.f32.mrf.mxu0  ;;  %v3470_v15 = vld [vmem:[#allocation2 + $0x50] ss:$8 sps:$4 sm:$0xff]  }
 0x346   :  { %v1586_v46 = vmul.f32 %v4652_v13, %v4652_v13  ;;  %v4659_v29 = vadd.f32 %v1526_v53, %v1253_v2  ;;  %v1594_v9 = vadd.f32 %v1593_v19, %v1585_v41  ;;  %v1565_v38 = vadd.f32 %v1564_v20, %v4652_v13  ;;  %v3464_v41 = vld [vmem:[#allocation2 + $0x60] ss:$8 sps:$4 sm:$0xff]   ;;  %v3475_v19 = vld [vmem:[#allocation2 + $0x134] ss:$8 sps:$4 sm:$0xff]   ;;  %v3473_v53 = vld [vmem:[#allocation2 + $0x130] ss:$8 sps:$4 sm:$0xff]  }
 0x347   :  { %v1528_v58 = vpop.f32.mrf.mxu0  ;;  %2139 = vmatprep.subr.bf16.mxu0 %v3475_v19  ;;  %v3478_v20 = vld [vmem:[#allocation2 + $0x44] ss:$8 sps:$4 sm:$0xff]   ;;  %v3547_v19 = vld [vmem:[#allocation2 + $0x274] ss:$8 sps:$4 sm:$0xff]  }
 0x348   :  { %v1553_v11 = vadd.f32 %v1552_v28, %v4659_v29  ;;  %v1587_v17 = vmul.f32 %v4659_v29, %v4659_v29  ;;  %v4665_v33 = vadd.f32 %v1528_v58, %v1255_v22  ;;  %v1607_v50 = vadd.f32 %v1606_v27, %v1586_v46  ;;  %v3472_v22 = vld [vmem:[#allocation2 + $0x54] ss:$8 sps:$4 sm:$0xff]   ;;  %2140 = vmatpush1.bf16.msra.mxu0 %v3473_v53  ;;  %v3476_v28 = vld [vmem:[#allocation2 + $0x40] ss:$8 sps:$4 sm:$0xff]   ;;  %v3481_v46 = vld [vmem:[#allocation2 + $0x124] ss:$8 sps:$4 sm:$0xff]  }
 0x349   :  { %v3479_v27 = vld [vmem:[#allocation2 + $0x120] ss:$8 sps:$4 sm:$0xff]   ;;  %2141 = vmatprep.subr.bf16.mxu0 %v3481_v46  ;;  %v3482_v58 = vld [vmem:[#allocation2 + $0x30] ss:$8 sps:$4 sm:$0xff]  }
 0x34a   :  { %v1554_v30 = vrot.slane %v1553_v11, 4  ;;  %v1595_v31 = vadd.f32 %v1594_v9, %v1587_v17  ;;  %v1566_v40 = vadd.f32 %v1565_v38, %v4665_v33  ;;  %v1588_v44 = vmul.f32 %v4665_v33, %v4665_v33  ;;  %v3484_v9 = vld [vmem:[#allocation2 + $0x34] ss:$8 sps:$4 sm:$0xff]   ;;  %v3490_v17 = vld [vmem:[#allocation2 + $0x24] ss:$8 sps:$4 sm:$0xff]  }
 0x34b   :  { %v3487_v38 = vld [vmem:[#allocation2 + $0x114] ss:$8 sps:$4 sm:$0xff]   ;;  %v3542_v53 = vld [vmem:[#allocation2 + $0x90] ss:$8 sps:$4 sm:$0xff]  }
 0x34c   :  { %v1555_v45 = vadd.f32 %v1554_v30, %v1553_v11  ;;  %v1596_v47 = vrot.slane %v1595_v31, 4  ;;  %v1567_v4 = vrot.slane %v1566_v40, 4  ;;  %v1608_v51 = vadd.f32 %v1607_v50, %v1588_v44  ;;  %2142 = vmatpush1.bf16.msra.mxu0 %v3479_v27  ;;  %v3485_v11 = vld [vmem:[#allocation2 + $0x110] ss:$8 sps:$4 sm:$0xff]   ;;  %v3488_v50 = vld [vmem:[#allocation2 + $0x20] ss:$8 sps:$4 sm:$0xff]  }
 0x34d   :  { %2143 = vmatprep.subr.bf16.mxu0 %v3487_v38  ;;  %v3493_v30 = vld [vmem:[#allocation2 + $0x104] ss:$8 sps:$4 sm:$0xff]   ;;  %v3496_v44 = vld [vmem:[#allocation2 + $0x14] ss:$8 sps:$4 sm:$0xff]  }
 0x34e   :  { %v1556_v49 = vrot.slane %v1555_v45, 2  ;;  %v1597_v52 = vadd.f32 %v1596_v47, %v1595_v31  ;;  %v1568_v57 = vadd.f32 %v1567_v4, %v1566_v40  ;;  %v1609_v60 = vrot.slane %v1608_v51, 4  ;;  %v3491_v31 = vld [vmem:[#allocation2 + $0x100] ss:$8 sps:$4 sm:$0xff]   ;;  %v3494_v40 = vld [vmem:[#allocation2 + $0x10] ss:$8 sps:$4 sm:$0xff]  }
 0x34f   :  { %v3497_v47 = vld [vmem:[#allocation2 + $0x1f0] ss:$8 sps:$4 sm:$0xff]   ;;  %v3502_v4 = vld [vmem:[#allocation2 + $0x4] ss:$8 sps:$4 sm:$0xff]  }
 0x350   :  { %v1598_v63 = vrot.slane %v1597_v52, 2  ;;  %v1569_v1 = vrot.slane %v1568_v57, 2  ;;  %v1610_v59 = vadd.f32 %v1609_v60, %v1608_v51  ;;  %v1557_v10 = vadd.f32 %v1556_v49, %v1555_v45  ;;  %2144 = vmatpush1.bf16.msra.mxu0 %v3485_v11  ;;  %v3499_v45 = vld [vmem:[#allocation2 + $0x1f4] ss:$8 sps:$4 sm:$0xff]   ;;  %v3505_v51 = vld [vmem:[#allocation2 + $0x1e4] ss:$8 sps:$4 sm:$0xff]  }
 0x351   :  { %2145 = vmatprep.subr.bf16.mxu0 %v3493_v30  ;;  %v3500_v49 = vld [vmem:[#allocation2] ss:$8 sps:$4 sm:$0xff]   ;;  %v3511_v60 = vld [vmem:[#allocation2 + $0x1d4] ss:$8 sps:$4 sm:$0xff]  }
 0x352   :  { %v1599_v23 = vadd.f32 %v1598_v63, %v1597_v52  ;;  %v1570_v25 = vadd.f32 %v1569_v1, %v1568_v57  ;;  %v1611_v34 = vrot.slane %v1610_v59, 2  ;;  %v1558_v36 = vrot.slane %v1557_v10, 1  ;;  %v3508_v52 = vld [vmem:[#allocation2 + $0xf4] ss:$8 sps:$4 sm:$0xff]   ;;  %v3503_v57 = vld [vmem:[#allocation2 + $0x1e0] ss:$8 sps:$4 sm:$0xff]  }
 0x353   :  { %v3506_v63 = vld [vmem:[#allocation2 + $0xf0] ss:$8 sps:$4 sm:$0xff]   ;;  %v3514_v1 = vld [vmem:[#allocation2 + $0xe4] ss:$8 sps:$4 sm:$0xff]  }
 0x354   :  { %v1571_v24 = vrot.slane %v1570_v25, 1  ;;  %v1612_v7 = vadd.f32 %v1611_v34, %v1610_v59  ;;  %v1600_v3 = vrot.slane %v1599_v23, 1  ;;  %v1559_v6 = vadd.f32 %v1558_v36, %v1557_v10  ;;  %2146 = vmatpush1.bf16.msra.mxu0 %v3491_v31  ;;  %v3509_v59 = vld [vmem:[#allocation2 + $0x1d0] ss:$8 sps:$4 sm:$0xff]   ;;  %v3517_v10 = vld [vmem:[#allocation2 + $0x1c4] ss:$8 sps:$4 sm:$0xff]  }
 0x355   :  { %2147 = vmatprep.subr.bf16.mxu0 %v3499_v45  ;;  %v3515_v34 = vld [vmem:[#allocation2 + $0x1c0] ss:$8 sps:$4 sm:$0xff]   ;;  %v3521_v36 = vld [vmem:[#allocation2 + $0x1b0] ss:$8 sps:$4 sm:$0xff]  }
 0x356   :  { %v1613_v61 = vrot.slane %v1612_v7, 1  ;;  %v1601_v37 = vadd.f32 %v1600_v3, %v1599_v23  ;;  %v1572_v2 = vadd.f32 %v1571_v24, %v1570_v25  ;;  %v3512_v23 = vld [vmem:[#allocation2 + $0xe0] ss:$8 sps:$4 sm:$0xff]   ;;  %v3520_v25 = vld [vmem:[#allocation2 + $0xd4] ss:$8 sps:$4 sm:$0xff]  }
 0x357   :  { %v3523_v24 = vld [vmem:[#allocation2 + $0x1b4] ss:$8 sps:$4 sm:$0xff]   ;;  %v3526_v3 = vld [vmem:[#allocation2 + $0xc4] ss:$8 sps:$4 sm:$0xff]  }
 0x358   :  { %v1614_v18 = vadd.f32 %v1613_v61, %v1612_v7  ;;  %v1615_v12 = vsel %vm169_vm0, %v1559_v6, %v1601_v37  ;;  %2148 = vmatpush2.bf16.msra.mxu0 %v3497_v47  ;;  %v3518_v7 = vld [vmem:[#allocation2 + $0xd0] ss:$8 sps:$4 sm:$0xff]   ;;  %v3529_v61 = vld [vmem:[#allocation2 + $0x1a4] ss:$8 sps:$4 sm:$0xff]   ;;  %v3524_v37 = vld [vmem:[#allocation2 + $0xc0] ss:$8 sps:$4 sm:$0xff]  }
 0x359   :  { %2149 = vmatprep.subr.bf16.mxu0 %v3505_v51  ;;  %v3535_v6 = vld [vmem:[#allocation2 + $0x194] ss:$8 sps:$4 sm:$0xff]  }
 0x35a   :  { %v1616_v8 = vsel %vm169_vm0, %v1572_v2, %v1614_v18  ;;  %v3532_v2 = vld [vmem:[#allocation2 + $0xb4] ss:$8 sps:$4 sm:$0xff]   ;;  %v3527_v18 = vld [vmem:[#allocation2 + $0x1a0] ss:$8 sps:$4 sm:$0xff]  }
 0x35b   :  { %1681 = vmatprep.mubr.f32.mxu1 %v1616_v8  ;;  %v3538_v8 = vld [vmem:[#allocation2 + $0xa4] ss:$8 sps:$4 sm:$0xff]   ;;  %v3672_v46 = vld [vmem:[#allocation4 + $0xf8] sm:$0xff] }
 0x35c   :  { %1682 = vmatmul.mubr.f32.vlgmr.msra.gmra.mxu1 %v1615_v12  ;;  %2150 = vmatpush2.bf16.msra.mxu0 %v3503_v57  ;;  %v3541_v12 = vld [vmem:[#allocation2 + $0x184] ss:$8 sps:$4 sm:$0xff]   ;;  %v1732_v57 = vsub.s32 2, %v4070_v54 }
 0x35d   :  { %2365 = vmatpush1.bf16.msra.mxu1 %v3458_v48  ;;  %2151 = vmatprep.subr.bf16.mxu0 %v3511_v60  ;;  %v3530_v48 = vld [vmem:[#allocation2 + $0xb0] ss:$8 sps:$4 sm:$0xff]   ;;  %v4678_v60 = vld [vmem:[%s5102_s6] sm:$0x3f] }
 0x35e   :  { %2366 = vmatprep.subr.bf16.mxu1 %v3466_v16  ;;  %v3533_v16 = vld [vmem:[#allocation2 + $0x190] ss:$8 sps:$4 sm:$0xff]  }
 0x360   :  { %2152 = vmatpush2.bf16.msra.mxu0 %v3509_v59 }
 0x361   :  { %2367 = vmatpush1.bf16.msra.mxu1 %v3464_v41  ;;  %2153 = vmatprep.subr.bf16.mxu0 %v3517_v10  ;;  %v3536_v41 = vld [vmem:[#allocation2 + $0xa0] ss:$8 sps:$4 sm:$0xff]  }
 0x362   :  { %2368 = vmatprep.subr.bf16.mxu1 %v3472_v22  ;;  %v3544_v22 = vld [vmem:[#allocation2 + $0x94] ss:$8 sps:$4 sm:$0xff]   ;;  %v4684_v10 = vld [vmem:[%s5102_s6 + $0x8] sm:$0x3f] }
 0x364   :  { %2154 = vmatpush2.bf16.msra.mxu0 %v3515_v34 }
 0x365   :  { %2369 = vmatpush1.bf16.msra.mxu1 %v3470_v15  ;;  %2155 = vmatprep.subr.bf16.mxu0 %v3523_v24  ;;  %v3539_v15 = vld [vmem:[#allocation2 + $0x180] ss:$8 sps:$4 sm:$0xff]  }
 0x366   :  { %2370 = vmatprep.subr.bf16.mxu1 %v3478_v20  ;;  %v3550_v20 = vld [vmem:[#allocation2 + $0x84] ss:$8 sps:$4 sm:$0xff]  }
 0x368   :  { %2156 = vmatpush2.bf16.msra.mxu0 %v3521_v36  ;;  %v1756_v36 = vsub.s32 3, %v4070_v54 }
 0x369   :  { %2371 = vmatpush1.bf16.msra.mxu1 %v3476_v28  ;;  %2157 = vmatprep.subr.bf16.mxu0 %v3529_v61  ;;  %v3548_v28 = vld [vmem:[#allocation2 + $0x80] ss:$8 sps:$4 sm:$0xff]  }
 0x36a   :  { %2372 = vmatprep.subr.bf16.mxu1 %v3484_v9 }
 0x36c   :  { %2158 = vmatpush2.bf16.msra.mxu0 %v3527_v18 }
 0x36d   :  { %2373 = vmatpush1.bf16.msra.mxu1 %v3482_v58  ;;  %2159 = vmatprep.subr.bf16.mxu0 %v3535_v6 }
 0x36e   :  { %2374 = vmatprep.subr.bf16.mxu1 %v3490_v17 }
 0x370   :  { %2160 = vmatpush2.bf16.msra.mxu0 %v3533_v16 }
 0x371   :  { %2375 = vmatpush1.bf16.msra.mxu1 %v3488_v50  ;;  %2161 = vmatprep.subr.bf16.mxu0 %v3541_v12 }
 0x372   :  { %2376 = vmatprep.subr.bf16.mxu1 %v3496_v44 }
 0x374   :  { %2162 = vmatpush2.bf16.msra.mxu0 %v3539_v15 }
 0x375   :  { %2377 = vmatpush1.bf16.msra.mxu1 %v3494_v40  ;;  %2638 = vmatprep.subr.bf16.mxu0 %v3547_v19 }
 0x376   :  { %2378 = vmatprep.subr.bf16.mxu1 %v3502_v4 }
 0x379   :  { %2379 = vmatpush1.bf16.msra.mxu1 %v3500_v49 }
 0x37a   :  { %2380 = vmatprep.subr.bf16.mxu1 %v3508_v52 }
 0x37d   :  { %2381 = vmatpush2.bf16.msra.mxu1 %v3506_v63 }
 0x37e   :  { %2382 = vmatprep.subr.bf16.mxu1 %v3514_v1 }
 0x381   :  { %2383 = vmatpush2.bf16.msra.mxu1 %v3512_v23 }
 0x382   :  { %2384 = vmatprep.subr.bf16.mxu1 %v3520_v25 }
 0x385   :  { %2385 = vmatpush2.bf16.msra.mxu1 %v3518_v7 }
 0x386   :  { %2386 = vmatprep.subr.bf16.mxu1 %v3526_v3 }
 0x389   :  { %2387 = vmatpush2.bf16.msra.mxu1 %v3524_v37 }
 0x38a   :  { %2388 = vmatprep.subr.bf16.mxu1 %v3532_v2 }
 0x38d   :  { %2389 = vmatpush2.bf16.msra.mxu1 %v3530_v48 }
 0x38e   :  { %2390 = vmatprep.subr.bf16.mxu1 %v3538_v8 }
 0x391   :  { %2391 = vmatpush2.bf16.msra.mxu1 %v3536_v41 }
 0x392   :  { %2392 = vmatprep.subr.bf16.mxu1 %v3544_v22 }
 0x395   :  { %2393 = vmatpush2.bf16.msra.mxu1 %v3542_v53 }
 0x396   :  { %2394 = vmatprep.subr.bf16.mxu1 %v3550_v20 }
 0x399   :  { %2395 = vmatpush2.bf16.msra.mxu1 %v3548_v28 }
 0x39a   :  { %2797 = vmatprep.subr.mxu1 %v3672_v46 }
 0x41c   :  { %v1683_v27 = vpop.f32.mrf.mxu1 }
 0x41d   :  { %v1688_v9 = vmul.f32 0.00048828125, %v1683_v27 }
 0x41e   :  { %v1685_v58 = vpop.f32.mrf.mxu1 }
 0x41f   :  { %v1690_v38 = vmul.f32 %v1688_v9, %v1688_v9  ;;  %v1689_v11 = vmul.f32 0.00048828125, %v1685_v58 }
 0x421   :  { %v1694_v17 = vrot.slane %v1690_v38, 7  ;;  %v1691_v50 = vmul.f32 %v1689_v11, %v1689_v11 }
 0x423   :  { %v1698_v30 = vsub.f32 %v1688_v9, %v1694_v17  ;;  %v1695_v31 = vrot.slane %v1691_v50, 7 }
 0x425   :  { %v1700_v40 = vmax.f32 %v1698_v30, 0.0  ;;  %v1699_v44 = vsub.f32 %v1689_v11, %v1695_v31 }
 0x427   :  { %v1702_v45 = vadd.f32 1e-05, %v1700_v40  ;;  %v1701_v47 = vmax.f32 %v1699_v44, 0.0 }
 0x429   :  { %3600 = vrsqrt.f32 %v1702_v45  ;;  %v1703_v4 = vadd.f32 1e-05, %v1701_v47 }
 0x42b   :  { %3602 = vrsqrt.f32 %v1703_v4  ;;  %v3545_v4 = vld [vmem:[#allocation2 + $0x270] ss:$8 sps:$4 sm:$0xff]  }
 0x436   :  { %v3601_v51 = vpop.eup %3600 }
 0x437   :  { %v1708_v49 = vrot.slane %v3601_v51, 7 }
 0x438   :  { %v3603_v52 = vpop.eup %3602 }
 0x439   :  { %v1712_v63 = vmul.f32 %v4678_v60, %v1708_v49  ;;  %v1709_v1 = vrot.slane %v3603_v52, 7 }
 0x43b   :  { %v1716_v59 = vrot.slane %v1712_v63, 2  ;;  %v1713_v23 = vmul.f32 %v4684_v10, %v1709_v1  ;;  %v4687_v25 = vrot.slane %v1712_v63, %v1732_v57  ;;  %v3553_v63 = vld [vmem:[#allocation2 + $0x264] ss:$8 sps:$4 sm:$0xff]  }
 0x43d   :  { %v1720_v34 = vmul.f32 %v1716_v59, %v1688_v9  ;;  %v1717_v24 = vrot.slane %v1713_v23, 2  ;;  %v4689_v7 = vrot.slane %v1713_v23, %v1732_v57  ;;  %v1738_v37 = vmul.f32 %v4687_v25, %v4588_v0 }
 0x43e   :  { %v1740_v2 = vmul.f32 %v4687_v25, %v4586_v55  ;;  %v1752_v48 = vmul.f32 %v4687_v25, %v4659_v29  ;;  %v1742_v8 = vmul.f32 %v4687_v25, %v4592_v35  ;;  %v1744_v55 = vmul.f32 %v4687_v25, %v4600_v26 }
 0x43f   :  { %v1724_v3 = vrot.slane %v1720_v34, 5  ;;  %v1721_v61 = vmul.f32 %v1717_v24, %v1689_v11  ;;  %v1739_v16 = vmul.f32 %v4689_v7, %v4594_v32  ;;  %v1741_v12 = vmul.f32 %v4689_v7, %v4590_v14 }
 0x440   :  { %v1743_v0 = vmul.f32 %v4689_v7, %v4598_v21  ;;  %v1745_v29 = vmul.f32 %v4689_v7, %v4608_v62  ;;  %v1753_v35 = vmul.f32 %v4689_v7, %v4665_v33  ;;  %v4718_v32 = vmul.f32 %v4689_v7, %v4620_v43 }
 0x441   :  { %v1728_v18 = vsub.f32 %v4678_v60, %v1724_v3  ;;  %v1725_v6 = vrot.slane %v1721_v61, 5  ;;  %v4722_v14 = vmul.f32 %v4689_v7, %v4634_v56  ;;  %v1746_v21 = vmul.f32 %v4687_v25, %v4610_v42  ;;  %v3675_v3 = vld [vmem:[#allocation6 + $0x10] sm:$0xff] }
 0x442   :  { %v1748_v26 = vmul.f32 %v4687_v25, %v4625_v5 }
 0x443   :  { %v4709_v41 = vrot.slane %v1728_v18, %v1756_v36  ;;  %v1729_v22 = vsub.f32 %v4684_v10, %v1725_v6  ;;  %v3677_v6 = vld [vmem:[#allocation6] sm:$0xff] }
 0x445   :  { %v4728_v15 = vrot.slane %v1729_v22, %v1756_v36  ;;  %v1762_v62 = vadd.f32 %v4709_v41, %v1738_v37  ;;  %v1764_v33 = vadd.f32 %v4709_v41, %v1740_v2  ;;  %v1776_v19 = vadd.f32 %v4709_v41, %v1752_v48  ;;  %v3676_v2 = vld [vmem:[#allocation6 + $0x18] sm:$0xff]  ;;  %v3679_v22 = vld [vmem:[#allocation6 + $0x28] sm:$0xff] }
 0x446   :  { %v1766_v43 = vadd.f32 %v4709_v41, %v1742_v8  ;;  %v1768_v53 = vadd.f32 %v4709_v41, %v1744_v55  ;;  %v4736_v56 = vadd.f32 %v4709_v41, %v1746_v21  ;;  %v4739_v42 = vadd.f32 %v4709_v41, %v1748_v26  ;;  %v3680_v21 = vld [vmem:[#allocation6 + $0x38] sm:$0xff] }
 0x447   :  { %v1763_v5 = vadd.f32 %v4728_v15, %v1739_v16  ;;  %v1765_v20 = vadd.f32 %v4728_v15, %v1741_v12  ;;  %v4743_v28 = vmax.f32 %v1762_v62, 0.0  ;;  %v4745_v46 = vmax.f32 %v1764_v33, 0.0  ;;  %v3551_v16 = vld [vmem:[#allocation2 + $0x260] ss:$8 sps:$4 sm:$0xff]   ;;  %v3556_v62 = vld [vmem:[#allocation2 + $0x254] ss:$8 sps:$4 sm:$0xff]  }
 0x448   :  { %v1767_v27 = vadd.f32 %v4728_v15, %v1743_v0  ;;  %v1769_v9 = vadd.f32 %v4728_v15, %v1745_v29  ;;  %v1777_v58 = vadd.f32 %v4728_v15, %v1753_v35  ;;  %v4750_v38 = vmax.f32 %v1776_v19, 0.0  ;;  %v3678_v12 = vld [vmem:[#allocation6 + $0x8] sm:$0xff] }
 0x449   :  { %v4752_v11 = vmax.f32 %v1763_v5, 0.0  ;;  %v4754_v17 = vmax.f32 %v1765_v20, 0.0  ;;  %v1930_v50 = vpack.c.bf16 %v4745_v46, %v4743_v28  ;;  %v1794_v30 = vrot.slane %v4743_v28, 7 }
 0x44a   :  { %v4759_v31 = vmax.f32 %v1767_v27, 0.0  ;;  %v4761_v40 = vmax.f32 %v1769_v9, 0.0  ;;  %v4763_v44 = vmax.f32 %v1777_v58, 0.0  ;;  %v1796_v45 = vrot.slane %v4745_v46, 7 }
 0x44b   :  { %v1931_v47 = vpack.c.bf16 %v4754_v17, %v4752_v11  ;;  %v1795_v51 = vrot.slane %v4752_v11, 7  ;;  %v1797_v49 = vrot.slane %v4754_v17, 7  ;;  %v1808_v52 = vrot.slane %v4750_v38, 7 }
 0x44c   :  { %v1933_v57 = vpack.c.bf16 %v4761_v40, %v4759_v31  ;;  %v1809_v1 = vrot.slane %v4763_v44, 7  ;;  %v1822_v59 = vsel %vm628_vm1, %v1794_v30, %v1796_v45  ;;  %v1799_v23 = vrot.slane %v4759_v31, 7 }
 0x44d   :  { %2163 = vmatprep.mubr.bf16.mxu0 %v1931_v47  ;;  %v1823_v34 = vsel %vm628_vm1, %v1795_v51, %v1797_v49  ;;  %v1824_v24 = vsel %vm628_vm1, %v1808_v52, %v1794_v30  ;;  %v1828_v36 = vmul.f32 %v3675_v3, %v1822_v59  ;;  %v1801_v61 = vrot.slane %v4761_v40, 7  ;;  %v3682_v59 = vld [vmem:[#allocation6 + $0x20] sm:$0xff] }
 0x44e   :  { %2164 = vmatmul.mubr.bf16.vlgmr.msra.gmra.mxu0 %v1930_v50  ;;  %v1825_v37 = vsel %vm628_vm1, %v1809_v1, %v1795_v51  ;;  %v1829_v18 = vmul.f32 %v3676_v2, %v1823_v34  ;;  %v1826_v48 = vmul.f32 %v3677_v6, %v1824_v24  ;;  %v1821_v8 = vsel %vm628_vm1, %v1797_v49, %v1799_v23  ;;  %v3683_v34 = vld [vmem:[#allocation6 + $0x30] sm:$0xff] }
 0x44f   :  { %2639 = vmatpush1.bf16.msra.mxu0 %v3545_v4  ;;  %2173 = vmatprep.mubr.bf16.mxu0 %v1933_v57  ;;  %v1827_v0 = vmul.f32 %v3678_v12, %v1825_v37  ;;  %v1819_v55 = vsel %vm628_vm1, %v1799_v23, %v1801_v61  ;;  %v1831_v29 = vmul.f32 %v3679_v22, %v1821_v8  ;;  %v4792_v35 = vmax.f32 %v1766_v43, 0.0  ;;  %v3557_v37 = vld [vmem:[#allocation2 + $0x240] ss:$8 sps:$4 sm:$0xff]  }
 0x450   :  { %2640 = vmatprep.subr.bf16.mxu0 %v3553_v63  ;;  %v1833_v26 = vmul.f32 %v3680_v21, %v1819_v55  ;;  %v4794_v33 = vmax.f32 %v1768_v53, 0.0  ;;  %v1771_v19 = vadd.f32 %v4728_v15, %v4718_v32  ;;  %v1773_v20 = vadd.f32 %v4728_v15, %v4722_v14  ;;  %v3554_v53 = vld [vmem:[#allocation2 + $0x250] ss:$8 sps:$4 sm:$0xff]  }
 0x451   :  { %v1891_v5 = vpack.c.bf16 %v1829_v18, %v1827_v0  ;;  %v1798_v27 = vrot.slane %v4792_v35, 7  ;;  %v1751_v9 = vmul.f32 %v4689_v7, %v4652_v13  ;;  %v1890_v43 = vpack.c.bf16 %v1828_v36, %v1826_v48  ;;  %v3559_v7 = vld [vmem:[#allocation2 + $0x244] ss:$8 sps:$4 sm:$0xff]   ;;  %v3681_v63 = vld [vmem:[#allocation4 + $0xf0] sm:$0xff]  ;;  %v3686_v48 = vld [vmem:[#allocation6 + $0x58] sm:$0xff] }
 0x452   :  { %v1893_v58 = vpack.c.bf16 %v1833_v26, %v1831_v29  ;;  %v4803_v50 = vmax.f32 %v1771_v19, 0.0  ;;  %v1800_v30 = vrot.slane %v4794_v33, 7  ;;  %v4806_v47 = vmax.f32 %v1773_v20, 0.0  ;;  %v3684_v36 = vld [vmem:[#allocation4 + $0xe8] sm:$0xff]  ;;  %v3687_v0 = vld [vmem:[#allocation4 + $0xe0] sm:$0xff]  ;;  %v3688_v26 = vld [vmem:[#allocation4 + $0xd8] sm:$0xff] }
 0x453   :  { %2396 = vmatprep.mubr.bf16.mxu1 %v1891_v5  ;;  %2641 = vmatpush1.bf16.msra.mxu0 %v3551_v16  ;;  %v1820_v32 = vsel %vm628_vm1, %v1796_v45, %v1798_v27  ;;  %v4811_v14 = vmax.f32 %v4736_v56, 0.0  ;;  %v4814_v4 = vmax.f32 %v4739_v42, 0.0  ;;  %v1932_v13 = vpack.c.bf16 %v4794_v33, %v4792_v35  ;;  %v3560_v19 = vld [vmem:[#allocation2 + $0x230] ss:$8 sps:$4 sm:$0xff]  }
 0x454   :  { %2397 = vmatmul.mubr.bf16.vlgmr.msra.gmra.mxu1 %v1890_v43  ;;  %2642 = vmatprep.subr.bf16.mxu0 %v3556_v62  ;;  %v1818_v51 = vsel %vm628_vm1, %v1798_v27, %v1800_v30  ;;  %v1803_v49 = vrot.slane %v4803_v50, 7  ;;  %v1775_v57 = vadd.f32 %v4728_v15, %v1751_v9  ;;  %v1935_v56 = vpack.c.bf16 %v4806_v47, %v4803_v50  ;;  %v3689_v27 = vld [vmem:[#allocation4 + $0xd0] sm:$0xff]  ;;  %v3565_v9 = vld [vmem:[#allocation2 + $0x224] ss:$8 sps:$4 sm:$0xff]  }
 0x455   :  { %2406 = vmatprep.mubr.bf16.mxu1 %v1893_v58  ;;  %v1805_v42 = vrot.slane %v4806_v47, 7  ;;  %v1750_v45 = vmul.f32 %v4687_v25, %v4643_v39  ;;  %2798 = vmatpush1.msra.mxu1 %v3681_v63  ;;  %v1830_v23 = vmul.f32 %v3682_v59, %v1820_v32  ;;  %v1832_v24 = vmul.f32 %v3683_v34, %v1818_v51  ;;  %v3685_v25 = vld [vmem:[#allocation6 + $0x48] sm:$0xff]  ;;  %v3691_v32 = vld [vmem:[#allocation6 + $0x40] sm:$0xff] }
 0x456   :  { %2174 = vmatmul.mubr.bf16.gmra.mxu0 %v1932_v13  ;;  %v1817_v3 = vsel %vm628_vm1, %v1801_v61, %v1803_v49  ;;  %v4829_v15 = vmax.f32 %v1775_v57, 0.0  ;;  %2799 = vmatprep.subr.mxu1 %v3684_v36  ;;  %v1802_v18 = vrot.slane %v4811_v14, 7  ;;  %v1804_v6 = vrot.slane %v4814_v4, 7  ;;  %v3562_v61 = vld [vmem:[#allocation2 + $0x234] ss:$8 sps:$4 sm:$0xff]   ;;  %v3695_v34 = vld [vmem:[#allocation6 + $0x88] sm:$0xff] }
 0x457   :  { %2643 = vmatpush1.bf16.msra.mxu0 %v3554_v53  ;;  %2183 = vmatprep.mubr.bf16.mxu0 %v1935_v56  ;;  %v1815_v39 = vsel %vm628_vm1, %v1803_v49, %v1805_v42  ;;  %v1835_v2 = vmul.f32 %v3685_v25, %v1817_v3  ;;  %v1774_v12 = vadd.f32 %v4709_v41, %v1750_v45  ;;  %v1843_v22 = vrot.slane %v4752_v11, 1  ;;  %v3690_v53 = vld [vmem:[#allocation4 + $0xc8] sm:$0xff]  ;;  %v3694_v45 = vld [vmem:[#allocation6 + $0x78] sm:$0xff] }
 0x458   :  { %2644 = vmatprep.subr.bf16.mxu0 %v3559_v7  ;;  %v1837_v8 = vmul.f32 %v3686_v48, %v1815_v39  ;;  %v1807_v16 = vrot.slane %v4829_v15, 7  ;;  %2800 = vmatpush1.msra.mxu1 %v3687_v0  ;;  %v1892_v55 = vpack.c.bf16 %v1832_v24, %v1830_v23  ;;  %v1845_v29 = vrot.slane %v4754_v17, 1  ;;  %v3692_v7 = vld [vmem:[#allocation6 + $0x50] sm:$0xff]  ;;  %v3563_v57 = vld [vmem:[#allocation2 + $0x220] ss:$8 sps:$4 sm:$0xff]   ;;  %v3696_v3 = vld [vmem:[#allocation6 + $0x98] sm:$0xff] }
 0x459   :  { %v1847_v21 = vrot.slane %v4759_v31, 1  ;;  %2801 = vmatprep.subr.mxu1 %v3688_v26  ;;  %v1814_v5 = vsel %vm628_vm1, %v1802_v18, %v1804_v6  ;;  %v1816_v41 = vsel %vm628_vm1, %v1800_v30, %v1802_v18  ;;  %v4846_v20 = vmax.f32 %v1774_v12, 0.0  ;;  %v3693_v56 = vld [vmem:[#allocation6 + $0x68] sm:$0xff]  ;;  %v3568_v23 = vld [vmem:[#allocation2 + $0x214] ss:$8 sps:$4 sm:$0xff]  }
 0x45a   :  { %v1895_v62 = vpack.c.bf16 %v1837_v8, %v1835_v2  ;;  %2802 = vmatpush1.msra.mxu1 %v3689_v27  ;;  %v1934_v17 = vpack.c.bf16 %v4814_v4, %v4811_v14  ;;  %v1811_v43 = vsel %vm628_vm1, %v1807_v16, %v1809_v1  ;;  %v1813_v58 = vsel %vm628_vm1, %v1805_v42, %v1807_v16  ;;  %v3698_v25 = vld [vmem:[#allocation4 + $0xb8] sm:$0xff]  ;;  %v3571_v12 = vld [vmem:[#allocation2 + $0x204] ss:$8 sps:$4 sm:$0xff]   ;;  %v3702_v26 = vld [vmem:[#allocation6 + $0x70] sm:$0xff] }
 0x45b   :  { %2645 = vmatpush1.bf16.msra.mxu0 %v3557_v37  ;;  %v1937_v30 = vpack.c.bf16 %v4763_v44, %v4829_v15  ;;  %2803 = vmatprep.subr.mxu1 %v3690_v53  ;;  %v1834_v13 = vmul.f32 %v3691_v32, %v1816_v41  ;;  %v1836_v51 = vmul.f32 %v3692_v7, %v1814_v5  ;;  %v1806_v59 = vrot.slane %v4846_v20, 7  ;;  %v3697_v37 = vld [vmem:[#allocation4 + $0xc0] sm:$0xff]  ;;  %v3566_v18 = vld [vmem:[#allocation2 + $0x210] ss:$8 sps:$4 sm:$0xff]  }
 0x45c   :  { %2407 = vmatmul.mubr.bf16.gmra.mxu1 %v1892_v55  ;;  %2646 = vmatprep.subr.bf16.mxu0 %v3562_v61  ;;  %v1869_v49 = vsel %vm677_vm2, %v1845_v29, %v1847_v21  ;;  %v1871_v1 = vsel %vm677_vm2, %v1843_v22, %v1845_v29  ;;  %v1839_v42 = vmul.f32 %v3693_v56, %v1813_v58  ;;  %v3699_v61 = vld [vmem:[#allocation4 + $0xb0] sm:$0xff]  ;;  %v3700_v55 = vld [vmem:[#allocation4 + $0xa8] sm:$0xff]  ;;  %v3701_v29 = vld [vmem:[#allocation6 + $0x60] sm:$0xff]  ;;  %v1856_v11 = vrot.slane %v4750_v38, 1 }
 0x45d   :  { %2416 = vmatprep.mubr.bf16.mxu1 %v1895_v62  ;;  %v1841_v63 = vmul.f32 %v3694_v45, %v1811_v43  ;;  %v1875_v24 = vmul.f32 %v3695_v34, %v1871_v1  ;;  %v1877_v36 = vmul.f32 %v3696_v3, %v1869_v49  ;;  %2804 = vmatpush1.msra.mxu1 %v3697_v37  ;;  %v3703_v5 = vld [vmem:[#allocation4 + $0xa0] sm:$0xff]  ;;  %v3704_v27 = vld [vmem:[#allocation4 + $0x98] sm:$0xff]  ;;  %v3706_v58 = vld [vmem:[#allocation4 + $0x88] sm:$0xff] }
 0x45e   :  { %2184 = vmatmul.mubr.bf16.gmra.mxu0 %v1934_v17  ;;  %v1894_v39 = vpack.c.bf16 %v1836_v51, %v1834_v13  ;;  %2805 = vmatprep.subr.mxu1 %v3698_v25  ;;  %v1810_v48 = vsel %vm628_vm1, %v1806_v59, %v1808_v52  ;;  %v1812_v8 = vsel %vm628_vm1, %v1804_v6, %v1806_v59  ;;  %v3569_v6 = vld [vmem:[#allocation2 + $0x200] ss:$8 sps:$4 sm:$0xff]   ;;  %v3572_v17 = vld [vmem:[#allocation2 + $0x2f0] ss:$8 sps:$4 sm:$0xff]   ;;  %v3577_v43 = vld [vmem:[#allocation2 + $0x2e4] ss:$8 sps:$4 sm:$0xff]  }
 0x45f   :  { %2647 = vmatpush1.bf16.msra.mxu0 %v3560_v19  ;;  %2193 = vmatprep.mubr.bf16.mxu0 %v1937_v30  ;;  %v1897_v2 = vpack.c.bf16 %v1841_v63, %v1839_v42  ;;  %v1936_v16 = vpack.c.bf16 %v4750_v38, %v4846_v20  ;;  %v2438_v0 = vpack.c.bf16 %v1877_v36, %v1875_v24  ;;  %v3574_v19 = vld [vmem:[#allocation2 + $0x2f4] ss:$8 sps:$4 sm:$0xff]   ;;  %v3707_v30 = vld [vmem:[#allocation4 + $0x80] sm:$0xff]  ;;  %v3710_v51 = vld [vmem:[#allocation4 + $0x68] sm:$0xff] }
 0x460   :  { %2648 = vmatprep.subr.bf16.mxu0 %v3565_v9  ;;  %2806 = vmatpush1.msra.mxu1 %v3699_v61  ;;  %v1838_v52 = vmul.f32 %v3701_v29, %v1812_v8  ;;  %v1840_v62 = vmul.f32 %v3702_v26, %v1810_v48  ;;  %v3705_v9 = vld [vmem:[#allocation4 + $0x90] sm:$0xff]  ;;  %v3575_v53 = vld [vmem:[#allocation2 + $0x2e0] ss:$8 sps:$4 sm:$0xff]   ;;  %v3708_v32 = vld [vmem:[#allocation4 + $0x78] sm:$0xff]  ;;  %v1844_v29 = vrot.slane %v4745_v46, 1  ;;  %v1849_v26 = vrot.slane %v4761_v40, 1 }
 0x461   :  { %2807 = vmatprep.subr.mxu1 %v3700_v55  ;;  %v3580_v13 = vld [vmem:[#allocation2 + $0x2d4] ss:$8 sps:$4 sm:$0xff]   ;;  %v3711_v49 = vld [vmem:[#allocation4 + $0x60] sm:$0xff]  ;;  %v3578_v1 = vld [vmem:[#allocation2 + $0x2d0] ss:$8 sps:$4 sm:$0xff]   ;;  %v1842_v55 = vrot.slane %v4743_v28, 1 }
 0x462   :  { %2808 = vmatpush1.msra.mxu1 %v3703_v5  ;;  %v1896_v41 = vpack.c.bf16 %v1840_v62, %v1838_v52  ;;  %v3709_v7 = vld [vmem:[#allocation4 + $0x70] sm:$0xff]  ;;  %v3583_v56 = vld [vmem:[#allocation2 + $0x2c4] ss:$8 sps:$4 sm:$0xff]   ;;  %v3581_v59 = vld [vmem:[#allocation2 + $0x2c0] ss:$8 sps:$4 sm:$0xff]   ;;  %v1851_v62 = vrot.slane %v4803_v50, 1 }
 0x463   :  { %2649 = vmatpush1.bf16.msra.mxu0 %v3563_v57  ;;  %2809 = vmatprep.subr.mxu1 %v3704_v27  ;;  %v3712_v57 = vld [vmem:[#allocation4 + $0x58] sm:$0xff]  ;;  %v3713_v42 = vld [vmem:[#allocation4 + $0x50] sm:$0xff]  ;;  %v3714_v45 = vld [vmem:[#allocation4 + $0x48] sm:$0xff]  ;;  %v1870_v46 = vsel %vm677_vm2, %v1842_v55, %v1844_v29 }
 0x464   :  { %2417 = vmatmul.mubr.bf16.gmra.mxu1 %v1894_v39  ;;  %2650 = vmatprep.subr.bf16.mxu0 %v3568_v23  ;;  %v3715_v63 = vld [vmem:[#allocation4 + $0x40] sm:$0xff]  ;;  %v3716_v23 = vld [vmem:[#allocation4 + $0x38] sm:$0xff]  ;;  %v3717_v24 = vld [vmem:[#allocation4 + $0x30] sm:$0xff]  ;;  %v1865_v50 = vsel %vm677_vm2, %v1849_v26, %v1851_v62 }
 0x465   :  { %2426 = vmatprep.mubr.bf16.mxu1 %v1897_v2  ;;  %2810 = vmatpush1.msra.mxu1 %v3705_v9  ;;  %v3586_v34 = vld [vmem:[#allocation2 + $0x2b4] ss:$8 sps:$4 sm:$0xff]   ;;  %v3718_v3 = vld [vmem:[#allocation4 + $0x28] sm:$0xff]  ;;  %v3719_v36 = vld [vmem:[#allocation4 + $0x20] sm:$0xff] }
 0x466   :  { %2194 = vmatmul.mubr.bf16.gmra.mxu0 %v1936_v16  ;;  %2811 = vmatprep.subr.mxu1 %v3706_v58  ;;  %v3584_v37 = vld [vmem:[#allocation2 + $0x2b0] ss:$8 sps:$4 sm:$0xff]   ;;  %v3589_v25 = vld [vmem:[#allocation2 + $0x2a4] ss:$8 sps:$4 sm:$0xff]   ;;  %v3587_v8 = vld [vmem:[#allocation2 + $0x2a0] ss:$8 sps:$4 sm:$0xff]  }
 0x467   :  { %2651 = vmatpush1.bf16.msra.mxu0 %v3566_v18  ;;  %2670 = vmatprep.mubr.bf16.mxu0 %v2438_v0  ;;  %v3720_v39 = vld [vmem:[#allocation4 + $0x18] sm:$0xff]  ;;  %v3721_v2 = vld [vmem:[#allocation4 + $0x10] sm:$0xff]  ;;  %v3722_v18 = vld [vmem:[#allocation4 + $0x8] sm:$0xff]  ;;  %v1846_v0 = vrot.slane %v4792_v35, 1 }
 0x468   :  { %2652 = vmatprep.subr.bf16.mxu0 %v3571_v12  ;;  %2812 = vmatpush1.msra.mxu1 %v3707_v30  ;;  %v3723_v48 = vld [vmem:[#allocation4] sm:$0xff]  ;;  %v3724_v61 = vld [vmem:[#allocation4 + $0x1f8] sm:$0xff]  ;;  %v3725_v12 = vld [vmem:[#allocation4 + $0x1f0] sm:$0xff] }
 0x469   :  { %2813 = vmatprep.subr.mxu1 %v3708_v32  ;;  %v3592_v16 = vld [vmem:[#allocation2 + $0x294] ss:$8 sps:$4 sm:$0xff]   ;;  %v3726_v52 = vld [vmem:[#allocation4 + $0x1e8] sm:$0xff]  ;;  %v1868_v35 = vsel %vm677_vm2, %v1844_v29, %v1846_v0  ;;  %v3731_v9 = vld [vmem:[#allocation4 + $0x1c0] sm:$0xff]  ;;  %v1854_v29 = vrot.slane %v4846_v20, 1 }
 0x46a   :  { %2814 = vmatpush1.msra.mxu1 %v3709_v7  ;;  %v3728_v5 = vld [vmem:[#allocation4 + $0x1d8] sm:$0xff]  ;;  %v3729_v27 = vld [vmem:[#allocation4 + $0x1d0] sm:$0xff]  ;;  %v3730_v40 = vld [vmem:[#allocation4 + $0x1c8] sm:$0xff] }
 0x46b   :  { %2653 = vmatpush1.bf16.msra.mxu0 %v3569_v6  ;;  %2815 = vmatprep.subr.mxu1 %v3710_v51  ;;  %v3727_v6 = vld [vmem:[#allocation4 + $0x1e0] sm:$0xff]  ;;  %v3732_v58 = vld [vmem:[#allocation4 + $0x1b8] sm:$0xff]  ;;  %v3734_v32 = vld [vmem:[#allocation6 + $0x90] sm:$0xff] }
 0x46c   :  { %2427 = vmatmul.mubr.bf16.gmra.mxu1 %v1896_v41  ;;  %2654 = vmatprep.subr.bf16.mxu0 %v3574_v19  ;;  %v3590_v19 = vld [vmem:[#allocation2 + $0x290] ss:$8 sps:$4 sm:$0xff]   ;;  %v3595_v41 = vld [vmem:[#allocation2 + $0x284] ss:$8 sps:$4 sm:$0xff]  }
 0x46d   :  { %2816 = vmatpush1.msra.mxu1 %v3711_v49  ;;  %v3733_v30 = vld [vmem:[#allocation6 + $0x80] sm:$0xff]  ;;  %v3735_v7 = vld [vmem:[#allocation4 + $0x1b0] sm:$0xff]  ;;  %v3736_v51 = vld [vmem:[#allocation6 + $0xa8] sm:$0xff] }
 0x46e   :  { %2817 = vmatprep.subr.mxu1 %v3712_v57  ;;  %v1848_v57 = vrot.slane %v4794_v33, 1  ;;  %v3767_v38 = vld [vmem:[#allocation4 + $0x100] sm:$0xff] }
 0x46f   :  { %2655 = vmatpush2.bf16.msra.mxu0 %v3572_v17  ;;  %2818 = vmatpush1.msra.mxu1 %v3713_v42  ;;  %v1867_v17 = vsel %vm677_vm2, %v1847_v21, %v1849_v26  ;;  %v1850_v21 = vrot.slane %v4811_v14, 1  ;;  %v1853_v42 = vrot.slane %v4806_v47, 1  ;;  %v1857_v26 = vrot.slane %v4763_v44, 1 }
 0x470   :  { %2656 = vmatprep.subr.bf16.mxu0 %v3577_v43  ;;  %2819 = vmatprep.subr.mxu1 %v3714_v45  ;;  %v3593_v43 = vld [vmem:[#allocation2 + $0x280] ss:$8 sps:$4 sm:$0xff]   ;;  %v1879_v49 = vmul.f32 %v3736_v51, %v1867_v17  ;;  %v1855_v45 = vrot.slane %v4829_v15, 1  ;;  %v1866_v14 = vsel %vm677_vm2, %v1846_v0, %v1848_v57  ;;  %v1852_v0 = vrot.slane %v4814_v4, 1  ;;  %v3764_v51 = vld [vmem:[#allocation4 + $0x118] sm:$0xff] }
 0x471   :  { %2820 = vmatpush1.msra.mxu1 %v3715_v63  ;;  %v3739_v63 = vld [vmem:[#allocation4 + $0x1a0] sm:$0xff]  ;;  %v1864_v33 = vsel %vm677_vm2, %v1848_v57, %v1850_v21  ;;  %v1863_v15 = vsel %vm677_vm2, %v1851_v62, %v1853_v42  ;;  %v1873_v20 = vsel %vm677_vm2, %v1857_v26, %v1843_v22  ;;  %v1858_v57 = vsel %vm677_vm2, %v1854_v29, %v1856_v11 }
 0x472   :  { %2821 = vmatprep.subr.mxu1 %v3716_v23  ;;  %v1861_v47 = vsel %vm677_vm2, %v1853_v42, %v1855_v45  ;;  %v3751_v62 = vld [vmem:[#allocation4 + $0x160] sm:$0xff]  ;;  %v1862_v4 = vsel %vm677_vm2, %v1850_v21, %v1852_v0  ;;  %v1859_v44 = vsel %vm677_vm2, %v1855_v45, %v1857_v26  ;;  %v1872_v21 = vsel %vm677_vm2, %v1856_v11, %v1842_v55 }
 0x473   :  { %2657 = vmatpush2.bf16.msra.mxu0 %v3575_v53  ;;  %2822 = vmatpush1.msra.mxu1 %v3717_v24  ;;  %v1874_v53 = vmul.f32 %v3733_v30, %v1870_v46  ;;  %v3755_v46 = vld [vmem:[#allocation4 + $0x140] sm:$0xff]  ;;  %v3760_v30 = vld [vmem:[#allocation6 + $0xe8] sm:$0xff] }
 0x474   :  { %2658 = vmatprep.subr.bf16.mxu0 %v3580_v13  ;;  %2823 = vmatprep.subr.mxu1 %v3718_v3  ;;  %v1876_v13 = vmul.f32 %v3734_v32, %v1868_v35  ;;  %v3742_v3 = vld [vmem:[#allocation4 + $0x188] sm:$0xff]  ;;  %v3761_v32 = vld [vmem:[#allocation6 + $0xf8] sm:$0xff]  ;;  %v3763_v22 = vld [vmem:[#allocation4 + $0x120] sm:$0xff] }
 0x475   :  { %2824 = vmatpush1.msra.mxu1 %v3719_v36  ;;  %v3743_v36 = vld [vmem:[#allocation4 + $0x180] sm:$0xff]  ;;  %v3754_v35 = vld [vmem:[#allocation4 + $0x148] sm:$0xff] }
 0x476   :  { %2825 = vmatprep.subr.mxu1 %v3720_v39  ;;  %v2437_v23 = vpack.c.bf16 %v1876_v13, %v1874_v53  ;;  %v3745_v39 = vld [vmem:[#allocation6 + $0xa0] sm:$0xff]  ;;  %v1887_v53 = vmul.f32 %v3760_v30, %v1859_v44  ;;  %v1889_v13 = vmul.f32 %v3761_v32, %v1873_v20 }
 0x477   :  { %2659 = vmatpush2.bf16.msra.mxu0 %v3578_v1  ;;  %2826 = vmatpush1.msra.mxu1 %v3721_v2  ;;  %v3737_v1 = vld [vmem:[#allocation6 + $0xb8] sm:$0xff]  ;;  %v3746_v2 = vld [vmem:[#allocation6 + $0xb0] sm:$0xff]  ;;  %v3768_v42 = vld [vmem:[#allocation6 + $0xe0] sm:$0xff] }
 0x478   :  { %2660 = vmatprep.subr.bf16.mxu0 %v3583_v56  ;;  %2827 = vmatprep.subr.mxu1 %v3722_v18  ;;  %v1881_v31 = vmul.f32 %v3737_v1, %v1865_v50  ;;  %v3738_v56 = vld [vmem:[#allocation4 + $0x1a8] sm:$0xff]  ;;  %v1880_v18 = vmul.f32 %v3746_v2, %v1864_v33  ;;  %v3757_v50 = vld [vmem:[#allocation6 + $0xc0] sm:$0xff]  ;;  %v3765_v1 = vld [vmem:[#allocation4 + $0x110] sm:$0xff]  ;;  %v1886_v45 = vmul.f32 %v3768_v42, %v1858_v57 }
 0x479   :  { %2828 = vmatpush1.msra.mxu1 %v3723_v48  ;;  %v3747_v48 = vld [vmem:[#allocation4 + $0x170] sm:$0xff]  ;;  %v1882_v17 = vmul.f32 %v3757_v50, %v1862_v4 }
 0x47a   :  { %2829 = vmatprep.subr.mxu1 %v3724_v61  ;;  %v2440_v24 = vpack.c.bf16 %v1881_v31, %v1879_v49  ;;  %v2444_v31 = vpack.c.bf16 %v1889_v13, %v1887_v53 }
 0x47b   :  { %2661 = vmatpush2.bf16.msra.mxu0 %v3581_v59  ;;  %2830 = vmatpush2.msra.mxu1 %v3725_v12  ;;  %v3740_v59 = vld [vmem:[#allocation4 + $0x198] sm:$0xff] }
 0x47c   :  { %2662 = vmatprep.subr.bf16.mxu0 %v3586_v34  ;;  %2831 = vmatprep.subr.mxu1 %v3726_v52  ;;  %v3741_v34 = vld [vmem:[#allocation4 + $0x190] sm:$0xff]  ;;  %v3750_v52 = vld [vmem:[#allocation4 + $0x168] sm:$0xff] }
 0x47d   :  { %2832 = vmatpush2.msra.mxu1 %v3727_v6  ;;  %v3752_v6 = vld [vmem:[#allocation4 + $0x158] sm:$0xff] }
 0x47e   :  { %2833 = vmatprep.subr.mxu1 %v3728_v5  ;;  %v3753_v5 = vld [vmem:[#allocation4 + $0x150] sm:$0xff] }
 0x47f   :  { %2663 = vmatpush2.bf16.msra.mxu0 %v3584_v37  ;;  %2834 = vmatpush2.msra.mxu1 %v3729_v27  ;;  %v3744_v37 = vld [vmem:[#allocation4 + $0x178] sm:$0xff]  ;;  %v1860_v27 = vsel %vm677_vm2, %v1852_v0, %v1854_v29 }
 0x480   :  { %2664 = vmatprep.subr.bf16.mxu0 %v3589_v25  ;;  %2835 = vmatprep.subr.mxu1 %v3730_v40  ;;  %v1878_v25 = vmul.f32 %v3745_v39, %v1866_v14  ;;  %v3756_v40 = vld [vmem:[#allocation4 + $0x138] sm:$0xff] }
 0x481   :  { %2836 = vmatpush2.msra.mxu1 %v3731_v9  ;;  %v3758_v9 = vld [vmem:[#allocation6 + $0xd0] sm:$0xff] }
 0x482   :  { %2837 = vmatprep.subr.mxu1 %v3732_v58  ;;  %v3759_v58 = vld [vmem:[#allocation4 + $0x130] sm:$0xff] }
 0x483   :  { %2665 = vmatpush2.bf16.msra.mxu0 %v3587_v8  ;;  %2838 = vmatpush2.msra.mxu1 %v3735_v7  ;;  %v3748_v8 = vld [vmem:[#allocation6 + $0xc8] sm:$0xff] }
 0x484   :  { %2666 = vmatprep.subr.bf16.mxu0 %v3592_v16  ;;  %2839 = vmatprep.subr.mxu1 %v3738_v56  ;;  %v1883_v61 = vmul.f32 %v3748_v8, %v1863_v15  ;;  %v3749_v16 = vld [vmem:[#allocation6 + $0xd8] sm:$0xff]  ;;  %v3762_v7 = vld [vmem:[#allocation4 + $0x128] sm:$0xff] }
 0x485   :  { %2840 = vmatpush2.msra.mxu1 %v3739_v63  ;;  %v1885_v12 = vmul.f32 %v3749_v16, %v1861_v47  ;;  %v3766_v56 = vld [vmem:[#allocation4 + $0x108] sm:$0xff]  ;;  %v3769_v63 = vld [vmem:[#allocation6 + $0xf0] sm:$0xff] }
 0x486   :  { %2841 = vmatprep.subr.mxu1 %v3740_v59  ;;  %v1888_v59 = vmul.f32 %v3769_v63, %v1872_v21 }
 0x487   :  { %2667 = vmatpush2.bf16.msra.mxu0 %v3590_v19  ;;  %2842 = vmatpush2.msra.mxu1 %v3741_v34  ;;  %v2439_v19 = vpack.c.bf16 %v1880_v18, %v1878_v25 }
 0x488   :  { %2668 = vmatprep.subr.bf16.mxu0 %v3595_v41  ;;  %2843 = vmatprep.subr.mxu1 %v3742_v3  ;;  %v2442_v41 = vpack.c.bf16 %v1885_v12, %v1883_v61 }
 0x489   :  { %2844 = vmatpush2.msra.mxu1 %v3743_v36 }
 0x48a   :  { %2845 = vmatprep.subr.mxu1 %v3744_v37 }
 0x48b   :  { %2669 = vmatpush2.bf16.msra.mxu0 %v3593_v43  ;;  %2846 = vmatpush2.msra.mxu1 %v3747_v48  ;;  %v1884_v43 = vmul.f32 %v3758_v9, %v1860_v27 }
 0x48c   :  { %2847 = vmatprep.subr.mxu1 %v3750_v52 }
 0x48d   :  { %2848 = vmatpush2.msra.mxu1 %v3751_v62  ;;  %v2441_v49 = vpack.c.bf16 %v1884_v43, %v1882_v17 }
 0x48e   :  { %2671 = vmatmul.mubr.bf16.vlgmr.msra.gmra.mxu0 %v2437_v23  ;;  %2849 = vmatprep.subr.mxu1 %v3752_v6  ;;  %v2443_v23 = vpack.c.bf16 %v1888_v59, %v1886_v45 }
 0x48f   :  { %2680 = vmatprep.mubr.bf16.mxu0 %v2440_v24  ;;  %2850 = vmatpush2.msra.mxu1 %v3753_v5 }
 0x490   :  { %2851 = vmatprep.subr.mxu1 %v3754_v35 }
 0x491   :  { %2852 = vmatpush2.msra.mxu1 %v3755_v46 }
 0x492   :  { %2853 = vmatprep.subr.mxu1 %v3756_v40 }
 0x493   :  { %2854 = vmatpush2.msra.mxu1 %v3759_v58 }
 0x494   :  { %2855 = vmatprep.subr.mxu1 %v3762_v7 }
 0x495   :  { %2856 = vmatpush2.msra.mxu1 %v3763_v22 }
 0x496   :  { %2681 = vmatmul.mubr.bf16.gmra.mxu0 %v2439_v19  ;;  %2857 = vmatprep.subr.mxu1 %v3764_v51 }
 0x497   :  { %2690 = vmatprep.mubr.bf16.mxu0 %v2442_v41  ;;  %2858 = vmatpush2.msra.mxu1 %v3765_v1 }
 0x498   :  { %2859 = vmatprep.subr.mxu1 %v3766_v56 }
 0x499   :  { %2860 = vmatpush2.msra.mxu1 %v3767_v38 }
 0x49e   :  { %2691 = vmatmul.mubr.bf16.gmra.mxu0 %v2441_v49 }
 0x49f   :  { %2700 = vmatprep.mubr.bf16.mxu0 %v2444_v31 }
 0x4a6   :  { %2701 = vmatmul.mubr.bf16.gmra.mxu0 %v2443_v23 }
 0x50e   :  { %v2165_v34 = vpop.f32.mrf.mxu0 }
 0x510   :  { %v2167_v24 = vpop.f32.mrf.mxu0 }
 0x512   :  { %v2169_v33 = vpop.f32.mrf.mxu0 }
 0x514   :  { %v2171_v14 = vpop.f32.mrf.mxu0  ;;  %v2398_v55 = vpop.f32.mrf.mxu1 }
 0x515   :  { %v2399_v40 = vadd.f32 %v2398_v55, %v2165_v34 }
 0x516   :  { %v2175_v28 = vpop.f32.mrf.mxu0  ;;  %v2400_v36 = vpop.f32.mrf.mxu1 }
 0x517   :  { %v2401_v58 = vadd.f32 %v2400_v36, %v2167_v24 }
 0x518   :  { %v2177_v3 = vpop.f32.mrf.mxu0  ;;  %v2402_v39 = vpop.f32.mrf.mxu1 }
 0x519   :  { %v2403_v20 = vadd.f32 %v2402_v39, %v2169_v33 }
 0x51a   :  { %v2179_v47 = vpop.f32.mrf.mxu0  ;;  %v2404_v2 = vpop.f32.mrf.mxu1 }
 0x51b   :  { %v2405_v50 = vadd.f32 %v2404_v2, %v2171_v14 }
 0x51c   :  { %v2181_v15 = vpop.f32.mrf.mxu0  ;;  %v2408_v48 = vpop.f32.mrf.mxu1 }
 0x51d   :  { %v2409_v17 = vadd.f32 %v2408_v48, %v2175_v28 }
 0x51e   :  { %v2185_v37 = vpop.f32.mrf.mxu0  ;;  %v2410_v61 = vpop.f32.mrf.mxu1 }
 0x51f   :  { %v2411_v32 = vadd.f32 %v2410_v61, %v2177_v3 }
 0x520   :  { %v2187_v25 = vpop.f32.mrf.mxu0  ;;  %v2412_v12 = vpop.f32.mrf.mxu1 }
 0x521   :  { %v2413_v13 = vadd.f32 %v2412_v12, %v2179_v47 }
 0x522   :  { %v2189_v18 = vpop.f32.mrf.mxu0  ;;  %v2414_v29 = vpop.f32.mrf.mxu1 }
 0x523   :  { %v2415_v51 = vadd.f32 %v2414_v29, %v2181_v15 }
 0x524   :  { %v2191_v8 = vpop.f32.mrf.mxu0  ;;  %v2418_v26 = vpop.f32.mrf.mxu1 }
 0x525   :  { %v2419_v1 = vadd.f32 %v2418_v26, %v2185_v37 }
 0x526   :  { %v4926_v16 = vpop.f32.mrf.mxu0  ;;  %v2420_v19 = vpop.f32.mrf.mxu1 }
 0x527   :  { %v2421_v38 = vadd.f32 %v2420_v19, %v2187_v25 }
 0x528   :  { %v4928_v0 = vpop.f32.mrf.mxu0  ;;  %v2422_v27 = vpop.f32.mrf.mxu1 }
 0x529   :  { %v2423_v33 = vadd.f32 %v2422_v27, %v2189_v18 }
 0x52a   :  { %v4930_v52 = vpop.f32.mrf.mxu0  ;;  %v2424_v44 = vpop.f32.mrf.mxu1 }
 0x52b   :  { %v2425_v37 = vadd.f32 %v2424_v44, %v2191_v8 }
 0x52c   :  { %v4932_v62 = vpop.f32.mrf.mxu0  ;;  %v2428_v30 = vpop.f32.mrf.mxu1 }
 0x52e   :  { %v2430_v42 = vpop.f32.mrf.mxu1 }
 0x530   :  { %v2432_v39 = vpop.f32.mrf.mxu1 }
 0x54e   :  { %v2672_v6 = vpop.f32.mrf.mxu0 }
 0x54f   :  { %v4936_v53 = vadd.f32 %v2672_v6, %v2399_v40  ;;  %v2429_v6 = vadd.f32 %v2428_v30, %v4926_v16 }
 0x550   :  { %v2674_v5 = vpop.f32.mrf.mxu0 }
 0x551   :  { %v4942_v49 = vadd.f32 %v2674_v5, %v2401_v58  ;;  %v2753_v45 = vmul.f32 %v4936_v53, %v4936_v53 }
 0x552   :  { %v2676_v41 = vpop.f32.mrf.mxu0 }
 0x553   :  { %v4934_v9 = vadd.f32 %v2676_v41, %v2403_v20  ;;  %v2754_v14 = vmul.f32 %v4942_v49, %v4942_v49  ;;  %v2431_v20 = vadd.f32 %v2430_v42, %v4928_v0 }
 0x554   :  { %v2678_v4 = vpop.f32.mrf.mxu0 }
 0x555   :  { %v4938_v11 = vadd.f32 %v2678_v4, %v2405_v50  ;;  %v2755_v31 = vmul.f32 %v4934_v9, %v4934_v9  ;;  %v2727_v28 = vadd.f32 %v4934_v9, %v4936_v53 }
 0x556   :  { %v2682_v35 = vpop.f32.mrf.mxu0 }
 0x557   :  { %v4940_v7 = vadd.f32 %v2682_v35, %v2409_v17  ;;  %v2756_v63 = vmul.f32 %v4938_v11, %v4938_v11  ;;  %v2769_v3 = vadd.f32 %v2755_v31, %v2753_v45  ;;  %v2740_v25 = vadd.f32 %v4938_v11, %v4942_v49 }
 0x558   :  { %v2684_v46 = vpop.f32.mrf.mxu0  ;;  %v2433_v17 = vadd.f32 %v2432_v39, %v4930_v52 }
 0x559   :  { %v4946_v57 = vadd.f32 %v2684_v46, %v2411_v32  ;;  %v2757_v59 = vmul.f32 %v4940_v7, %v4940_v7  ;;  %v2728_v2 = vadd.f32 %v2727_v28, %v4940_v7  ;;  %v2782_v48 = vadd.f32 %v2756_v63, %v2754_v14  ;;  %v2434_v46 = vpop.f32.mrf.mxu1 }
 0x55a   :  { %v2686_v43 = vpop.f32.mrf.mxu0 }
 0x55b   :  { %v4948_v21 = vadd.f32 %v2686_v43, %v2413_v13  ;;  %v2758_v47 = vmul.f32 %v4946_v57, %v4946_v57  ;;  %v2770_v61 = vadd.f32 %v2769_v3, %v2757_v59  ;;  %v2741_v8 = vadd.f32 %v2740_v25, %v4946_v57 }
 0x55c   :  { %v2688_v22 = vpop.f32.mrf.mxu0 }
 0x55d   :  { %v4956_v23 = vadd.f32 %v2688_v22, %v2415_v51  ;;  %v2759_v55 = vmul.f32 %v4948_v21, %v4948_v21  ;;  %v2729_v19 = vadd.f32 %v2728_v2, %v4948_v21  ;;  %v2783_v41 = vadd.f32 %v2782_v48, %v2758_v47 }
 0x55e   :  { %v2692_v56 = vpop.f32.mrf.mxu0 }
 0x55f   :  { %v4958_v34 = vadd.f32 %v2692_v56, %v2419_v1  ;;  %v2760_v12 = vmul.f32 %v4956_v23, %v4956_v23  ;;  %v2771_v27 = vadd.f32 %v2770_v61, %v2759_v55  ;;  %v2742_v16 = vadd.f32 %v2741_v8, %v4956_v23 }
 0x560   :  { %v2694_v24 = vpop.f32.mrf.mxu0  ;;  %v2435_v1 = vadd.f32 %v2434_v46, %v4932_v62 }
 0x561   :  { %v4968_v15 = vadd.f32 %v2694_v24, %v2421_v38  ;;  %v2761_v29 = vmul.f32 %v4958_v34, %v4958_v34  ;;  %v2730_v40 = vadd.f32 %v2729_v19, %v4958_v34  ;;  %v2784_v43 = vadd.f32 %v2783_v41, %v2760_v12 }
 0x562   :  { %v2696_v36 = vpop.f32.mrf.mxu0 }
 0x563   :  { %v4973_v18 = vadd.f32 %v2696_v36, %v2423_v33  ;;  %v2762_v4 = vmul.f32 %v4968_v15, %v4968_v15  ;;  %v2772_v58 = vadd.f32 %v2771_v27, %v2761_v29  ;;  %v2743_v13 = vadd.f32 %v2742_v16, %v4968_v15 }
 0x564   :  { %v2698_v26 = vpop.f32.mrf.mxu0 }
 0x565   :  { %v4982_v5 = vadd.f32 %v2698_v26, %v2425_v37  ;;  %v2763_v35 = vmul.f32 %v4973_v18, %v4973_v18  ;;  %v2731_v22 = vadd.f32 %v2730_v40, %v4973_v18  ;;  %v2785_v31 = vadd.f32 %v2784_v43, %v2762_v4 }
 0x566   :  { %v2702_v44 = vpop.f32.mrf.mxu0 }
 0x567   :  { %v4991_v50 = vadd.f32 %v2702_v44, %v2429_v6  ;;  %v2764_v30 = vmul.f32 %v4982_v5, %v4982_v5  ;;  %v2773_v56 = vadd.f32 %v2772_v58, %v2763_v35  ;;  %v2744_v38 = vadd.f32 %v2743_v13, %v4982_v5 }
 0x568   :  { %v2704_v32 = vpop.f32.mrf.mxu0 }
 0x569   :  { %v2765_v0 = vmul.f32 %v4991_v50, %v4991_v50  ;;  %v5000_v51 = vadd.f32 %v2704_v32, %v2431_v20  ;;  %v2732_v42 = vadd.f32 %v2731_v22, %v4991_v50  ;;  %v2786_v59 = vadd.f32 %v2785_v31, %v2764_v30 }
 0x56a   :  { %v2706_v52 = vpop.f32.mrf.mxu0 }
 0x56b   :  { %v2766_v45 = vmul.f32 %v5000_v51, %v5000_v51  ;;  %v5007_v63 = vadd.f32 %v2706_v52, %v2433_v17  ;;  %v2774_v24 = vadd.f32 %v2773_v56, %v2765_v0  ;;  %v2745_v14 = vadd.f32 %v2744_v38, %v5000_v51 }
 0x56c   :  { %v2708_v33 = vpop.f32.mrf.mxu0 }
 0x56d   :  { %v2733_v28 = vadd.f32 %v2732_v42, %v5007_v63  ;;  %v2767_v62 = vmul.f32 %v5007_v63, %v5007_v63  ;;  %v5013_v3 = vadd.f32 %v2708_v33, %v2435_v1  ;;  %v2787_v47 = vadd.f32 %v2786_v59, %v2766_v45 }
 0x56f   :  { %v2734_v55 = vrot.slane %v2733_v28, 4  ;;  %v2775_v36 = vadd.f32 %v2774_v24, %v2767_v62  ;;  %v2746_v37 = vadd.f32 %v2745_v14, %v5013_v3  ;;  %v2768_v39 = vmul.f32 %v5013_v3, %v5013_v3 }
 0x571   :  { %v2735_v25 = vadd.f32 %v2734_v55, %v2733_v28  ;;  %v2776_v2 = vrot.slane %v2775_v36, 4  ;;  %v2747_v48 = vrot.slane %v2746_v37, 4  ;;  %v2788_v61 = vadd.f32 %v2787_v47, %v2768_v39 }
 0x573   :  { %v2736_v12 = vrot.slane %v2735_v25, 2  ;;  %v2777_v29 = vadd.f32 %v2776_v2, %v2775_v36  ;;  %v2748_v26 = vadd.f32 %v2747_v48, %v2746_v37  ;;  %v2789_v6 = vrot.slane %v2788_v61, 4 }
 0x575   :  { %v2778_v8 = vrot.slane %v2777_v29, 2  ;;  %v2749_v19 = vrot.slane %v2748_v26, 2  ;;  %v2790_v41 = vadd.f32 %v2789_v6, %v2788_v61  ;;  %v2737_v27 = vadd.f32 %v2736_v12, %v2735_v25 }
 0x576   :  { %v2912_v25 = vsub.s32 4, %v4070_v54 }
 0x577   :  { %v2779_v4 = vadd.f32 %v2778_v8, %v2777_v29  ;;  %v2750_v35 = vadd.f32 %v2749_v19, %v2748_v26  ;;  %v2791_v44 = vrot.slane %v2790_v41, 2  ;;  %v2738_v40 = vrot.slane %v2737_v27, 1  ;;  %v3770_v8 = vld [vmem:[%s5102_s6] sm:$0x3f] }
 0x578   :  { %v2936_v26 = vsub.s32 5, %v4070_v54 }
 0x579   :  { %v2751_v20 = vrot.slane %v2750_v35, 1  ;;  %v2792_v46 = vadd.f32 %v2791_v44, %v2790_v41  ;;  %v2780_v16 = vrot.slane %v2779_v4, 1  ;;  %v2739_v32 = vadd.f32 %v2738_v40, %v2737_v27 }
 0x57b   :  { %v2793_v17 = vrot.slane %v2792_v46, 1  ;;  %v2781_v43 = vadd.f32 %v2780_v16, %v2779_v4  ;;  %v2752_v58 = vadd.f32 %v2751_v20, %v2750_v35 }
 0x57d   :  { %v2794_v30 = vadd.f32 %v2793_v17, %v2792_v46  ;;  %v2795_v22 = vsel %vm169_vm0, %v2739_v32, %v2781_v43 }
 0x57f   :  { %v2796_v13 = vsel %vm169_vm0, %v2752_v58, %v2794_v30 }
 0x580   :  { %2861 = vmatprep.mubr.f32.mxu1 %v2796_v13 }
 0x581   :  { %2862 = vmatmul.mubr.f32.vlgmr.msra.gmra.mxu1 %v2795_v22 }
 0x641   :  { %v2863_v0 = vpop.f32.mrf.mxu1 }
 0x642   :  { %v2868_v1 = vmul.f32 0.00048828125, %v2863_v0 }
 0x643   :  { %v2865_v31 = vpop.f32.mrf.mxu1 }
 0x644   :  { %v2870_v56 = vmul.f32 %v2868_v1, %v2868_v1  ;;  %v2869_v52 = vmul.f32 0.00048828125, %v2865_v31 }
 0x646   :  { %v2874_v38 = vrot.slane %v2870_v56, 7  ;;  %v2871_v42 = vmul.f32 %v2869_v52, %v2869_v52 }
 0x648   :  { %v2878_v45 = vsub.f32 %v2868_v1, %v2874_v38  ;;  %v2875_v59 = vrot.slane %v2871_v42, 7 }
 0x64a   :  { %v2880_v24 = vmax.f32 %v2878_v45, 0.0  ;;  %v2879_v33 = vsub.f32 %v2869_v52, %v2875_v59 }
 0x64c   :  { %v2882_v14 = vadd.f32 1e-05, %v2880_v24  ;;  %v2881_v28 = vmax.f32 %v2879_v33, 0.0 }
 0x64e   :  { %3604 = vrsqrt.f32 %v2882_v14  ;;  %v2883_v62 = vadd.f32 1e-05, %v2881_v28 }
 0x650   :  { %3606 = vrsqrt.f32 %v2883_v62 }
 0x65b   :  { %v3605_v47 = vpop.eup %3604 }
 0x65c   :  { %v2888_v55 = vrot.slane %v3605_v47, 5 }
 0x65d   :  { %v3607_v36 = vpop.eup %3606 }
 0x65e   :  { %v2892_v37 = vmul.f32 %v4678_v60, %v2888_v55  ;;  %v2889_v39 = vrot.slane %v3607_v36, 5 }
 0x660   :  { %v2896_v2 = vrot.slane %v2892_v37, 4  ;;  %v2893_v48 = vmul.f32 %v4684_v10, %v2889_v39  ;;  %v2913_v12 = vrot.slane %v2892_v37, %v2912_v25 }
 0x662   :  { %v2900_v61 = vmul.f32 %v2896_v2, %v2868_v1  ;;  %v2897_v6 = vrot.slane %v2893_v48, 4  ;;  %v2918_v60 = vmul.f32 %v2913_v12, %v4936_v53  ;;  %v2920_v27 = vmul.f32 %v2913_v12, %v4934_v9 }
 0x663   :  { %v2922_v4 = vmul.f32 %v2913_v12, %v4940_v7  ;;  %v2924_v10 = vmul.f32 %v2913_v12, %v4948_v21  ;;  %v2926_v35 = vmul.f32 %v2913_v12, %v4958_v34  ;;  %v2928_v44 = vmul.f32 %v2913_v12, %v4973_v18 }
 0x664   :  { %v2904_v29 = vrot.slane %v2900_v61, 3  ;;  %v2901_v41 = vmul.f32 %v2897_v6, %v2869_v52  ;;  %v2930_v20 = vmul.f32 %v2913_v12, %v4991_v50  ;;  %v2932_v46 = vmul.f32 %v2913_v12, %v5007_v63  ;;  %v3771_v63 = vld [vmem:[%s5102_s6 + $0x8] sm:$0x3f] }
 0x665   :  { %v2917_v40 = vrot.slane %v2893_v48, %v2912_v25 }
 0x666   :  { %v2908_v19 = vsub.f32 %v3770_v8, %v2904_v29  ;;  %v2905_v16 = vrot.slane %v2901_v41, 3 }
 0x667   :  { %v2919_v56 = vmul.f32 %v2917_v40, %v4942_v49  ;;  %v2921_v52 = vmul.f32 %v2917_v40, %v4938_v11  ;;  %v2923_v38 = vmul.f32 %v2917_v40, %v4946_v57  ;;  %v2925_v42 = vmul.f32 %v2917_v40, %v4956_v23 }
 0x668   :  { %v2937_v54 = vrot.slane %v2908_v19, %v2936_v26  ;;  %v2909_v31 = vsub.f32 %v3771_v63, %v2905_v16  ;;  %v2927_v59 = vmul.f32 %v2917_v40, %v4968_v15  ;;  %v2929_v24 = vmul.f32 %v2917_v40, %v4982_v5 }
 0x669   :  { %v2931_v33 = vmul.f32 %v2917_v40, %v5000_v51  ;;  %v2933_v14 = vmul.f32 %v2917_v40, %v5013_v3 }
 0x66a   :  { %v2942_v17 = vadd.f32 %v2937_v54, %v2918_v60  ;;  %v2944_v43 = vadd.f32 %v2937_v54, %v2920_v27  ;;  %v2946_v53 = vadd.f32 %v2937_v54, %v2922_v4  ;;  %v2948_v58 = vadd.f32 %v2937_v54, %v2924_v10 }
 0x66b   :  { %v2950_v9 = vadd.f32 %v2937_v54, %v2926_v35  ;;  %v2952_v30 = vadd.f32 %v2937_v54, %v2928_v44  ;;  %v2954_v7 = vadd.f32 %v2937_v54, %v2930_v20  ;;  %v2956_v32 = vadd.f32 %v2937_v54, %v2932_v46 }
 0x66c   :  { %v2958_v21 = vmax.f32 %v2942_v17, 0.0  ;;  %v2960_v13 = vmax.f32 %v2944_v43, 0.0  ;;  %v2962_v34 = vmax.f32 %v2946_v53, 0.0  ;;  %v2964_v22 = vmax.f32 %v2948_v58, 0.0 }
 0x66d   :  { %v2966_v18 = vmax.f32 %v2950_v9, 0.0  ;;  %v2968_v0 = vmax.f32 %v2952_v30, 0.0  ;;  %v2970_v1 = vmax.f32 %v2954_v7, 0.0  ;;  %v2972_v50 = vmax.f32 %v2956_v32, 0.0 }
 0x66e   :  { %2974 = vst [vmem:[%s5103_s7] sm:$0xff] %v2958_v21  ;;  %2976 = vst [vmem:[%s5103_s7 + $0x10] sm:$0xff] %v2960_v13  ;;  %v2941_v45 = vrot.slane %v2909_v31, %v2936_v26 }
 0x66f   :  { %2978 = vst [vmem:[%s5103_s7 + $0x20] sm:$0xff] %v2962_v34  ;;  %2980 = vst [vmem:[%s5103_s7 + $0x30] sm:$0xff] %v2964_v22 }
 0x670   :  { %2982 = vst [vmem:[%s5103_s7 + $0x40] sm:$0xff] %v2966_v18  ;;  %2984 = vst [vmem:[%s5103_s7 + $0x50] sm:$0xff] %v2968_v0  ;;  %v2943_v28 = vadd.f32 %v2941_v45, %v2919_v56  ;;  %v2945_v62 = vadd.f32 %v2941_v45, %v2921_v52  ;;  %v2947_v47 = vadd.f32 %v2941_v45, %v2923_v38 }
 0x671   :  { %2986 = vst [vmem:[%s5103_s7 + $0x60] sm:$0xff] %v2970_v1  ;;  %2988 = vst [vmem:[%s5103_s7 + $0x70] sm:$0xff] %v2972_v50  ;;  %v2949_v55 = vadd.f32 %v2941_v45, %v2925_v42  ;;  %v2951_v49 = vadd.f32 %v2941_v45, %v2927_v59  ;;  %v2953_v36 = vadd.f32 %v2941_v45, %v2929_v24 }
 0x672   :  { %v2955_v11 = vadd.f32 %v2941_v45, %v2931_v33  ;;  %v2957_v37 = vadd.f32 %v2941_v45, %v2933_v14  ;;  %v2959_v57 = vmax.f32 %v2943_v28, 0.0  ;;  %v2961_v39 = vmax.f32 %v2945_v62, 0.0 }
 0x673   :  { %v2963_v23 = vmax.f32 %v2947_v47, 0.0  ;;  %v2965_v25 = vmax.f32 %v2949_v55, 0.0  ;;  %v2967_v2 = vmax.f32 %v2951_v49, 0.0  ;;  %v2969_v15 = vmax.f32 %v2953_v36, 0.0 }
 0x674   :  { %v2971_v48 = vmax.f32 %v2955_v11, 0.0  ;;  %v2973_v5 = vmax.f32 %v2957_v37, 0.0  ;;  %2975 = vst [vmem:[%s5103_s7 + $0x8] sm:$0xff] %v2959_v57  ;;  %2977 = vst [vmem:[%s5103_s7 + $0x18] sm:$0xff] %v2961_v39 }
 0x675   :  { %2979 = vst [vmem:[%s5103_s7 + $0x28] sm:$0xff] %v2963_v23  ;;  %2981 = vst [vmem:[%s5103_s7 + $0x38] sm:$0xff] %v2965_v25 }
 0x676   :  { %2983 = vst [vmem:[%s5103_s7 + $0x48] sm:$0xff] %v2967_v2  ;;  %2985 = vst [vmem:[%s5103_s7 + $0x58] sm:$0xff] %v2969_v15 }
 0x677   :  { %2987 = vst [vmem:[%s5103_s7 + $0x68] sm:$0xff] %v2971_v48  ;;  %2989 = vst [vmem:[%s5103_s7 + $0x78] sm:$0xff] %v2973_v5 }
 0x678   :  { %2994 = vsyncpa [#allocation3], 1 }
 0x679   :  { %2995 = vsyncpa [#allocation5], 1 }

</bundles_post_ra>
